<compile_context>
chip_gen: v7x
topology: tpu7x:2x2x1
jax: 0.10.0
libtpu: 0.0.40
codegen_flags: <defaults>
</compile_context>

<pallas_src>
import functools

import numpy as np

import jax
import jax.numpy as jnp
from jax import lax
from jax.experimental import pallas as pl
from jax.experimental.pallas import tpu as pltpu


_OC = 12            # channels of every conv layer
_HW1 = 14           # conv1 output spatial size
_HW2 = 7            # conv2 / conv3 output spatial size
_D = 588            # 12 * 7 * 7 flattened feature size
_DP = _HW2 * 128    # 896: lane-padded channels-last hidden width (7 x 128 lanes)
_NCLS = 10
_KH = 5

# conv1 im2col row order: per sample, the 7 even output rows first, then the 7
# odd ones (so the kernel stores straight into the parity-split conv2 input
# buffer); each row is the concat of the 5 padded input rows that it reads.
_CONV1_OH_ORDER = np.array([2 * j for j in range(7)] + [2 * j + 1 for j in range(7)])
_CONV1_ROW_IDX = (2 * _CONV1_OH_ORDER[:, None] + np.arange(_KH)[None, :]).reshape(-1)

# channels-last flat index (oh*84 + ow*12 + c) -> NCHW flat index (c*49 + oh*7 + ow)
_ohg, _owg, _cg = np.meshgrid(np.arange(7), np.arange(7), np.arange(12), indexing="ij")
_CL_TO_NCHW = (_cg * 49 + _ohg * 7 + _owg).reshape(-1)


# ----------------------------------------------------------------------------
# Fused Pallas kernel
# ----------------------------------------------------------------------------
def _lenet_precode_kernel(x_ref, w1_ref, b1_ref, w2_ref, b2_ref, w3_ref,
                          b3_ref, wmu_ref, bmu_ref, wlv_ref, blv_ref,
                          wdec_ref, bdec_ref, wcls_ref, bcls_ref, eps_ref,
                          out_ref, hid_ref, p2_ref, p3_ref, *, bt):
    f32 = jnp.float32

    def dot(a, b):
        return jnp.dot(a, b, preferred_element_type=f32)

    def sigmoid(v):
        # exp and the approximate reciprocal both run on the EUP slot.
        return pl.reciprocal(1.0 + jnp.exp(-v), approx=True)

    # ---- zero ONLY the conv "same" H-padding rows of the scratch buffers ----
    z2 = jnp.zeros((1, p2_ref.shape[-1]), f32)
    z3 = jnp.zeros((2, p3_ref.shape[-1]), f32)
    for b in range(bt):
        for r in range(2):
            p2_ref[r, pl.ds(b * 9, 1), :] = z2          # padded row h = r
            p2_ref[r, pl.ds(b * 9 + 8, 1), :] = z2      # padded row h = 16 + r
        p3_ref[pl.ds(b * 11, 2), :] = z3                # padded rows 0, 1
        p3_ref[pl.ds(b * 11 + 9, 2), :] = z3            # padded rows 9, 10

    # ---- conv1: 1x28x28 -> 12x14x14 (k=5, s=2, p=2): ONE batched MXU dot ----
    # x_ref rows are host-side im2col'd (5 kh taps concatenated, W padding is
    # folded into the banded weight) and ordered even output rows then odd.
    y1 = sigmoid(dot(x_ref[...], w1_ref[...]) + b1_ref[...])      # [bt*14, 168]
    for b in range(bt):
        p2_ref[0, pl.ds(b * 9 + 1, 7), :] = y1[b * 14:b * 14 + 7, :]
        p2_ref[1, pl.ds(b * 9 + 1, 7), :] = y1[b * 14 + 7:b * 14 + 14, :]

    # ---- conv2: 12x14x14 -> 12x7x7 (k=5, s=2, p=2): 5 batched dots ----------
    # p2 holds the H-padded conv1 output split by row parity; each tap reads a
    # single contiguous sublane slice across the whole batch tile.  Result
    # rows b*9 .. b*9+6 are sample b's outputs; the 2 trailing rows per sample
    # are junk (they read into the next sample's region) and are never used.
    n2 = bt * 9 - 2
    acc2 = dot(p2_ref[0, pl.ds(0, n2), :], w2_ref[0])
    for kh in range(1, _KH):
        acc2 += dot(p2_ref[kh % 2, pl.ds(kh // 2, n2), :], w2_ref[kh])
    y2 = sigmoid(acc2 + b2_ref[...])                               # [n2, 84]
    for b in range(bt):
        p3_ref[pl.ds(b * 11 + 2, 7), :] = y2[b * 9:b * 9 + 7, :]

    # ---- conv3: 12x7x7 -> 12x7x7 (k=5, s=1, p=2): 5 batched dots ------------
    n3 = bt * 11 - 4
    acc3 = dot(p3_ref[pl.ds(0, n3), :], w3_ref[0])
    for kh in range(1, _KH):
        acc3 += dot(p3_ref[pl.ds(kh, n3), :], w3_ref[kh])
    y3 = sigmoid(acc3 + b3_ref[...])                               # [n3, 84]

    # ---- flatten: channels-last, lane-padded to 7 x 128 ---------------------
    # hid_ref[b, oh*128 + (ow*12 + c)] = y3 row (b, oh).  The 128-aligned lane
    # offsets keep every store a simple masked store (no lane rotation); the
    # wrapper strips the pad lanes and restores NCHW order for free, and the
    # encoder weights were row-permuted/padded on the host to match.
    hid_ref[...] = jnp.zeros(hid_ref.shape, f32)
    for b in range(bt):
        for oh in range(_HW2):
            hid_ref[pl.ds(b, 1), pl.ds(oh * 128, _HW2 * _OC)] = (
                y3[b * 11 + oh:b * 11 + oh + 1, :])
    hid = hid_ref[...]                                             # [bt, 896]

    # ---- variational bottleneck + classifier (batched) ----------------------
    mu = dot(hid, wmu_ref[...]) + bmu_ref[...]                     # [bt, K]
    lv = dot(hid, wlv_ref[...]) + blv_ref[...]                     # [bt, K]
    z = mu + jnp.exp(0.5 * lv) * eps_ref[...]
    feat = dot(z, wdec_ref[...]) + bdec_ref[...]                   # [bt, 588]
    out_ref[...] = dot(feat, wcls_ref[...]) + bcls_ref[...]        # [bt, 10]


# ----------------------------------------------------------------------------
# pallas_call wrapper
# ----------------------------------------------------------------------------
def _pick_batch_tile(B):
    # Whole batch in one grid step unless it is large; for large batches use
    # 8-sample tiles (keeps every batch-tiled block (8,128)-legal) so the
    # batch grid axis can be marked "parallel" (v7x: 2 TensorCores).
    if B <= 8 or B % 8 != 0:
        return B
    return 8


def _fused_forward(prep, x_rows, eps, bt):
    B, K = eps.shape
    n_blk = B // bt

    def tiled(rows, cols):
        return pl.BlockSpec((rows, cols), lambda i: (i, 0))

    def full(shape):
        nd = len(shape)
        return pl.BlockSpec(shape, lambda i, _nd=nd: (0,) * _nd)

    weights = (prep["w1"], prep["b1"], prep["w2"], prep["b2"], prep["w3"],
               prep["b3"], prep["wmu"], prep["bmu"], prep["wlv"], prep["blv"],
               prep["wdec"], prep["bdec"], prep["wcls"], prep["bcls"])
    in_specs = ([tiled(bt * _HW1, _KH * 28)]
                + [full(w.shape) for w in weights]
                + [tiled(bt, K)])
    out_specs = (tiled(bt, _NCLS), tiled(bt, _DP))

    kernel = functools.partial(_lenet_precode_kernel, bt=bt)
    return pl.pallas_call(
        kernel,
        out_shape=(jax.ShapeDtypeStruct((B, _NCLS), jnp.float32),
                   jax.ShapeDtypeStruct((B, _DP), jnp.float32)),
        grid=(n_blk,),
        in_specs=in_specs,
        out_specs=out_specs,
        scratch_shapes=[
            # conv2 input: H zero-padded, split by row parity; 9 rows/sample.
            pltpu.VMEM((2, bt * 9, _HW1 * _OC), jnp.float32),
            # conv3 input: H zero-padded; 11 rows/sample.
            pltpu.VMEM((bt * 11, _HW2 * _OC), jnp.float32),
        ],
        compiler_params=pltpu.CompilerParams(
            dimension_semantics=("parallel",)),
    )(x_rows, *weights, eps)


def lenet_precode_forward(prep, x, eps):
    """Fused Pallas forward; returns (out, hidden, x) like the PyTorch module."""
    B = x.shape[0]
    bt = _pick_batch_tile(B)
    # Host-side glue on x only: H "same"-padding + a cheap row gather that
    # concatenates, per conv1 output row, the 5 input rows it reads, so conv1
    # is a single MXU dot in the kernel.  W padding lives in the banded weights.
    xp = jnp.pad(x[:, 0].astype(jnp.float32), ((0, 0), (2, 2), (0, 0)))  # [B,32,28]
    x_rows = xp[:, _CONV1_ROW_IDX, :].reshape(B * _HW1, _KH * 28)        # [B*14,140]
    out, hid_pad = _fused_forward(prep, x_rows, eps.astype(jnp.float32), bt)
    # Strip lane padding and restore PyTorch's NCHW flatten order (free).
    hidden = (hid_pad.reshape(B, _HW2, 128)[:, :, :_HW2 * _OC]
              .reshape(B, _HW2, _HW2, _OC)
              .transpose(0, 3, 1, 2).reshape(B, _D))
    return out, hidden, x


lenet_precode_forward = jax.jit(lenet_precode_forward)


# ----------------------------------------------------------------------------
# One-time parameter preprocessing
# ----------------------------------------------------------------------------
def _banded_conv_weight(w, stride, in_w, out_w):
    """PyTorch conv weight [OC, IC, KH, KW] (pad = KW//2) -> per-kh banded
    matmul weights [KH, in_w*IC, out_w*OC] acting on channels-last rows."""
    oc, ic, kh_, kw_ = w.shape
    pad = kw_ // 2
    wt = jnp.transpose(w.astype(jnp.float32), (2, 3, 1, 0))      # [KH,KW,IC,OC]
    sel = np.zeros((kw_, out_w, in_w), np.float32)
    for kw in range(kw_):
        for ow in range(out_w):
            iw = stride * ow + kw - pad
            if 0 <= iw < in_w:
                sel[kw, ow, iw] = 1.0
    band = jnp.einsum("kzw,hkco->hwczo", jnp.asarray(sel), wt)
    return band.reshape(kh_, in_w * ic, out_w * oc)


def _bias_row(b, out_w):
    return jnp.tile(b.astype(jnp.float32), out_w)[None, :]       # [1, out_w*OC]


def _lane_pad_cl_rows(w):
    """[588, N] channels-last-row weight -> [896, N]: each 84-row block is
    zero-padded to 128 rows to match the kernel's lane-padded hidden layout."""
    n = w.shape[1]
    return jnp.pad(w.reshape(_HW2, _HW2 * _OC, n),
                   ((0, 0), (0, 128 - _HW2 * _OC), (0, 0))).reshape(_DP, n)


def preprocess_params(params):
    """f32 cast + banded conv layout + NCHW flatten permutation folded into the
    (lane-padded, channels-last) encoder weights."""
    K = params["dec_w"].shape[0]
    enc_w = params["enc_w"].astype(jnp.float32)[_CL_TO_NCHW, :]   # rows -> CL order
    enc_b = params["enc_b"].astype(jnp.float32)
    return {
        "w1": _banded_conv_weight(params["conv1_w"], 2, 28, _HW1).reshape(
            _KH * 28, _HW1 * _OC),
        "b1": _bias_row(params["conv1_b"], _HW1),
        "w2": _banded_conv_weight(params["conv2_w"], 2, _HW1, _HW2),
        "b2": _bias_row(params["conv2_b"], _HW2),
        "w3": _banded_conv_weight(params["conv3_w"], 1, _HW2, _HW2),
        "b3": _bias_row(params["conv3_b"], _HW2),
        "wmu": _lane_pad_cl_rows(enc_w[:, :K]), "bmu": enc_b[None, :K],
        "wlv": _lane_pad_cl_rows(enc_w[:, K:]), "blv": enc_b[None, K:],
        "wdec": params["dec_w"].astype(jnp.float32),
        "bdec": params["dec_b"].astype(jnp.float32)[None, :],
        "wcls": params["cls_w"].astype(jnp.float32),
        "bcls": params["cls_b"].astype(jnp.float32)[None, :],
    }


def init_params(key, hidden_size):
    """weights_init from the PyTorch module: uniform(-0.5, 0.5) everywhere."""
    def u(k, shape):
        return jax.random.uniform(k, shape, minval=-0.5, maxval=0.5,
                                  dtype=jnp.float32)

    ks = jax.random.split(key, 12)
    return {
        "conv1_w": u(ks[0], (12, 1, 5, 5)),  "conv1_b": u(ks[1], (12,)),
        "conv2_w": u(ks[2], (12, 12, 5, 5)), "conv2_b": u(ks[3], (12,)),
        "conv3_w": u(ks[4], (12, 12, 5, 5)), "conv3_b": u(ks[5], (12,)),
        "enc_w":   u(ks[6], (_D, 2 * hidden_size)),
        "enc_b":   u(ks[7], (2 * hidden_size,)),
        "dec_w":   u(ks[8], (hidden_size, _D)),
        "dec_b":   u(ks[9], (_D,)),
        "cls_w":   u(ks[10], (_D, 10)),
        "cls_b":   u(ks[11], (10,)),
    }


# ----------------------------------------------------------------------------
# Pure-JAX reference (correctness check)
# ----------------------------------------------------------------------------
def _reference_forward(params, x, eps):
    hp = lax.Precision.HIGHEST

    def conv_sig(a, w, b, stride):
        y = lax.conv_general_dilated(
            a, w, window_strides=(stride, stride), padding=((2, 2), (2, 2)),
            dimension_numbers=("NCHW", "OIHW", "NCHW"), precision=hp)
        return jax.nn.sigmoid(y + b[None, :, None, None])

    h = conv_sig(x, params["conv1_w"], params["conv1_b"], 2)
    h = conv_sig(h, params["conv2_w"], params["conv2_b"], 2)
    h = conv_sig(h, params["conv3_w"], params["conv3_b"], 1)
    hidden = h.reshape(h.shape[0], -1)
    K = eps.shape[1]
    stats = jnp.dot(hidden, params["enc_w"], precision=hp) + params["enc_b"]
    mu, lv = stats[:, :K], stats[:, K:]
    z = mu + jnp.exp(0.5 * lv) * eps
    feat = jnp.dot(z, params["dec_w"], precision=hp) + params["dec_b"]
    out = jnp.dot(feat, params["cls_w"], precision=hp) + params["cls_b"]
    return out, hidden


# ----------------------------------------------------------------------------
if __name__ == "__main__":
    key = jax.random.PRNGKey(0)
    k_x, k_p, k_eps = jax.random.split(key, 3)

    batch, hidden_size = 2, 32
    # Input must be 1x28x28 so the flattened feature size is 588.
    x = jax.random.normal(k_x, (batch, 1, 28, 28), dtype=jnp.float32)
    params = init_params(k_p, hidden_size)
    eps = jax.random.normal(k_eps, (batch, hidden_size), dtype=jnp.float32)

    prep = preprocess_params(params)           # one-time weight preprocessing
    out, hidden, x_out = jax.block_until_ready(
        lenet_precode_forward(prep, x, eps))

    assert out.shape == (batch, _NCLS)
    assert hidden.shape == (batch, _D)
    assert x_out.shape == (batch, 1, 28, 28)
    assert bool(jnp.all(jnp.isfinite(out)))
    assert bool(jnp.all(jnp.isfinite(hidden)))

    # Check against a pure-JAX reference of the PyTorch module.  The achievable
    # tolerance is bounded by the approximate EUP reciprocal inside sigmoid
    # (a few 1e-4 per layer); indexing/permutation bugs would show as O(0.1+)
    # errors, far above these thresholds.
    ref_out, ref_hidden = _reference_forward(params, x, eps)
    err_h = float(jnp.max(jnp.abs(hidden - ref_hidden)))
    err_o = float(jnp.max(jnp.abs(out - ref_out)) /
                  (jnp.max(jnp.abs(ref_out)) + 1.0))
    assert err_h < 2e-2, f"hidden mismatch (max abs err {err_h})"
    assert err_o < 5e-2, f"out mismatch (rel err {err_o})"

    print("KERNEL_OK")
</pallas_src>

<mosaic_0001>
module attributes {stable_mosaic.version = 11 : i64} {
  func.func @_lenet_precode_kernel(%arg0: i32, %arg1: memref<28x140xf32, #tpu.memory_space<vmem>>, %arg2: memref<140x168xf32, #tpu.memory_space<vmem>>, %arg3: memref<1x168xf32, #tpu.memory_space<vmem>>, %arg4: memref<5x168x84xf32, #tpu.memory_space<vmem>>, %arg5: memref<1x84xf32, #tpu.memory_space<vmem>>, %arg6: memref<5x84x84xf32, #tpu.memory_space<vmem>>, %arg7: memref<1x84xf32, #tpu.memory_space<vmem>>, %arg8: memref<896x32xf32, #tpu.memory_space<vmem>>, %arg9: memref<1x32xf32, #tpu.memory_space<vmem>>, %arg10: memref<896x32xf32, #tpu.memory_space<vmem>>, %arg11: memref<1x32xf32, #tpu.memory_space<vmem>>, %arg12: memref<32x588xf32, #tpu.memory_space<vmem>>, %arg13: memref<1x588xf32, #tpu.memory_space<vmem>>, %arg14: memref<588x10xf32, #tpu.memory_space<vmem>>, %arg15: memref<1x10xf32, #tpu.memory_space<vmem>>, %arg16: memref<2x32xf32, #tpu.memory_space<vmem>>, %arg17: memref<2x10xf32, #tpu.memory_space<vmem>>, %arg18: memref<2x896xf32, #tpu.memory_space<vmem>>, %arg19: memref<2x18x168xf32, #tpu.memory_space<vmem>>, %arg20: memref<22x84xf32, #tpu.memory_space<vmem>>) attributes {dimension_semantics = [#tpu.dimension_semantics<parallel>], iteration_bounds = array<i64: 1>, scalar_prefetch = 0 : i64, scratch_operands = 2 : i64, tpu.core_type = #tpu.core_type<tc>, window_params = [{transform_indices = @transform_0, window_bounds = array<i64: 28, 140>}, {pipeline_mode = #tpu.pipeline_mode<synchronous>, transform_indices = @transform_1, window_bounds = array<i64: 140, 168>}, {pipeline_mode = #tpu.pipeline_mode<synchronous>, transform_indices = @transform_2, window_bounds = array<i64: 1, 168>}, {pipeline_mode = #tpu.pipeline_mode<synchronous>, transform_indices = @transform_3, window_bounds = array<i64: 5, 168, 84>}, {pipeline_mode = #tpu.pipeline_mode<synchronous>, transform_indices = @transform_4, window_bounds = array<i64: 1, 84>}, {pipeline_mode = #tpu.pipeline_mode<synchronous>, transform_indices = @transform_5, window_bounds = array<i64: 5, 84, 84>}, {pipeline_mode = #tpu.pipeline_mode<synchronous>, transform_indices = @transform_6, window_bounds = array<i64: 1, 84>}, {pipeline_mode = #tpu.pipeline_mode<synchronous>, transform_indices = @transform_7, window_bounds = array<i64: 896, 32>}, {pipeline_mode = #tpu.pipeline_mode<synchronous>, transform_indices = @transform_8, window_bounds = array<i64: 1, 32>}, {pipeline_mode = #tpu.pipeline_mode<synchronous>, transform_indices = @transform_9, window_bounds = array<i64: 896, 32>}, {pipeline_mode = #tpu.pipeline_mode<synchronous>, transform_indices = @transform_10, window_bounds = array<i64: 1, 32>}, {pipeline_mode = #tpu.pipeline_mode<synchronous>, transform_indices = @transform_11, window_bounds = array<i64: 32, 588>}, {pipeline_mode = #tpu.pipeline_mode<synchronous>, transform_indices = @transform_12, window_bounds = array<i64: 1, 588>}, {pipeline_mode = #tpu.pipeline_mode<synchronous>, transform_indices = @transform_13, window_bounds = array<i64: 588, 10>}, {pipeline_mode = #tpu.pipeline_mode<synchronous>, transform_indices = @transform_14, window_bounds = array<i64: 1, 10>}, {transform_indices = @transform_15, window_bounds = array<i64: 2, 32>}, {transform_indices = @transform_16, window_bounds = array<i64: 2, 10>}, {transform_indices = @transform_17, window_bounds = array<i64: 2, 896>}]} {
    %cst = arith.constant 0.000000e+00 : f32
    %0 = vector.broadcast %cst : f32 to vector<1x168xf32>
    %cst_0 = arith.constant 0.000000e+00 : f32
    %1 = vector.broadcast %cst_0 : f32 to vector<2x84xf32>
    %c0 = arith.constant 0 : index
    %c0_1 = arith.constant 0 : index
    %c0_2 = arith.constant 0 : index
    %2 = vector.load %arg19[%c0, %c0_1, %c0_2] : memref<2x18x168xf32, #tpu.memory_space<vmem>>, vector<1x1x168xf32>
    %3 = vector.shape_cast %2 : vector<1x1x168xf32> to vector<1x168xf32>
    %4 = vector.shape_cast %0 : vector<1x168xf32> to vector<1x1x168xf32>
    tpu.vector_store %arg19[%c0, %c0_1, %c0_2], %4 {strides = array<i32>} : memref<2x18x168xf32, #tpu.memory_space<vmem>>, vector<1x1x168xf32>,
    %c0_3 = arith.constant 0 : index
    %c8 = arith.constant 8 : index
    %c0_4 = arith.constant 0 : index
    %5 = vector.load %arg19[%c0_3, %c8, %c0_4] : memref<2x18x168xf32, #tpu.memory_space<vmem>>, vector<1x1x168xf32>
    %6 = vector.shape_cast %5 : vector<1x1x168xf32> to vector<1x168xf32>
    %7 = vector.shape_cast %0 : vector<1x168xf32> to vector<1x1x168xf32>
    tpu.vector_store %arg19[%c0_3, %c8, %c0_4], %7 {strides = array<i32>} : memref<2x18x168xf32, #tpu.memory_space<vmem>>, vector<1x1x168xf32>,
    %c1 = arith.constant 1 : index
    %c0_5 = arith.constant 0 : index
    %c0_6 = arith.constant 0 : index
    %8 = vector.load %arg19[%c1, %c0_5, %c0_6] : memref<2x18x168xf32, #tpu.memory_space<vmem>>, vector<1x1x168xf32>
    %9 = vector.shape_cast %8 : vector<1x1x168xf32> to vector<1x168xf32>
    %10 = vector.shape_cast %0 : vector<1x168xf32> to vector<1x1x168xf32>
    tpu.vector_store %arg19[%c1, %c0_5, %c0_6], %10 {strides = array<i32>} : memref<2x18x168xf32, #tpu.memory_space<vmem>>, vector<1x1x168xf32>,
    %c1_7 = arith.constant 1 : index
    %c8_8 = arith.constant 8 : index
    %c0_9 = arith.constant 0 : index
    %11 = vector.load %arg19[%c1_7, %c8_8, %c0_9] : memref<2x18x168xf32, #tpu.memory_space<vmem>>, vector<1x1x168xf32>
    %12 = vector.shape_cast %11 : vector<1x1x168xf32> to vector<1x168xf32>
    %13 = vector.shape_cast %0 : vector<1x168xf32> to vector<1x1x168xf32>
    tpu.vector_store %arg19[%c1_7, %c8_8, %c0_9], %13 {strides = array<i32>} : memref<2x18x168xf32, #tpu.memory_space<vmem>>, vector<1x1x168xf32>,
    %c0_10 = arith.constant 0 : index
    %c0_11 = arith.constant 0 : index
    %14 = vector.load %arg20[%c0_10, %c0_11] : memref<22x84xf32, #tpu.memory_space<vmem>>, vector<2x84xf32>
    tpu.vector_store %arg20[%c0_10, %c0_11], %1 {strides = array<i32>} : memref<22x84xf32, #tpu.memory_space<vmem>>, vector<2x84xf32>,
    %c9 = arith.constant 9 : index
    %c0_12 = arith.constant 0 : index
    %15 = vector.load %arg20[%c9, %c0_12] : memref<22x84xf32, #tpu.memory_space<vmem>>, vector<2x84xf32>
    tpu.vector_store %arg20[%c9, %c0_12], %1 {strides = array<i32>} : memref<22x84xf32, #tpu.memory_space<vmem>>, vector<2x84xf32>,
    %c0_13 = arith.constant 0 : index
    %c9_14 = arith.constant 9 : index
    %c0_15 = arith.constant 0 : index
    %16 = vector.load %arg19[%c0_13, %c9_14, %c0_15] : memref<2x18x168xf32, #tpu.memory_space<vmem>>, vector<1x1x168xf32>
    %17 = vector.shape_cast %16 : vector<1x1x168xf32> to vector<1x168xf32>
    %18 = vector.shape_cast %0 : vector<1x168xf32> to vector<1x1x168xf32>
    tpu.vector_store %arg19[%c0_13, %c9_14, %c0_15], %18 {strides = array<i32>} : memref<2x18x168xf32, #tpu.memory_space<vmem>>, vector<1x1x168xf32>,
    %c0_16 = arith.constant 0 : index
    %c17 = arith.constant 17 : index
    %c0_17 = arith.constant 0 : index
    %19 = vector.load %arg19[%c0_16, %c17, %c0_17] : memref<2x18x168xf32, #tpu.memory_space<vmem>>, vector<1x1x168xf32>
    %20 = vector.shape_cast %19 : vector<1x1x168xf32> to vector<1x168xf32>
    %21 = vector.shape_cast %0 : vector<1x168xf32> to vector<1x1x168xf32>
    tpu.vector_store %arg19[%c0_16, %c17, %c0_17], %21 {strides = array<i32>} : memref<2x18x168xf32, #tpu.memory_space<vmem>>, vector<1x1x168xf32>,
    %c1_18 = arith.constant 1 : index
    %c9_19 = arith.constant 9 : index
    %c0_20 = arith.constant 0 : index
    %22 = vector.load %arg19[%c1_18, %c9_19, %c0_20] : memref<2x18x168xf32, #tpu.memory_space<vmem>>, vector<1x1x168xf32>
    %23 = vector.shape_cast %22 : vector<1x1x168xf32> to vector<1x168xf32>
    %24 = vector.shape_cast %0 : vector<1x168xf32> to vector<1x1x168xf32>
    tpu.vector_store %arg19[%c1_18, %c9_19, %c0_20], %24 {strides = array<i32>} : memref<2x18x168xf32, #tpu.memory_space<vmem>>, vector<1x1x168xf32>,
    %c1_21 = arith.constant 1 : index
    %c17_22 = arith.constant 17 : index
    %c0_23 = arith.constant 0 : index
    %25 = vector.load %arg19[%c1_21, %c17_22, %c0_23] : memref<2x18x168xf32, #tpu.memory_space<vmem>>, vector<1x1x168xf32>
    %26 = vector.shape_cast %25 : vector<1x1x168xf32> to vector<1x168xf32>
    %27 = vector.shape_cast %0 : vector<1x168xf32> to vector<1x1x168xf32>
    tpu.vector_store %arg19[%c1_21, %c17_22, %c0_23], %27 {strides = array<i32>} : memref<2x18x168xf32, #tpu.memory_space<vmem>>, vector<1x1x168xf32>,
    %c11 = arith.constant 11 : index
    %c0_24 = arith.constant 0 : index
    %28 = vector.load %arg20[%c11, %c0_24] : memref<22x84xf32, #tpu.memory_space<vmem>>, vector<2x84xf32>
    tpu.vector_store %arg20[%c11, %c0_24], %1 {strides = array<i32>} : memref<22x84xf32, #tpu.memory_space<vmem>>, vector<2x84xf32>,
    %c20 = arith.constant 20 : index
    %c0_25 = arith.constant 0 : index
    %29 = vector.load %arg20[%c20, %c0_25] : memref<22x84xf32, #tpu.memory_space<vmem>>, vector<2x84xf32>
    tpu.vector_store %arg20[%c20, %c0_25], %1 {strides = array<i32>} : memref<22x84xf32, #tpu.memory_space<vmem>>, vector<2x84xf32>,
    %c0_26 = arith.constant 0 : index
    %c0_27 = arith.constant 0 : index
    %30 = vector.load %arg1[%c0_26, %c0_27] : memref<28x140xf32, #tpu.memory_space<vmem>>, vector<28x140xf32>
    %c0_28 = arith.constant 0 : index
    %c0_29 = arith.constant 0 : index
    %31 = vector.load %arg2[%c0_28, %c0_29] : memref<140x168xf32, #tpu.memory_space<vmem>>, vector<140x168xf32>
    %cst_30 = arith.constant dense<0.000000e+00> : vector<28x168xf32>
    %32 = tpu.matmul %30, %31, %cst_30 {dimension_numbers = #tpu.dot_dimension_numbers<[1], [0], [0], [1], [0, 0, 1, 1], [], []>} : vector<28x140xf32>, vector<140x168xf32>, vector<28x168xf32> -> vector<28x168xf32>
    %c0_31 = arith.constant 0 : index
    %c0_32 = arith.constant 0 : index
    %33 = vector.load %arg3[%c0_31, %c0_32] : memref<1x168xf32, #tpu.memory_space<vmem>>, vector<1x168xf32>
    %34 = vector.broadcast %33 : vector<1x168xf32> to vector<28x168xf32>
    %35 = arith.addf %32, %34 : vector<28x168xf32>
    %cst_33 = arith.constant 0.000000e+00 : f32
    %36 = vector.broadcast %cst_33 : f32 to vector<28x168xf32>
    %37 = arith.subf %36, %35 : vector<28x168xf32>
    %38 = math.exp %37 : vector<28x168xf32>
    %cst_34 = arith.constant 1.000000e+00 : f32
    %39 = vector.broadcast %cst_34 : f32 to vector<28x168xf32>
    %40 = arith.addf %39, %38 : vector<28x168xf32>
    %41 = tpu.reciprocal %40 {approx = true} : vector<28x168xf32> -> vector<28x168xf32>
    %42 = vector.extract_strided_slice %41 {offsets = [0, 0], sizes = [7, 168], strides = [1, 1]} : vector<28x168xf32> to vector<7x168xf32>
    %c0_35 = arith.constant 0 : index
    %c1_36 = arith.constant 1 : index
    %c0_37 = arith.constant 0 : index
    %43 = vector.load %arg19[%c0_35, %c1_36, %c0_37] : memref<2x18x168xf32, #tpu.memory_space<vmem>>, vector<1x7x168xf32>
    %44 = vector.shape_cast %43 : vector<1x7x168xf32> to vector<7x168xf32>
    %45 = vector.shape_cast %42 : vector<7x168xf32> to vector<1x7x168xf32>
    tpu.vector_store %arg19[%c0_35, %c1_36, %c0_37], %45 {strides = array<i32>} : memref<2x18x168xf32, #tpu.memory_space<vmem>>, vector<1x7x168xf32>,
    %46 = vector.extract_strided_slice %41 {offsets = [7, 0], sizes = [7, 168], strides = [1, 1]} : vector<28x168xf32> to vector<7x168xf32>
    %c1_38 = arith.constant 1 : index
    %c1_39 = arith.constant 1 : index
    %c0_40 = arith.constant 0 : index
    %47 = vector.load %arg19[%c1_38, %c1_39, %c0_40] : memref<2x18x168xf32, #tpu.memory_space<vmem>>, vector<1x7x168xf32>
    %48 = vector.shape_cast %47 : vector<1x7x168xf32> to vector<7x168xf32>
    %49 = vector.shape_cast %46 : vector<7x168xf32> to vector<1x7x168xf32>
    tpu.vector_store %arg19[%c1_38, %c1_39, %c0_40], %49 {strides = array<i32>} : memref<2x18x168xf32, #tpu.memory_space<vmem>>, vector<1x7x168xf32>,
    %50 = vector.extract_strided_slice %41 {offsets = [14, 0], sizes = [7, 168], strides = [1, 1]} : vector<28x168xf32> to vector<7x168xf32>
    %c0_41 = arith.constant 0 : index
    %c10 = arith.constant 10 : index
    %c0_42 = arith.constant 0 : index
    %51 = vector.load %arg19[%c0_41, %c10, %c0_42] : memref<2x18x168xf32, #tpu.memory_space<vmem>>, vector<1x7x168xf32>
    %52 = vector.shape_cast %51 : vector<1x7x168xf32> to vector<7x168xf32>
    %53 = vector.shape_cast %50 : vector<7x168xf32> to vector<1x7x168xf32>
    tpu.vector_store %arg19[%c0_41, %c10, %c0_42], %53 {strides = array<i32>} : memref<2x18x168xf32, #tpu.memory_space<vmem>>, vector<1x7x168xf32>,
    %54 = vector.extract_strided_slice %41 {offsets = [21, 0], sizes = [7, 168], strides = [1, 1]} : vector<28x168xf32> to vector<7x168xf32>
    %c1_43 = arith.constant 1 : index
    %c10_44 = arith.constant 10 : index
    %c0_45 = arith.constant 0 : index
    %55 = vector.load %arg19[%c1_43, %c10_44, %c0_45] : memref<2x18x168xf32, #tpu.memory_space<vmem>>, vector<1x7x168xf32>
    %56 = vector.shape_cast %55 : vector<1x7x168xf32> to vector<7x168xf32>
    %57 = vector.shape_cast %54 : vector<7x168xf32> to vector<1x7x168xf32>
    tpu.vector_store %arg19[%c1_43, %c10_44, %c0_45], %57 {strides = array<i32>} : memref<2x18x168xf32, #tpu.memory_space<vmem>>, vector<1x7x168xf32>,
    %c0_46 = arith.constant 0 : index
    %c0_47 = arith.constant 0 : index
    %c0_48 = arith.constant 0 : index
    %58 = vector.load %arg19[%c0_46, %c0_47, %c0_48] : memref<2x18x168xf32, #tpu.memory_space<vmem>>, vector<1x16x168xf32>
    %59 = vector.shape_cast %58 : vector<1x16x168xf32> to vector<16x168xf32>
    %c0_49 = arith.constant 0 : index
    %c0_50 = arith.constant 0 : index
    %c0_51 = arith.constant 0 : index
    %60 = vector.load %arg4[%c0_49, %c0_50, %c0_51] : memref<5x168x84xf32, #tpu.memory_space<vmem>>, vector<1x168x84xf32>
    %61 = vector.shape_cast %60 : vector<1x168x84xf32> to vector<168x84xf32>
    %cst_52 = arith.constant dense<0.000000e+00> : vector<16x84xf32>
    %62 = tpu.matmul %59, %61, %cst_52 {dimension_numbers = #tpu.dot_dimension_numbers<[1], [0], [0], [1], [0, 0, 1, 1], [], []>} : vector<16x168xf32>, vector<168x84xf32>, vector<16x84xf32> -> vector<16x84xf32>
    %c1_53 = arith.constant 1 : index
    %c0_54 = arith.constant 0 : index
    %c0_55 = arith.constant 0 : index
    %63 = vector.load %arg19[%c1_53, %c0_54, %c0_55] : memref<2x18x168xf32, #tpu.memory_space<vmem>>, vector<1x16x168xf32>
    %64 = vector.shape_cast %63 : vector<1x16x168xf32> to vector<16x168xf32>
    %c1_56 = arith.constant 1 : index
    %c0_57 = arith.constant 0 : index
    %c0_58 = arith.constant 0 : index
    %65 = vector.load %arg4[%c1_56, %c0_57, %c0_58] : memref<5x168x84xf32, #tpu.memory_space<vmem>>, vector<1x168x84xf32>
    %66 = vector.shape_cast %65 : vector<1x168x84xf32> to vector<168x84xf32>
    %cst_59 = arith.constant dense<0.000000e+00> : vector<16x84xf32>
    %67 = tpu.matmul %64, %66, %cst_59 {dimension_numbers = #tpu.dot_dimension_numbers<[1], [0], [0], [1], [0, 0, 1, 1], [], []>} : vector<16x168xf32>, vector<168x84xf32>, vector<16x84xf32> -> vector<16x84xf32>
    %68 = arith.addf %62, %67 : vector<16x84xf32>
    %c0_60 = arith.constant 0 : index
    %c1_61 = arith.constant 1 : index
    %c0_62 = arith.constant 0 : index
    %69 = vector.load %arg19[%c0_60, %c1_61, %c0_62] : memref<2x18x168xf32, #tpu.memory_space<vmem>>, vector<1x16x168xf32>
    %70 = vector.shape_cast %69 : vector<1x16x168xf32> to vector<16x168xf32>
    %c2 = arith.constant 2 : index
    %c0_63 = arith.constant 0 : index
    %c0_64 = arith.constant 0 : index
    %71 = vector.load %arg4[%c2, %c0_63, %c0_64] : memref<5x168x84xf32, #tpu.memory_space<vmem>>, vector<1x168x84xf32>
    %72 = vector.shape_cast %71 : vector<1x168x84xf32> to vector<168x84xf32>
    %cst_65 = arith.constant dense<0.000000e+00> : vector<16x84xf32>
    %73 = tpu.matmul %70, %72, %cst_65 {dimension_numbers = #tpu.dot_dimension_numbers<[1], [0], [0], [1], [0, 0, 1, 1], [], []>} : vector<16x168xf32>, vector<168x84xf32>, vector<16x84xf32> -> vector<16x84xf32>
    %74 = arith.addf %68, %73 : vector<16x84xf32>
    %c1_66 = arith.constant 1 : index
    %c1_67 = arith.constant 1 : index
    %c0_68 = arith.constant 0 : index
    %75 = vector.load %arg19[%c1_66, %c1_67, %c0_68] : memref<2x18x168xf32, #tpu.memory_space<vmem>>, vector<1x16x168xf32>
    %76 = vector.shape_cast %75 : vector<1x16x168xf32> to vector<16x168xf32>
    %c3 = arith.constant 3 : index
    %c0_69 = arith.constant 0 : index
    %c0_70 = arith.constant 0 : index
    %77 = vector.load %arg4[%c3, %c0_69, %c0_70] : memref<5x168x84xf32, #tpu.memory_space<vmem>>, vector<1x168x84xf32>
    %78 = vector.shape_cast %77 : vector<1x168x84xf32> to vector<168x84xf32>
    %cst_71 = arith.constant dense<0.000000e+00> : vector<16x84xf32>
    %79 = tpu.matmul %76, %78, %cst_71 {dimension_numbers = #tpu.dot_dimension_numbers<[1], [0], [0], [1], [0, 0, 1, 1], [], []>} : vector<16x168xf32>, vector<168x84xf32>, vector<16x84xf32> -> vector<16x84xf32>
    %80 = arith.addf %74, %79 : vector<16x84xf32>
    %c0_72 = arith.constant 0 : index
    %c2_73 = arith.constant 2 : index
    %c0_74 = arith.constant 0 : index
    %81 = vector.load %arg19[%c0_72, %c2_73, %c0_74] : memref<2x18x168xf32, #tpu.memory_space<vmem>>, vector<1x16x168xf32>
    %82 = vector.shape_cast %81 : vector<1x16x168xf32> to vector<16x168xf32>
    %c4 = arith.constant 4 : index
    %c0_75 = arith.constant 0 : index
    %c0_76 = arith.constant 0 : index
    %83 = vector.load %arg4[%c4, %c0_75, %c0_76] : memref<5x168x84xf32, #tpu.memory_space<vmem>>, vector<1x168x84xf32>
    %84 = vector.shape_cast %83 : vector<1x168x84xf32> to vector<168x84xf32>
    %cst_77 = arith.constant dense<0.000000e+00> : vector<16x84xf32>
    %85 = tpu.matmul %82, %84, %cst_77 {dimension_numbers = #tpu.dot_dimension_numbers<[1], [0], [0], [1], [0, 0, 1, 1], [], []>} : vector<16x168xf32>, vector<168x84xf32>, vector<16x84xf32> -> vector<16x84xf32>
    %86 = arith.addf %80, %85 : vector<16x84xf32>
    %c0_78 = arith.constant 0 : index
    %c0_79 = arith.constant 0 : index
    %87 = vector.load %arg5[%c0_78, %c0_79] : memref<1x84xf32, #tpu.memory_space<vmem>>, vector<1x84xf32>
    %88 = vector.broadcast %87 : vector<1x84xf32> to vector<16x84xf32>
    %89 = arith.addf %86, %88 : vector<16x84xf32>
    %cst_80 = arith.constant 0.000000e+00 : f32
    %90 = vector.broadcast %cst_80 : f32 to vector<16x84xf32>
    %91 = arith.subf %90, %89 : vector<16x84xf32>
    %92 = math.exp %91 : vector<16x84xf32>
    %cst_81 = arith.constant 1.000000e+00 : f32
    %93 = vector.broadcast %cst_81 : f32 to vector<16x84xf32>
    %94 = arith.addf %93, %92 : vector<16x84xf32>
    %95 = tpu.reciprocal %94 {approx = true} : vector<16x84xf32> -> vector<16x84xf32>
    %96 = vector.extract_strided_slice %95 {offsets = [0, 0], sizes = [7, 84], strides = [1, 1]} : vector<16x84xf32> to vector<7x84xf32>
    %c2_82 = arith.constant 2 : index
    %c0_83 = arith.constant 0 : index
    %97 = vector.load %arg20[%c2_82, %c0_83] : memref<22x84xf32, #tpu.memory_space<vmem>>, vector<7x84xf32>
    tpu.vector_store %arg20[%c2_82, %c0_83], %96 {strides = array<i32>} : memref<22x84xf32, #tpu.memory_space<vmem>>, vector<7x84xf32>,
    %98 = vector.extract_strided_slice %95 {offsets = [9, 0], sizes = [7, 84], strides = [1, 1]} : vector<16x84xf32> to vector<7x84xf32>
    %c13 = arith.constant 13 : index
    %c0_84 = arith.constant 0 : index
    %99 = vector.load %arg20[%c13, %c0_84] : memref<22x84xf32, #tpu.memory_space<vmem>>, vector<7x84xf32>
    tpu.vector_store %arg20[%c13, %c0_84], %98 {strides = array<i32>} : memref<22x84xf32, #tpu.memory_space<vmem>>, vector<7x84xf32>,
    %c0_85 = arith.constant 0 : index
    %c0_86 = arith.constant 0 : index
    %100 = vector.load %arg20[%c0_85, %c0_86] : memref<22x84xf32, #tpu.memory_space<vmem>>, vector<18x84xf32>
    %c0_87 = arith.constant 0 : index
    %c0_88 = arith.constant 0 : index
    %c0_89 = arith.constant 0 : index
    %101 = vector.load %arg6[%c0_87, %c0_88, %c0_89] : memref<5x84x84xf32, #tpu.memory_space<vmem>>, vector<1x84x84xf32>
    %102 = vector.shape_cast %101 : vector<1x84x84xf32> to vector<84x84xf32>
    %cst_90 = arith.constant dense<0.000000e+00> : vector<18x84xf32>
    %103 = tpu.matmul %100, %102, %cst_90 {dimension_numbers = #tpu.dot_dimension_numbers<[1], [0], [0], [1], [0, 0, 1, 1], [], []>} : vector<18x84xf32>, vector<84x84xf32>, vector<18x84xf32> -> vector<18x84xf32>
    %c1_91 = arith.constant 1 : index
    %c0_92 = arith.constant 0 : index
    %104 = vector.load %arg20[%c1_91, %c0_92] : memref<22x84xf32, #tpu.memory_space<vmem>>, vector<18x84xf32>
    %c1_93 = arith.constant 1 : index
    %c0_94 = arith.constant 0 : index
    %c0_95 = arith.constant 0 : index
    %105 = vector.load %arg6[%c1_93, %c0_94, %c0_95] : memref<5x84x84xf32, #tpu.memory_space<vmem>>, vector<1x84x84xf32>
    %106 = vector.shape_cast %105 : vector<1x84x84xf32> to vector<84x84xf32>
    %cst_96 = arith.constant dense<0.000000e+00> : vector<18x84xf32>
    %107 = tpu.matmul %104, %106, %cst_96 {dimension_numbers = #tpu.dot_dimension_numbers<[1], [0], [0], [1], [0, 0, 1, 1], [], []>} : vector<18x84xf32>, vector<84x84xf32>, vector<18x84xf32> -> vector<18x84xf32>
    %108 = arith.addf %103, %107 : vector<18x84xf32>
    %c2_97 = arith.constant 2 : index
    %c0_98 = arith.constant 0 : index
    %109 = vector.load %arg20[%c2_97, %c0_98] : memref<22x84xf32, #tpu.memory_space<vmem>>, vector<18x84xf32>
    %c2_99 = arith.constant 2 : index
    %c0_100 = arith.constant 0 : index
    %c0_101 = arith.constant 0 : index
    %110 = vector.load %arg6[%c2_99, %c0_100, %c0_101] : memref<5x84x84xf32, #tpu.memory_space<vmem>>, vector<1x84x84xf32>
    %111 = vector.shape_cast %110 : vector<1x84x84xf32> to vector<84x84xf32>
    %cst_102 = arith.constant dense<0.000000e+00> : vector<18x84xf32>
    %112 = tpu.matmul %109, %111, %cst_102 {dimension_numbers = #tpu.dot_dimension_numbers<[1], [0], [0], [1], [0, 0, 1, 1], [], []>} : vector<18x84xf32>, vector<84x84xf32>, vector<18x84xf32> -> vector<18x84xf32>
    %113 = arith.addf %108, %112 : vector<18x84xf32>
    %c3_103 = arith.constant 3 : index
    %c0_104 = arith.constant 0 : index
    %114 = vector.load %arg20[%c3_103, %c0_104] : memref<22x84xf32, #tpu.memory_space<vmem>>, vector<18x84xf32>
    %c3_105 = arith.constant 3 : index
    %c0_106 = arith.constant 0 : index
    %c0_107 = arith.constant 0 : index
    %115 = vector.load %arg6[%c3_105, %c0_106, %c0_107] : memref<5x84x84xf32, #tpu.memory_space<vmem>>, vector<1x84x84xf32>
    %116 = vector.shape_cast %115 : vector<1x84x84xf32> to vector<84x84xf32>
    %cst_108 = arith.constant dense<0.000000e+00> : vector<18x84xf32>
    %117 = tpu.matmul %114, %116, %cst_108 {dimension_numbers = #tpu.dot_dimension_numbers<[1], [0], [0], [1], [0, 0, 1, 1], [], []>} : vector<18x84xf32>, vector<84x84xf32>, vector<18x84xf32> -> vector<18x84xf32>
    %118 = arith.addf %113, %117 : vector<18x84xf32>
    %c4_109 = arith.constant 4 : index
    %c0_110 = arith.constant 0 : index
    %119 = vector.load %arg20[%c4_109, %c0_110] : memref<22x84xf32, #tpu.memory_space<vmem>>, vector<18x84xf32>
    %c4_111 = arith.constant 4 : index
    %c0_112 = arith.constant 0 : index
    %c0_113 = arith.constant 0 : index
    %120 = vector.load %arg6[%c4_111, %c0_112, %c0_113] : memref<5x84x84xf32, #tpu.memory_space<vmem>>, vector<1x84x84xf32>
    %121 = vector.shape_cast %120 : vector<1x84x84xf32> to vector<84x84xf32>
    %cst_114 = arith.constant dense<0.000000e+00> : vector<18x84xf32>
    %122 = tpu.matmul %119, %121, %cst_114 {dimension_numbers = #tpu.dot_dimension_numbers<[1], [0], [0], [1], [0, 0, 1, 1], [], []>} : vector<18x84xf32>, vector<84x84xf32>, vector<18x84xf32> -> vector<18x84xf32>
    %123 = arith.addf %118, %122 : vector<18x84xf32>
    %c0_115 = arith.constant 0 : index
    %c0_116 = arith.constant 0 : index
    %124 = vector.load %arg7[%c0_115, %c0_116] : memref<1x84xf32, #tpu.memory_space<vmem>>, vector<1x84xf32>
    %125 = vector.broadcast %124 : vector<1x84xf32> to vector<18x84xf32>
    %126 = arith.addf %123, %125 : vector<18x84xf32>
    %cst_117 = arith.constant 0.000000e+00 : f32
    %127 = vector.broadcast %cst_117 : f32 to vector<18x84xf32>
    %128 = arith.subf %127, %126 : vector<18x84xf32>
    %129 = math.exp %128 : vector<18x84xf32>
    %cst_118 = arith.constant 1.000000e+00 : f32
    %130 = vector.broadcast %cst_118 : f32 to vector<18x84xf32>
    %131 = arith.addf %130, %129 : vector<18x84xf32>
    %132 = tpu.reciprocal %131 {approx = true} : vector<18x84xf32> -> vector<18x84xf32>
    %cst_119 = arith.constant 0.000000e+00 : f32
    %133 = vector.broadcast %cst_119 : f32 to vector<2x896xf32>
    %c0_120 = arith.constant 0 : index
    %c0_121 = arith.constant 0 : index
    %134 = vector.load %arg18[%c0_120, %c0_121] : memref<2x896xf32, #tpu.memory_space<vmem>>, vector<2x896xf32>
    tpu.vector_store %arg18[%c0_120, %c0_121], %133 {strides = array<i32>} : memref<2x896xf32, #tpu.memory_space<vmem>>, vector<2x896xf32>,
    %135 = vector.extract_strided_slice %132 {offsets = [0, 0], sizes = [1, 84], strides = [1, 1]} : vector<18x84xf32> to vector<1x84xf32>
    %c0_122 = arith.constant 0 : index
    %c0_123 = arith.constant 0 : index
    %136 = vector.load %arg18[%c0_122, %c0_123] : memref<2x896xf32, #tpu.memory_space<vmem>>, vector<1x84xf32>
    tpu.vector_store %arg18[%c0_122, %c0_123], %135 {strides = array<i32>} : memref<2x896xf32, #tpu.memory_space<vmem>>, vector<1x84xf32>,
    %137 = vector.extract_strided_slice %132 {offsets = [1, 0], sizes = [1, 84], strides = [1, 1]} : vector<18x84xf32> to vector<1x84xf32>
    %c0_124 = arith.constant 0 : index
    %c128 = arith.constant 128 : index
    %138 = vector.load %arg18[%c0_124, %c128] : memref<2x896xf32, #tpu.memory_space<vmem>>, vector<1x84xf32>
    tpu.vector_store %arg18[%c0_124, %c128], %137 {strides = array<i32>} : memref<2x896xf32, #tpu.memory_space<vmem>>, vector<1x84xf32>,
    %139 = vector.extract_strided_slice %132 {offsets = [2, 0], sizes = [1, 84], strides = [1, 1]} : vector<18x84xf32> to vector<1x84xf32>
    %c0_125 = arith.constant 0 : index
    %c256 = arith.constant 256 : index
    %140 = vector.load %arg18[%c0_125, %c256] : memref<2x896xf32, #tpu.memory_space<vmem>>, vector<1x84xf32>
    tpu.vector_store %arg18[%c0_125, %c256], %139 {strides = array<i32>} : memref<2x896xf32, #tpu.memory_space<vmem>>, vector<1x84xf32>,
    %141 = vector.extract_strided_slice %132 {offsets = [3, 0], sizes = [1, 84], strides = [1, 1]} : vector<18x84xf32> to vector<1x84xf32>
    %c0_126 = arith.constant 0 : index
    %c384 = arith.constant 384 : index
    %142 = vector.load %arg18[%c0_126, %c384] : memref<2x896xf32, #tpu.memory_space<vmem>>, vector<1x84xf32>
    tpu.vector_store %arg18[%c0_126, %c384], %141 {strides = array<i32>} : memref<2x896xf32, #tpu.memory_space<vmem>>, vector<1x84xf32>,
    %143 = vector.extract_strided_slice %132 {offsets = [4, 0], sizes = [1, 84], strides = [1, 1]} : vector<18x84xf32> to vector<1x84xf32>
    %c0_127 = arith.constant 0 : index
    %c512 = arith.constant 512 : index
    %144 = vector.load %arg18[%c0_127, %c512] : memref<2x896xf32, #tpu.memory_space<vmem>>, vector<1x84xf32>
    tpu.vector_store %arg18[%c0_127, %c512], %143 {strides = array<i32>} : memref<2x896xf32, #tpu.memory_space<vmem>>, vector<1x84xf32>,
    %145 = vector.extract_strided_slice %132 {offsets = [5, 0], sizes = [1, 84], strides = [1, 1]} : vector<18x84xf32> to vector<1x84xf32>
    %c0_128 = arith.constant 0 : index
    %c640 = arith.constant 640 : index
    %146 = vector.load %arg18[%c0_128, %c640] : memref<2x896xf32, #tpu.memory_space<vmem>>, vector<1x84xf32>
    tpu.vector_store %arg18[%c0_128, %c640], %145 {strides = array<i32>} : memref<2x896xf32, #tpu.memory_space<vmem>>, vector<1x84xf32>,
    %147 = vector.extract_strided_slice %132 {offsets = [6, 0], sizes = [1, 84], strides = [1, 1]} : vector<18x84xf32> to vector<1x84xf32>
    %c0_129 = arith.constant 0 : index
    %c768 = arith.constant 768 : index
    %148 = vector.load %arg18[%c0_129, %c768] : memref<2x896xf32, #tpu.memory_space<vmem>>, vector<1x84xf32>
    tpu.vector_store %arg18[%c0_129, %c768], %147 {strides = array<i32>} : memref<2x896xf32, #tpu.memory_space<vmem>>, vector<1x84xf32>,
    %149 = vector.extract_strided_slice %132 {offsets = [11, 0], sizes = [1, 84], strides = [1, 1]} : vector<18x84xf32> to vector<1x84xf32>
    %c1_130 = arith.constant 1 : index
    %c0_131 = arith.constant 0 : index
    %150 = vector.load %arg18[%c1_130, %c0_131] : memref<2x896xf32, #tpu.memory_space<vmem>>, vector<1x84xf32>
    tpu.vector_store %arg18[%c1_130, %c0_131], %149 {strides = array<i32>} : memref<2x896xf32, #tpu.memory_space<vmem>>, vector<1x84xf32>,
    %151 = vector.extract_strided_slice %132 {offsets = [12, 0], sizes = [1, 84], strides = [1, 1]} : vector<18x84xf32> to vector<1x84xf32>
    %c1_132 = arith.constant 1 : index
    %c128_133 = arith.constant 128 : index
    %152 = vector.load %arg18[%c1_132, %c128_133] : memref<2x896xf32, #tpu.memory_space<vmem>>, vector<1x84xf32>
    tpu.vector_store %arg18[%c1_132, %c128_133], %151 {strides = array<i32>} : memref<2x896xf32, #tpu.memory_space<vmem>>, vector<1x84xf32>,
    %153 = vector.extract_strided_slice %132 {offsets = [13, 0], sizes = [1, 84], strides = [1, 1]} : vector<18x84xf32> to vector<1x84xf32>
    %c1_134 = arith.constant 1 : index
    %c256_135 = arith.constant 256 : index
    %154 = vector.load %arg18[%c1_134, %c256_135] : memref<2x896xf32, #tpu.memory_space<vmem>>, vector<1x84xf32>
    tpu.vector_store %arg18[%c1_134, %c256_135], %153 {strides = array<i32>} : memref<2x896xf32, #tpu.memory_space<vmem>>, vector<1x84xf32>,
    %155 = vector.extract_strided_slice %132 {offsets = [14, 0], sizes = [1, 84], strides = [1, 1]} : vector<18x84xf32> to vector<1x84xf32>
    %c1_136 = arith.constant 1 : index
    %c384_137 = arith.constant 384 : index
    %156 = vector.load %arg18[%c1_136, %c384_137] : memref<2x896xf32, #tpu.memory_space<vmem>>, vector<1x84xf32>
    tpu.vector_store %arg18[%c1_136, %c384_137], %155 {strides = array<i32>} : memref<2x896xf32, #tpu.memory_space<vmem>>, vector<1x84xf32>,
    %157 = vector.extract_strided_slice %132 {offsets = [15, 0], sizes = [1, 84], strides = [1, 1]} : vector<18x84xf32> to vector<1x84xf32>
    %c1_138 = arith.constant 1 : index
    %c512_139 = arith.constant 512 : index
    %158 = vector.load %arg18[%c1_138, %c512_139] : memref<2x896xf32, #tpu.memory_space<vmem>>, vector<1x84xf32>
    tpu.vector_store %arg18[%c1_138, %c512_139], %157 {strides = array<i32>} : memref<2x896xf32, #tpu.memory_space<vmem>>, vector<1x84xf32>,
    %159 = vector.extract_strided_slice %132 {offsets = [16, 0], sizes = [1, 84], strides = [1, 1]} : vector<18x84xf32> to vector<1x84xf32>
    %c1_140 = arith.constant 1 : index
    %c640_141 = arith.constant 640 : index
    %160 = vector.load %arg18[%c1_140, %c640_141] : memref<2x896xf32, #tpu.memory_space<vmem>>, vector<1x84xf32>
    tpu.vector_store %arg18[%c1_140, %c640_141], %159 {strides = array<i32>} : memref<2x896xf32, #tpu.memory_space<vmem>>, vector<1x84xf32>,
    %161 = vector.extract_strided_slice %132 {offsets = [17, 0], sizes = [1, 84], strides = [1, 1]} : vector<18x84xf32> to vector<1x84xf32>
    %c1_142 = arith.constant 1 : index
    %c768_143 = arith.constant 768 : index
    %162 = vector.load %arg18[%c1_142, %c768_143] : memref<2x896xf32, #tpu.memory_space<vmem>>, vector<1x84xf32>
    tpu.vector_store %arg18[%c1_142, %c768_143], %161 {strides = array<i32>} : memref<2x896xf32, #tpu.memory_space<vmem>>, vector<1x84xf32>,
    %c0_144 = arith.constant 0 : index
    %c0_145 = arith.constant 0 : index
    %163 = vector.load %arg18[%c0_144, %c0_145] : memref<2x896xf32, #tpu.memory_space<vmem>>, vector<2x896xf32>
    %c0_146 = arith.constant 0 : index
    %c0_147 = arith.constant 0 : index
    %164 = vector.load %arg8[%c0_146, %c0_147] : memref<896x32xf32, #tpu.memory_space<vmem>>, vector<896x32xf32>
    %cst_148 = arith.constant dense<0.000000e+00> : vector<2x32xf32>
    %165 = tpu.matmul %163, %164, %cst_148 {dimension_numbers = #tpu.dot_dimension_numbers<[1], [0], [0], [1], [0, 0, 1, 1], [], []>} : vector<2x896xf32>, vector<896x32xf32>, vector<2x32xf32> -> vector<2x32xf32>
    %c0_149 = arith.constant 0 : index
    %c0_150 = arith.constant 0 : index
    %166 = vector.load %arg9[%c0_149, %c0_150] : memref<1x32xf32, #tpu.memory_space<vmem>>, vector<1x32xf32>
    %167 = vector.broadcast %166 : vector<1x32xf32> to vector<2x32xf32>
    %168 = arith.addf %165, %167 : vector<2x32xf32>
    %c0_151 = arith.constant 0 : index
    %c0_152 = arith.constant 0 : index
    %169 = vector.load %arg10[%c0_151, %c0_152] : memref<896x32xf32, #tpu.memory_space<vmem>>, vector<896x32xf32>
    %cst_153 = arith.constant dense<0.000000e+00> : vector<2x32xf32>
    %170 = tpu.matmul %163, %169, %cst_153 {dimension_numbers = #tpu.dot_dimension_numbers<[1], [0], [0], [1], [0, 0, 1, 1], [], []>} : vector<2x896xf32>, vector<896x32xf32>, vector<2x32xf32> -> vector<2x32xf32>
    %c0_154 = arith.constant 0 : index
    %c0_155 = arith.constant 0 : index
    %171 = vector.load %arg11[%c0_154, %c0_155] : memref<1x32xf32, #tpu.memory_space<vmem>>, vector<1x32xf32>
    %172 = vector.broadcast %171 : vector<1x32xf32> to vector<2x32xf32>
    %173 = arith.addf %170, %172 : vector<2x32xf32>
    %cst_156 = arith.constant 5.000000e-01 : f32
    %174 = vector.broadcast %cst_156 : f32 to vector<2x32xf32>
    %175 = arith.mulf %174, %173 : vector<2x32xf32>
    %176 = math.exp %175 : vector<2x32xf32>
    %c0_157 = arith.constant 0 : index
    %c0_158 = arith.constant 0 : index
    %177 = vector.load %arg16[%c0_157, %c0_158] : memref<2x32xf32, #tpu.memory_space<vmem>>, vector<2x32xf32>
    %178 = arith.mulf %176, %177 : vector<2x32xf32>
    %179 = arith.addf %168, %178 : vector<2x32xf32>
    %c0_159 = arith.constant 0 : index
    %c0_160 = arith.constant 0 : index
    %180 = vector.load %arg12[%c0_159, %c0_160] : memref<32x588xf32, #tpu.memory_space<vmem>>, vector<32x588xf32>
    %cst_161 = arith.constant dense<0.000000e+00> : vector<2x588xf32>
    %181 = tpu.matmul %179, %180, %cst_161 {dimension_numbers = #tpu.dot_dimension_numbers<[1], [0], [0], [1], [0, 0, 1, 1], [], []>} : vector<2x32xf32>, vector<32x588xf32>, vector<2x588xf32> -> vector<2x588xf32>
    %c0_162 = arith.constant 0 : index
    %c0_163 = arith.constant 0 : index
    %182 = vector.load %arg13[%c0_162, %c0_163] : memref<1x588xf32, #tpu.memory_space<vmem>>, vector<1x588xf32>
    %183 = vector.broadcast %182 : vector<1x588xf32> to vector<2x588xf32>
    %184 = arith.addf %181, %183 : vector<2x588xf32>
    %c0_164 = arith.constant 0 : index
    %c0_165 = arith.constant 0 : index
    %185 = vector.load %arg14[%c0_164, %c0_165] : memref<588x10xf32, #tpu.memory_space<vmem>>, vector<588x10xf32>
    %cst_166 = arith.constant dense<0.000000e+00> : vector<2x10xf32>
    %186 = tpu.matmul %184, %185, %cst_166 {dimension_numbers = #tpu.dot_dimension_numbers<[1], [0], [0], [1], [0, 0, 1, 1], [], []>} : vector<2x588xf32>, vector<588x10xf32>, vector<2x10xf32> -> vector<2x10xf32>
    %c0_167 = arith.constant 0 : index
    %c0_168 = arith.constant 0 : index
    %187 = vector.load %arg15[%c0_167, %c0_168] : memref<1x10xf32, #tpu.memory_space<vmem>>, vector<1x10xf32>
    %188 = vector.broadcast %187 : vector<1x10xf32> to vector<2x10xf32>
    %189 = arith.addf %186, %188 : vector<2x10xf32>
    %c0_169 = arith.constant 0 : index
    %c0_170 = arith.constant 0 : index
    %190 = vector.load %arg17[%c0_169, %c0_170] : memref<2x10xf32, #tpu.memory_space<vmem>>, vector<2x10xf32>
    tpu.vector_store %arg17[%c0_169, %c0_170], %189 {strides = array<i32>} : memref<2x10xf32, #tpu.memory_space<vmem>>, vector<2x10xf32>,
    return
  }
  func.func @transform_0(%arg0: i32) -> (i32, i32) {
    %c0_i32 = arith.constant 0 : i32
    %c0_i32_0 = arith.constant 0 : i32
    return %arg0, %c0_i32 : i32, i32
  }
  func.func @transform_1(%arg0: i32) -> (i32, i32) {
    %c0_i32 = arith.constant 0 : i32
    %c0_i32_0 = arith.constant 0 : i32
    %c0_i32_1 = arith.constant 0 : i32
    return %c0_i32, %c0_i32_0 : i32, i32
  }
  func.func @transform_2(%arg0: i32) -> (i32, i32) {
    %c0_i32 = arith.constant 0 : i32
    %c0_i32_0 = arith.constant 0 : i32
    %c0_i32_1 = arith.constant 0 : i32
    return %c0_i32, %c0_i32_0 : i32, i32
  }
  func.func @transform_3(%arg0: i32) -> (i32, i32, i32) {
    %c0_i32 = arith.constant 0 : i32
    %c0_i32_0 = arith.constant 0 : i32
    %c0_i32_1 = arith.constant 0 : i32
    %c0_i32_2 = arith.constant 0 : i32
    return %c0_i32, %c0_i32_0, %c0_i32_1 : i32, i32, i32
  }
  func.func @transform_4(%arg0: i32) -> (i32, i32) {
    %c0_i32 = arith.constant 0 : i32
    %c0_i32_0 = arith.constant 0 : i32
    %c0_i32_1 = arith.constant 0 : i32
    return %c0_i32, %c0_i32_0 : i32, i32
  }
  func.func @transform_5(%arg0: i32) -> (i32, i32, i32) {
    %c0_i32 = arith.constant 0 : i32
    %c0_i32_0 = arith.constant 0 : i32
    %c0_i32_1 = arith.constant 0 : i32
    %c0_i32_2 = arith.constant 0 : i32
    return %c0_i32, %c0_i32_0, %c0_i32_1 : i32, i32, i32
  }
  func.func @transform_6(%arg0: i32) -> (i32, i32) {
    %c0_i32 = arith.constant 0 : i32
    %c0_i32_0 = arith.constant 0 : i32
    %c0_i32_1 = arith.constant 0 : i32
    return %c0_i32, %c0_i32_0 : i32, i32
  }
  func.func @transform_7(%arg0: i32) -> (i32, i32) {
    %c0_i32 = arith.constant 0 : i32
    %c0_i32_0 = arith.constant 0 : i32
    %c0_i32_1 = arith.constant 0 : i32
    return %c0_i32, %c0_i32_0 : i32, i32
  }
  func.func @transform_8(%arg0: i32) -> (i32, i32) {
    %c0_i32 = arith.constant 0 : i32
    %c0_i32_0 = arith.constant 0 : i32
    %c0_i32_1 = arith.constant 0 : i32
    return %c0_i32, %c0_i32_0 : i32, i32
  }
  func.func @transform_9(%arg0: i32) -> (i32, i32) {
    %c0_i32 = arith.constant 0 : i32
    %c0_i32_0 = arith.constant 0 : i32
    %c0_i32_1 = arith.constant 0 : i32
    return %c0_i32, %c0_i32_0 : i32, i32
  }
  func.func @transform_10(%arg0: i32) -> (i32, i32) {
    %c0_i32 = arith.constant 0 : i32
    %c0_i32_0 = arith.constant 0 : i32
    %c0_i32_1 = arith.constant 0 : i32
    return %c0_i32, %c0_i32_0 : i32, i32
  }
  func.func @transform_11(%arg0: i32) -> (i32, i32) {
    %c0_i32 = arith.constant 0 : i32
    %c0_i32_0 = arith.constant 0 : i32
    %c0_i32_1 = arith.constant 0 : i32
    return %c0_i32, %c0_i32_0 : i32, i32
  }
  func.func @transform_12(%arg0: i32) -> (i32, i32) {
    %c0_i32 = arith.constant 0 : i32
    %c0_i32_0 = arith.constant 0 : i32
    %c0_i32_1 = arith.constant 0 : i32
    return %c0_i32, %c0_i32_0 : i32, i32
  }
  func.func @transform_13(%arg0: i32) -> (i32, i32) {
    %c0_i32 = arith.constant 0 : i32
    %c0_i32_0 = arith.constant 0 : i32
    %c0_i32_1 = arith.constant 0 : i32
    return %c0_i32, %c0_i32_0 : i32, i32
  }
  func.func @transform_14(%arg0: i32) -> (i32, i32) {
    %c0_i32 = arith.constant 0 : i32
    %c0_i32_0 = arith.constant 0 : i32
    %c0_i32_1 = arith.constant 0 : i32
    return %c0_i32, %c0_i32_0 : i32, i32
  }
  func.func @transform_15(%arg0: i32) -> (i32, i32) {
    %c0_i32 = arith.constant 0 : i32
    %c0_i32_0 = arith.constant 0 : i32
    return %arg0, %c0_i32 : i32, i32
  }
  func.func @transform_16(%arg0: i32) -> (i32, i32) {
    %c0_i32 = arith.constant 0 : i32
    %c0_i32_0 = arith.constant 0 : i32
    return %arg0, %c0_i32 : i32, i32
  }
  func.func @transform_17(%arg0: i32) -> (i32, i32) {
    %c0_i32 = arith.constant 0 : i32
    %c0_i32_0 = arith.constant 0 : i32
    return %arg0, %c0_i32 : i32, i32
  }
}

</mosaic_0001>

<bundles_post_ra>
// kernel: lenet_precode_forward.1
= control target key start
LH: loop header
LB: loop body
LE: loop exit
PB: predicated region body
PF: predicated region fallthrough
CT: control target
= control target key end

     0   :  { %s6686_s0 = inlined_call_operand.vmem [shape: f32[28,140], index: 0, kind: input, shape index: {}]   ;;  %s6687_s1 = inlined_call_operand.vmem [shape: f32[140,168], index: 1, kind: input, shape index: {}]   ;;  %s6688_s2 = inlined_call_operand.vmem [shape: f32[1,168], index: 2, kind: input, shape index: {}]   ;;  %s6689_s3 = inlined_call_operand.vmem [shape: f32[5,168,84], index: 3, kind: input, shape index: {}]   ;;  %s6690_s4 = inlined_call_operand.vmem [shape: f32[1,84], index: 4, kind: input, shape index: {}]   ;;  %s6691_s5 = inlined_call_operand.vmem [shape: f32[5,84,84], index: 5, kind: input, shape index: {}]   ;;  %s6692_s6 = inlined_call_operand.vmem [shape: f32[1,84], index: 6, kind: input, shape index: {}]   ;;  %s6693_s7 = inlined_call_operand.vmem [shape: f32[896,32], index: 7, kind: input, shape index: {}]   ;;  %s6694_s8 = inlined_call_operand.vmem [shape: f32[1,32], index: 8, kind: input, shape index: {}]   ;;  %s6695_s9 = inlined_call_operand.vmem [shape: f32[896,32], index: 9, kind: input, shape index: {}]   ;;  %s6696_s10 = inlined_call_operand.vmem [shape: f32[1,32], index: 10, kind: input, shape index: {}]   ;;  %s6697_s11 = inlined_call_operand.vmem [shape: f32[32,588], index: 11, kind: input, shape index: {}]   ;;  %s6698_s12 = inlined_call_operand.vmem [shape: f32[1,588], index: 12, kind: input, shape index: {}]   ;;  %s6699_s13 = inlined_call_operand.vmem [shape: f32[588,10], index: 13, kind: input, shape index: {}]   ;;  %s6700_s14 = inlined_call_operand.vmem [shape: f32[1,10], index: 14, kind: input, shape index: {}]   ;;  %s6701_s15 = inlined_call_operand.vmem [shape: f32[2,32], index: 15, kind: input, shape index: {}]   ;;  %s6702_s16 = inlined_call_operand.hbm [shape: f32[2,10], index: 16, kind: output, shape index: {0}]   ;;  %s6703_s17 = inlined_call_operand.vmem [shape: f32[2,896], index: 17, kind: output, shape index: {1}]  }
   0x1   :  { %6706 = sst [smem:[#allocation7_spill]] %s6686_s0 }
   0x2   :  { %6707 = sst [smem:[#allocation8_spill]] %s6687_s1 }
   0x3   :  { %s6708_s26 = sld [smem:[#allocation8_spill]]  ;;  %v56_v3 = vlaneseq  ;;  %v4586_v13 = vmov 0.0   ;;  %vm144_vm1 = vcmask 97280   ;;  %s6709_s24 = sld [smem:[#allocation7_spill]] }
   0x4   :  { %1535 = vst [vmem:[%s6703_s17] sm:$0xff] %v4586_v13  ;;  %1536 = vst [vmem:[%s6703_s17 + $0x8] sm:$0x3f] %v4586_v13 }
   0x5   :  { %vm58_vm0 = vcmp.lt.s32.totalorder %v56_v3, 168 }
   0x6   :  { %60 = vst.msk [vmem:[#allocation2] ss:$8 sm:$0x3] %vm58_vm0, %v4586_v13  ;;  %63 = vst.msk [vmem:[#allocation2 + $0x10] ss:$8 sm:$0x3] %vm58_vm0, %v4586_v13 }
   0x7   :  { %66 = vst.msk [vmem:[#allocation2 + $0x30] ss:$8 sm:$0x3] %vm58_vm0, %v4586_v13  ;;  %69 = vst.msk [vmem:[#allocation2 + $0x40] ss:$8 sm:$0x3] %vm58_vm0, %v4586_v13 }
   0x8   :  { %75 = vst.msk [vmem:[#allocation2 + $0x11] ss:$8 sm:$0x3] %vm58_vm0, %v4586_v13  ;;  %78 = vst.msk [vmem:[#allocation2 + $0x21] ss:$8 sm:$0x3] %vm58_vm0, %v4586_v13 }
   0x9   :  { %v97_v0 = vld [vmem:[%s6708_s26 + $0x8] sm:$0xff]  ;;  %v99_v1 = vld [vmem:[%s6708_s26 + $0x18] sm:$0xff]  ;;  %v96_v2 = vld [vmem:[%s6708_s26] sm:$0xff]  ;;  %81 = vst.msk [vmem:[#allocation2 + $0x41] ss:$8 sm:$0x3] %vm58_vm0, %v4586_v13 }
   0xa   :  { %v3894_v4 = vpack.c.bf16 %v99_v1, %v97_v0  ;;  %v98_v5 = vld [vmem:[%s6708_s26 + $0x10] sm:$0xff]  ;;  %v101_v6 = vld [vmem:[%s6708_s26 + $0x28] sm:$0xff]  ;;  %v103_v7 = vld [vmem:[%s6708_s26 + $0x38] sm:$0xff] }
   0xb   :  { %v3896_v8 = vpack.c.bf16 %v98_v5, %v96_v2  ;;  %v3898_v9 = vpack.c.bf16 %v103_v7, %v101_v6  ;;  %v100_v10 = vld [vmem:[%s6708_s26 + $0x20] sm:$0xff]  ;;  %v102_v11 = vld [vmem:[%s6708_s26 + $0x30] sm:$0xff]  ;;  %v105_v12 = vld [vmem:[%s6708_s26 + $0x48] sm:$0xff] }
   0xc   :  { %3895 = vmatprep.subr.bf16.mxu0 %v3894_v4  ;;  %v107_v14 = vld [vmem:[%s6708_s26 + $0x58] sm:$0xff]  ;;  %v3900_v15 = vpack.c.bf16 %v102_v11, %v100_v10  ;;  %v104_v17 = vld [vmem:[%s6708_s26 + $0x40] sm:$0xff]  ;;  %v106_v18 = vld [vmem:[%s6708_s26 + $0x50] sm:$0xff] }
   0xd   :  { %3897 = vmatpush1.bf16.msra.mxu0 %v3896_v8  ;;  %v3902_v16 = vpack.c.bf16 %v107_v14, %v105_v12  ;;  %v109_v19 = vld [vmem:[%s6708_s26 + $0x68] sm:$0xff]  ;;  %v111_v20 = vld [vmem:[%s6708_s26 + $0x78] sm:$0xff]  ;;  %v3904_v21 = vpack.c.bf16 %v106_v18, %v104_v17  ;;  %v108_v23 = vld [vmem:[%s6708_s26 + $0x60] sm:$0xff] }
   0xe   :  { %3899 = vmatprep.subr.bf16.mxu0 %v3898_v9  ;;  %v3906_v22 = vpack.c.bf16 %v111_v20, %v109_v19  ;;  %v110_v24 = vld [vmem:[%s6708_s26 + $0x70] sm:$0xff]  ;;  %v113_v25 = vld [vmem:[%s6708_s26 + $0x88] sm:$0xff]  ;;  %v115_v26 = vld [vmem:[%s6708_s26 + $0x98] sm:$0xff] }
   0xf   :  { %v3908_v27 = vpack.c.bf16 %v110_v24, %v108_v23  ;;  %v89_v28 = vld [vmem:[%s6709_s24 + $0x8] sm:$0xff]  ;;  %v3910_v29 = vpack.c.bf16 %v115_v26, %v113_v25  ;;  %v112_v30 = vld [vmem:[%s6708_s26 + $0x80] sm:$0xff]  ;;  %v114_v31 = vld [vmem:[%s6708_s26 + $0x90] sm:$0xff] }
  0x10   :  { %3056 = vmatprep.mubr.msk.f32.mxu0 %vm144_vm1, %v89_v28  ;;  %v117_v32 = vld [vmem:[%s6708_s26 + $0xa8] sm:$0xff]  ;;  %v119_v33 = vld [vmem:[%s6708_s26 + $0xb8] sm:$0xff] }
  0x11   :  { %3901 = vmatpush1.bf16.msra.mxu0 %v3900_v15 }
  0x12   :  { %3903 = vmatprep.subr.bf16.mxu0 %v3902_v16 }
  0x15   :  { %3905 = vmatpush1.bf16.msra.mxu0 %v3904_v21 }
  0x16   :  { %3907 = vmatprep.subr.bf16.mxu0 %v3906_v22 }
  0x17   :  { %23 = vsyncpa [#allocation5], 0  ;;  %v3912_v34 = vpack.c.bf16 %v114_v31, %v112_v30  ;;  %v3914_v35 = vpack.c.bf16 %v119_v33, %v117_v32  ;;  %v116_v36 = vld [vmem:[%s6708_s26 + $0xa0] sm:$0xff]  ;;  %v118_v37 = vld [vmem:[%s6708_s26 + $0xb0] sm:$0xff]  ;;  %vm157_vm2 = vcmask 1043456   ;;  %vm4587_vm3 = vmmov 1  }
  0x18   :  { %v121_v38 = vld [vmem:[%s6708_s26 + $0xc8] sm:$0xff]  ;;  %v123_v39 = vld [vmem:[%s6708_s26 + $0xd8] sm:$0xff]  ;;  %v3916_v40 = vpack.c.bf16 %v118_v37, %v116_v36  ;;  %v120_v42 = vld [vmem:[%s6708_s26 + $0xc0] sm:$0xff]  ;;  %v4588_v5 = vmov 0.0|0.0   ;;  %vm300_vm5 = vcmask 326657   ;;  %vm304_vm6 = vcmask 1041408  }
  0x19   :  { %3909 = vmatpush1.bf16.msra.mxu0 %v3908_v27  ;;  %v3918_v41 = vpack.c.bf16 %v123_v39, %v121_v38  ;;  %v122_v43 = vld [vmem:[%s6708_s26 + $0xd0] sm:$0xff]  ;;  %v125_v44 = vld [vmem:[%s6708_s26 + $0xe8] sm:$0xff]  ;;  %v127_v45 = vld [vmem:[%s6708_s26 + $0xf8] sm:$0xff]  ;;  %3932 = vmatprep.subr.bf16.mxu1 %v4588_v5  ;;  %vm331_vm7 = vcmask 319488   ;;  %vm401_vm8 = vcmask 326656   ;;  %vm328_vm9 = vcmask 326658  }
  0x1a   :  { %3911 = vmatprep.subr.bf16.mxu0 %v3910_v29  ;;  %v3920_v46 = vpack.c.bf16 %v122_v43, %v120_v42  ;;  %v3922_v47 = vpack.c.bf16 %v127_v45, %v125_v44  ;;  %v124_v48 = vld [vmem:[%s6708_s26 + $0xe0] sm:$0xff]  ;;  %v126_v49 = vld [vmem:[%s6708_s26 + $0xf0] sm:$0xff]  ;;  %v129_v50 = vld [vmem:[%s6708_s26 + $0x108] sm:$0xff]  ;;  %vm335_vm10 = vcmask 1044480   ;;  %vm598_vm11 = vcmask 1046528  }
  0x1b   :  { %v131_v51 = vld [vmem:[%s6708_s26 + $0x118] sm:$0xf]  ;;  %v3924_v52 = vpack.c.bf16 %v126_v49, %v124_v48  ;;  %v128_v54 = vld [vmem:[%s6708_s26 + $0x100] sm:$0xff]  ;;  %v130_v55 = vld [vmem:[%s6708_s26 + $0x110] sm:$0xf]  ;;  %vm849_vm12 = vcmask 1045504  }
  0x1c   :  { %v3926_v53 = vpack.c.bf16 %v131_v51, %v129_v50  ;;  %vm4811_vm4 = vmpackc.low %vm157_vm2, %vm4587_vm3  ;;  %v3929_v57 = vpack.c.bf16 %v130_v55, %v128_v54  ;;  %v88_v58 = vld [vmem:[%s6709_s24] sm:$0xff]  ;;  %v91_v59 = vld [vmem:[%s6709_s24 + $0x18] sm:$0xff]  ;;  %vm71_vm13 = vcmask 680960   ;;  %vm4589_vm14 = vmmov 0  }
  0x1d   :  { %3913 = vmatpush1.bf16.msra.mxu0 %v3912_v34  ;;  %v90_v60 = vld [vmem:[%s6709_s24 + $0x10] sm:$0xff]  ;;  %v93_v61 = vld [vmem:[%s6709_s24 + $0x28] sm:$0xff]  ;;  %v92_v62 = vld [vmem:[%s6709_s24 + $0x20] sm:$0xff]  ;;  %vm962_vm15 = vcmask 686080   ;;  %vm964_vm0 = vcmask 687105   ;;  %vm2517_vm3 = vcmask 261120  }
  0x1e   :  { %3915 = vmatprep.subr.bf16.mxu0 %v3914_v35  ;;  %v95_v63 = vld [vmem:[%s6709_s24 + $0x38] sm:$0xf]  ;;  %v94_v0 = vld [vmem:[%s6709_s24 + $0x30] sm:$0xf]  ;;  %v354_v1 = vld [vmem:[%s6689_s3] sm:$0xff] }
  0x1f   :  { %v355_v2 = vld [vmem:[%s6689_s3 + $0x8] sm:$0xff]  ;;  %v356_v6 = vld [vmem:[%s6689_s3 + $0x10] sm:$0xff]  ;;  %v357_v7 = vld [vmem:[%s6689_s3 + $0x18] sm:$0xff] }
  0x20   :  { %v3963_v4 = vpack.c.bf16 %v355_v2, %v354_v1  ;;  %v3966_v8 = vpack.c.bf16 %v357_v7, %v356_v6  ;;  %v3060_v9 = vld [vmem:[%s6689_s3 + $0xa8] sm:$0xff]  ;;  %v3061_v10 = vld [vmem:[%s6689_s3 + $0xb0] sm:$0xff]  ;;  %v358_v12 = vld [vmem:[%s6689_s3 + $0x20] sm:$0xff] }
  0x21   :  { %3917 = vmatpush1.bf16.msra.mxu0 %v3916_v40  ;;  %v3933_v11 = vpack.c.bf16 %v3061_v10, %v3060_v9  ;;  %v359_v14 = vld [vmem:[%s6689_s3 + $0x28] sm:$0xff]  ;;  %v3062_v16 = vld [vmem:[%s6689_s3 + $0xb8] sm:$0xff]  ;;  %v3063_v17 = vld [vmem:[%s6689_s3 + $0xc0] sm:$0xff] }
  0x22   :  { %3919 = vmatprep.subr.bf16.mxu0 %v3918_v41  ;;  %v3969_v15 = vpack.c.bf16 %v359_v14, %v358_v12  ;;  %v3936_v18 = vpack.c.bf16 %v3063_v17, %v3062_v16  ;;  %v360_v19 = vld [vmem:[%s6689_s3 + $0x30] sm:$0xff]  ;;  %v361_v20 = vld [vmem:[%s6689_s3 + $0x38] sm:$0xff]  ;;  %v3064_v22 = vld [vmem:[%s6689_s3 + $0xc8] sm:$0xff] }
  0x23   :  { %3934 = vmatpush1.bf16.msra.mxu1 %v3933_v11  ;;  %v3972_v21 = vpack.c.bf16 %v361_v20, %v360_v19  ;;  %v3065_v23 = vld [vmem:[%s6689_s3 + $0xd0] sm:$0xff]  ;;  %v362_v25 = vld [vmem:[%s6689_s3 + $0x40] sm:$0xff]  ;;  %v363_v26 = vld [vmem:[%s6689_s3 + $0x48] sm:$0xff] }
  0x24   :  { %3935 = vmatprep.subr.bf16.mxu1 %v4588_v5  ;;  %v3939_v24 = vpack.c.bf16 %v3065_v23, %v3064_v22  ;;  %v3975_v27 = vpack.c.bf16 %v363_v26, %v362_v25  ;;  %v3066_v28 = vld [vmem:[%s6689_s3 + $0xd8] sm:$0xff]  ;;  %v3067_v29 = vld [vmem:[%s6689_s3 + $0xe0] sm:$0xff]  ;;  %v364_v31 = vld [vmem:[%s6689_s3 + $0x50] sm:$0xff] }
  0x25   :  { %3921 = vmatpush1.bf16.msra.mxu0 %v3920_v46  ;;  %v3942_v30 = vpack.c.bf16 %v3067_v29, %v3066_v28  ;;  %v365_v32 = vld [vmem:[%s6689_s3 + $0x58] sm:$0xff]  ;;  %v3068_v34 = vld [vmem:[%s6689_s3 + $0xe8] sm:$0xff]  ;;  %v3069_v35 = vld [vmem:[%s6689_s3 + $0xf0] sm:$0xff] }
  0x26   :  { %3923 = vmatprep.subr.bf16.mxu0 %v3922_v47  ;;  %v3978_v33 = vpack.c.bf16 %v365_v32, %v364_v31  ;;  %v3945_v36 = vpack.c.bf16 %v3069_v35, %v3068_v34  ;;  %v366_v37 = vld [vmem:[%s6689_s3 + $0x60] sm:$0xff]  ;;  %v367_v38 = vld [vmem:[%s6689_s3 + $0x68] sm:$0xff]  ;;  %v3070_v40 = vld [vmem:[%s6689_s3 + $0xf8] sm:$0xff] }
  0x27   :  { %3937 = vmatpush1.bf16.msra.mxu1 %v3936_v18  ;;  %v3981_v39 = vpack.c.bf16 %v367_v38, %v366_v37  ;;  %v3071_v41 = vld [vmem:[%s6689_s3 + $0x100] sm:$0xff]  ;;  %v368_v43 = vld [vmem:[%s6689_s3 + $0x70] sm:$0xff]  ;;  %v369_v44 = vld [vmem:[%s6689_s3 + $0x78] sm:$0xff] }
  0x28   :  { %3938 = vmatprep.subr.bf16.mxu1 %v4588_v5  ;;  %v3948_v42 = vpack.c.bf16 %v3071_v41, %v3070_v40  ;;  %v3984_v45 = vpack.c.bf16 %v369_v44, %v368_v43  ;;  %v3072_v46 = vld [vmem:[%s6689_s3 + $0x108] sm:$0xff]  ;;  %v3073_v47 = vld [vmem:[%s6689_s3 + $0x110] sm:$0xff]  ;;  %v370_v49 = vld [vmem:[%s6689_s3 + $0x80] sm:$0xff] }
  0x29   :  { %3925 = vmatpush1.bf16.msra.mxu0 %v3924_v52  ;;  %v3951_v48 = vpack.c.bf16 %v3073_v47, %v3072_v46  ;;  %v371_v50 = vld [vmem:[%s6689_s3 + $0x88] sm:$0xff]  ;;  %v3074_v52 = vld [vmem:[%s6689_s3 + $0x118] sm:$0xff]  ;;  %v372_v55 = vld [vmem:[%s6689_s3 + $0x90] sm:$0xff] }
  0x2a   :  { %3928 = vmatprep.subr.msk.bf16.mxu0 %vm4811_vm4, %v3926_v53  ;;  %v3987_v51 = vpack.c.bf16 %v371_v50, %v370_v49  ;;  %v3075_v53 = vld [vmem:[%s6689_s3 + $0x120] sm:$0xff]  ;;  %v3080_v2 = vld [vmem:[%s6689_s3 + $0x148] sm:$0xff] }
  0x2b   :  { %3940 = vmatpush1.bf16.msra.mxu1 %v3939_v24  ;;  %v3954_v54 = vpack.c.bf16 %v3075_v53, %v3074_v52  ;;  %v132_v7 = vld [vmem:[%s6688_s2] sm:$0x3] }
  0x2c   :  { %3941 = vmatprep.subr.bf16.mxu1 %v4588_v5 }
  0x2d   :  { %3931 = vmatpush1.bf16.msk.msra.mxu0 %vm4811_vm4, %v3929_v57  ;;  %v373_v57 = vld [vmem:[%s6689_s3 + $0x98] sm:$0xff] }
  0x2e   :  { %3962 = vmatprep.subr.bf16.mxu0 %v4588_v5 }
  0x2f   :  { %3943 = vmatpush1.bf16.msra.mxu1 %v3942_v30 }
  0x30   :  { %229 = vmatmul.mubr.f32.vlgmr.msra.gmra.mrb[0].mxu0 %v88_v58  ;;  %3944 = vmatprep.subr.bf16.mxu1 %v4588_v5  ;;  %v3990_v58 = vpack.c.bf16 %v373_v57, %v372_v55 }
  0x31   :  { %3057 = vmatprep.mubr.msk.f32.mxu0 %vm144_vm1, %v91_v59  ;;  %3964 = vmatpush1.bf16.msra.mxu0 %v3963_v4  ;;  %v3076_v59 = vld [vmem:[%s6689_s3 + $0x128] sm:$0xff]  ;;  %v4994_v4 = vshrl.u32 %v56_v3, 7 }
  0x32   :  { %3965 = vmatprep.subr.bf16.mxu0 %v4588_v5 }
  0x33   :  { %3946 = vmatpush1.bf16.msra.mxu1 %v3945_v36  ;;  %v136_v6 = vsub.s32 0, %v4994_v4 }
  0x34   :  { %235 = vmatmul.mubr.f32.gmra.mrb[2].mxu0 %v90_v60  ;;  %3947 = vmatprep.subr.bf16.mxu1 %v4588_v5  ;;  %v3077_v60 = vld [vmem:[%s6689_s3 + $0x130] sm:$0xff] }
  0x35   :  { %3058 = vmatprep.mubr.msk.f32.mxu0 %vm144_vm1, %v93_v61  ;;  %3967 = vmatpush1.bf16.msra.mxu0 %v3966_v8  ;;  %v3957_v61 = vpack.c.bf16 %v3077_v60, %v3076_v59  ;;  %v140_v8 = vsub.s32 1, %v4994_v4  ;;  %v137_v9 = vrot.slane %v132_v7, %v136_v6 }
  0x36   :  { %3968 = vmatprep.subr.bf16.mxu0 %v4588_v5 }
  0x37   :  { %3949 = vmatpush1.bf16.msra.mxu1 %v3948_v42  ;;  %v141_v10 = vrot.slane %v132_v7, %v140_v8 }
  0x38   :  { %241 = vmatmul.mubr.f32.gmra.mrb[4].mxu0 %v92_v62  ;;  %3950 = vmatprep.subr.bf16.mxu1 %v4588_v5  ;;  %v3078_v62 = vld [vmem:[%s6689_s3 + $0x138] sm:$0xff] }
  0x39   :  { %3059 = vmatprep.mubr.msk.f32.mxu0 %vm144_vm1, %v95_v63  ;;  %3970 = vmatpush1.bf16.msra.mxu0 %v3969_v15  ;;  %v3079_v63 = vld [vmem:[%s6689_s3 + $0x140] sm:$0xff]  ;;  %vm995_vm1 = vcmask 687104  }
  0x3a   :  { %3971 = vmatprep.subr.bf16.mxu0 %v4588_v5  ;;  %v3960_v1 = vpack.c.bf16 %v3079_v63, %v3078_v62 }
  0x3b   :  { %3952 = vmatpush1.bf16.msra.mxu1 %v3951_v48 }
  0x3c   :  { %247 = vmatmul.mubr.f32.gmra.mrb[6].mxu0 %v94_v0  ;;  %3953 = vmatprep.subr.bf16.mxu1 %v4588_v5  ;;  %v374_v0 = vld [vmem:[%s6689_s3 + $0xa0] sm:$0xff] }
  0x3d   :  { %3973 = vmatpush1.bf16.msra.mxu0 %v3972_v21 }
  0x3e   :  { %3974 = vmatprep.subr.bf16.mxu0 %v4588_v5 }
  0x3f   :  { %3955 = vmatpush1.bf16.msra.mxu1 %v3954_v54 }
  0x40   :  { %3956 = vmatprep.subr.bf16.mxu1 %v4588_v5 }
  0x41   :  { %3976 = vmatpush1.bf16.msra.mxu0 %v3975_v27 }
  0x42   :  { %3977 = vmatprep.subr.bf16.mxu0 %v4588_v5 }
  0x43   :  { %3958 = vmatpush1.bf16.msra.mxu1 %v3957_v61 }
  0x44   :  { %3959 = vmatprep.subr.bf16.mxu1 %v4588_v5 }
  0x45   :  { %3979 = vmatpush1.bf16.msra.mxu0 %v3978_v33 }
  0x46   :  { %3980 = vmatprep.subr.bf16.mxu0 %v4588_v5 }
  0x47   :  { %3961 = vmatpush1.bf16.msra.mxu1 %v3960_v1 }
  0x48   :  { %448 = vmatprep.subr.mxu1 %v4586_v13 }
  0x49   :  { %3982 = vmatpush1.bf16.msra.mxu0 %v3981_v39 }
  0x4a   :  { %3983 = vmatprep.subr.bf16.mxu0 %v4588_v5 }
  0x4b   :  { %449 = vmatpush1.msra.mxu1 %v3080_v2 }
  0x4c   :  { %3992 = vmatprep.subr.bf16.mxu1 %v4588_v5 }
  0x4d   :  { %3985 = vmatpush1.bf16.msra.mxu0 %v3984_v45 }
  0x4e   :  { %3986 = vmatprep.subr.bf16.mxu0 %v4588_v5 }
  0x51   :  { %3988 = vmatpush1.bf16.msra.mxu0 %v3987_v51 }
  0x52   :  { %3989 = vmatprep.subr.bf16.mxu0 %v4588_v5 }
  0x55   :  { %3991 = vmatpush1.bf16.msra.mxu0 %v3990_v58 }
  0x56   :  { %529 = vmatprep.subr.mxu0 %v4586_v13 }
  0x59   :  { %530 = vmatpush1.msra.mxu0 %v374_v0 }
  0x5a   :  { %4022 = vmatprep.subr.bf16.mxu0 %v4588_v5 }
 0x103   :  { %v230_v11 = vpop.f32.mrb[0].mxu0 }
 0x104   :  { %v231_v12 = vadd.f32 %v230_v11, %v137_v9  ;;  %v232_v14 = vpop.f32.mrb[1].mxu0 }
 0x105   :  { %v233_v15 = vadd.f32 %v232_v14, %v141_v10  ;;  %v3109_v14 = vld [vmem:[%s6689_s3 + $0x200] sm:$0xff] }
 0x106   :  { %v253_v3 = vsub.f32 0.0, %v231_v12  ;;  %v3108_v12 = vld [vmem:[%s6689_s3 + $0x1f8] sm:$0xff] }
 0x107   :  { %v254_v16 = vsub.f32 0.0, %v233_v15  ;;  %v236_v17 = vpop.f32.mrb[2].mxu0 }
 0x108   :  { %v261_v18 = vmul.f32 1.442695, %v253_v3  ;;  %v237_v19 = vadd.f32 %v236_v17, %v137_v9  ;;  %v238_v20 = vpop.f32.mrb[3].mxu0 }
 0x109   :  { %v263_v21 = vmul.f32 1.442695, %v254_v16  ;;  %v239_v22 = vadd.f32 %v238_v20, %v141_v10 }
 0x10a   :  { %4507 = vpow2.f32 %v261_v18  ;;  %v255_v23 = vsub.f32 0.0, %v237_v19 }
 0x10b   :  { %4509 = vpow2.f32 %v263_v21  ;;  %v256_v24 = vsub.f32 0.0, %v239_v22  ;;  %v242_v25 = vpop.f32.mrb[4].mxu0  ;;  %v4023_v21 = vpack.c.bf16 %v3109_v14, %v3108_v12  ;;  %v3118_v12 = vld [vmem:[%s6689_s3 + $0x248] sm:$0xff]  ;;  %v3119_v14 = vld [vmem:[%s6689_s3 + $0x250] sm:$0xff] }
 0x10c   :  { %v265_v26 = vmul.f32 1.442695, %v255_v23  ;;  %v243_v27 = vadd.f32 %v242_v25, %v137_v9  ;;  %v244_v28 = vpop.f32.mrb[5].mxu0  ;;  %v3110_v25 = vld [vmem:[%s6689_s3 + $0x208] sm:$0xff] }
 0x10d   :  { %v267_v29 = vmul.f32 1.442695, %v256_v24  ;;  %v245_v30 = vadd.f32 %v244_v28, %v141_v10 }
 0x10e   :  { %4511 = vpow2.f32 %v265_v26  ;;  %v257_v31 = vsub.f32 0.0, %v243_v27  ;;  %v3111_v26 = vld [vmem:[%s6689_s3 + $0x210] sm:$0xff] }
 0x10f   :  { %4513 = vpow2.f32 %v267_v29  ;;  %v258_v32 = vsub.f32 0.0, %v245_v30  ;;  %v248_v33 = vpop.f32.mrb[6].mxu0  ;;  %v3085_v30 = vld [vmem:[%s6689_s3 + $0x150] sm:$0xff] }
 0x110   :  { %v269_v34 = vmul.f32 1.442695, %v257_v31  ;;  %v249_v35 = vadd.f32 %v248_v33, %v137_v9  ;;  %v250_v36 = vpop.f32.mrb[7].mxu0  ;;  %v3086_v31 = vld [vmem:[%s6689_s3 + $0x158] sm:$0xff] }
 0x111   :  { %v271_v37 = vmul.f32 1.442695, %v258_v32  ;;  %v251_v38 = vadd.f32 %v250_v36, %v141_v10 }
 0x112   :  { %4515 = vpow2.f32 %v269_v34  ;;  %v259_v39 = vsub.f32 0.0, %v249_v35  ;;  %v4026_v34 = vpack.c.bf16 %v3111_v26, %v3110_v25  ;;  %v3122_v26 = vld [vmem:[%s6689_s3 + $0x268] sm:$0xff] }
 0x113   :  { %4517 = vpow2.f32 %v271_v37  ;;  %v260_v40 = vsub.f32 0.0, %v251_v38  ;;  %v3993_v37 = vpack.c.bf16 %v3086_v31, %v3085_v30  ;;  %v3112_v38 = vld [vmem:[%s6689_s3 + $0x218] sm:$0xff] }
 0x114   :  { %v4508_v41 = vpop.eup %4507  ;;  %v273_v42 = vmul.f32 1.442695, %v259_v39  ;;  %v3113_v39 = vld [vmem:[%s6689_s3 + $0x220] sm:$0xff] }
 0x115   :  { %v4510_v43 = vpop.eup %4509  ;;  %v277_v44 = vadd.f32 1.0, %v4508_v41  ;;  %v275_v45 = vmul.f32 1.442695, %v260_v40 }
 0x116   :  { %v278_v46 = vadd.f32 1.0, %v4510_v43  ;;  %4519 = vpow2.f32 %v273_v42  ;;  %v3087_v42 = vld [vmem:[%s6689_s3 + $0x160] sm:$0xff]  ;;  %v3088_v43 = vld [vmem:[%s6689_s3 + $0x168] sm:$0xff] }
 0x117   :  { %4521 = vrcp.f32 %v277_v44 }
 0x118   :  { %v4512_v47 = vpop.eup %4511  ;;  %4523 = vrcp.f32 %v278_v46  ;;  %v4029_v46 = vpack.c.bf16 %v3113_v39, %v3112_v38  ;;  %v3126_v38 = vld [vmem:[%s6689_s3 + $0x288] sm:$0xff]  ;;  %v3127_v39 = vld [vmem:[%s6689_s3 + $0x290] sm:$0xff] }
 0x119   :  { %v4514_v48 = vpop.eup %4513  ;;  %v279_v49 = vadd.f32 1.0, %v4512_v47  ;;  %4525 = vpow2.f32 %v275_v45  ;;  %v3996_v47 = vpack.c.bf16 %v3088_v43, %v3087_v42  ;;  %v4050_v42 = vpack.c.bf16 %v3127_v39, %v3126_v38  ;;  %v3146_v38 = vld [vmem:[%s6689_s3 + $0x318] sm:$0xff] }
 0x11a   :  { %v280_v50 = vadd.f32 1.0, %v4514_v48  ;;  %v3114_v48 = vld [vmem:[%s6689_s3 + $0x228] sm:$0xff] }
 0x11b   :  { %4527 = vrcp.f32 %v279_v49  ;;  %v3115_v49 = vld [vmem:[%s6689_s3 + $0x230] sm:$0xff] }
 0x11c   :  { %v4516_v51 = vpop.eup %4515  ;;  %4529 = vrcp.f32 %v280_v50 }
 0x11d   :  { %v4518_v52 = vpop.eup %4517  ;;  %v281_v53 = vadd.f32 1.0, %v4516_v51  ;;  %v3089_v51 = vld [vmem:[%s6689_s3 + $0x170] sm:$0xff] }
 0x11e   :  { %v282_v54 = vadd.f32 1.0, %v4518_v52  ;;  %v3090_v52 = vld [vmem:[%s6689_s3 + $0x178] sm:$0xff] }
 0x11f   :  { %4531 = vrcp.f32 %v281_v53 }
 0x120   :  { %v4520_v55 = vpop.eup %4519  ;;  %4533 = vrcp.f32 %v282_v54  ;;  %v4032_v54 = vpack.c.bf16 %v3115_v49, %v3114_v48  ;;  %v3128_v49 = vld [vmem:[%s6689_s3 + $0x298] sm:$0xff] }
 0x121   :  { %v4522_v57 = vpop.eup %4521  ;;  %v283_v58 = vadd.f32 1.0, %v4520_v55  ;;  %v3999_v55 = vpack.c.bf16 %v3090_v52, %v3089_v51 }
 0x122   :  { %v4524_v59 = vpop.eup %4523  ;;  %v295_v60 = vrot.slane %v4522_v57, 7  ;;  %v305_v2 = vrot.slane %v4522_v57, 6 }
 0x123   :  { %v4526_v61 = vpop.eup %4525  ;;  %v296_v62 = vrot.slane %v4524_v59, 7  ;;  %4535 = vrcp.f32 %v283_v58  ;;  %v308_v9 = vrot.slane %v4524_v59, 6  ;;  %v3116_v58 = vld [vmem:[%s6689_s3 + $0x238] sm:$0xff]  ;;  %v3117_v59 = vld [vmem:[%s6689_s3 + $0x240] sm:$0xff] }
 0x124   :  { %299 = vst [vmem:[#allocation2] sm:$0xfe] %v295_v60  ;;  %v284_v63 = vadd.f32 1.0, %v4526_v61 }
 0x125   :  { %v4528_v0 = vpop.eup %4527  ;;  %301 = vst.msk [vmem:[#allocation2 + $0x8] sm:$0xfe] %vm300_vm5, %v296_v62  ;;  %v3091_v62 = vld [vmem:[%s6689_s3 + $0x180] sm:$0xff] }
 0x126   :  { %v4530_v1 = vpop.eup %4529  ;;  %v306_v7 = vrot.slane %v4528_v0, 6  ;;  %4537 = vrcp.f32 %v284_v63  ;;  %v317_v17 = vrot.slane %v4528_v0, 4  ;;  %v3092_v63 = vld [vmem:[%s6689_s3 + $0x188] sm:$0xff] }
 0x127   :  { %v309_v10 = vrot.slane %v4530_v1, 6  ;;  %v320_v19 = vrot.slane %v4530_v1, 4 }
 0x128   :  { %v307_v11 = vsel %vm304_vm6, %v305_v2, %v306_v7  ;;  %v4035_v2 = vpack.c.bf16 %v3117_v59, %v3116_v58 }
 0x129   :  { %v4532_v15 = vpop.eup %4531  ;;  %313 = vst [vmem:[#allocation2 + $0x30] sm:$0xfe] %v307_v11  ;;  %v310_v3 = vsel %vm304_vm6, %v308_v9, %v309_v10  ;;  %v4002_v11 = vpack.c.bf16 %v3092_v63, %v3091_v62  ;;  %v3131_v62 = vld [vmem:[%s6689_s3 + $0x2a0] sm:$0xff]  ;;  %v3132_v63 = vld [vmem:[%s6689_s3 + $0x2a8] sm:$0xff]  ;;  %vm3031_vm6 = vcmask 74752  }
 0x12a   :  { %v4534_v16 = vpop.eup %4533  ;;  %314 = vst.msk [vmem:[#allocation2 + $0x38] sm:$0xfe] %vm300_vm5, %v310_v3  ;;  %v318_v18 = vrot.slane %v4532_v15, 4  ;;  %v336_v23 = vrot.slane %v4532_v15, 3  ;;  %v3093_v3 = vld [vmem:[%s6689_s3 + $0x190] sm:$0xff]  ;;  %vm2814_vm5 = vcmask 621568  }
 0x12b   :  { %v321_v20 = vrot.slane %v4534_v16, 4  ;;  %v350_v29 = vld [vmem:[#allocation2] sm:$0xff]  ;;  %v339_v33 = vrot.slane %v4534_v16, 3  ;;  %v3094_v16 = vld [vmem:[%s6689_s3 + $0x198] sm:$0xff] }
 0x12c   :  { %v319_v22 = vsel %vm157_vm2, %v317_v17, %v318_v18  ;;  %330 = vst [vmem:[#allocation2 + $0x20] sm:$0x1] %v318_v18  ;;  %v351_v24 = vld [vmem:[#allocation2 + $0x8] sm:$0xff]  ;;  %v4038_v18 = vpack.c.bf16 %v3119_v14, %v3118_v12  ;;  %v4053_v14 = vpack.c.bf16 %v3132_v63, %v3131_v62  ;;  %v3156_v62 = vld [vmem:[%s6691_s5 + $0x60] sm:$0xff] }
 0x12d   :  { %v4536_v27 = vpop.eup %4535  ;;  %327 = vst [vmem:[#allocation2 + $0x10] sm:$0xfc] %v319_v22  ;;  %v322_v28 = vsel %vm157_vm2, %v320_v19, %v321_v20  ;;  %332 = vst.msk [vmem:[#allocation2 + $0x28] sm:$0x1] %vm331_vm7, %v321_v20  ;;  %3083 = vmatprep.mubr.msk.f32.mxu0 %vm401_vm8, %v351_v24  ;;  %v565_v57 = vld [vmem:[#allocation2 + $0x8] sm:$0xfe]  ;;  %v4005_v19 = vpack.c.bf16 %v3094_v16, %v3093_v3 }
 0x12e   :  { %v337_v32 = vrot.slane %v4536_v27, 3  ;;  %329 = vst.msk [vmem:[#allocation2 + $0x18] sm:$0xfc] %vm328_vm9, %v322_v28  ;;  %554 = vmatmul.mubr.f32.vlgmr.msra.gmra.mrb[8].mxu0 %v350_v29  ;;  %v602_v1 = vrot.slane %v565_v57, 1  ;;  %v3120_v20 = vld [vmem:[%s6689_s3 + $0x258] sm:$0xff]  ;;  %v3095_v22 = vld [vmem:[%s6689_s3 + $0x1a0] sm:$0xff] }
 0x12f   :  { %4024 = vmatpush1.bf16.msra.mxu0 %v4023_v21  ;;  %v3121_v21 = vld [vmem:[%s6689_s3 + $0x260] sm:$0xff]  ;;  %v3123_v27 = vld [vmem:[%s6689_s3 + $0x270] sm:$0xff]  ;;  %v3098_v29 = vld [vmem:[%s6689_s3 + $0x1b8] sm:$0xff] }
 0x130   :  { %v4538_v35 = vpop.eup %4537  ;;  %v338_v36 = vsel %vm335_vm10, %v336_v23, %v337_v32  ;;  %348 = vst [vmem:[#allocation2 + $0x50] sm:$0x1] %v337_v32  ;;  %4025 = vmatprep.subr.bf16.mxu0 %v4588_v5  ;;  %v375_v44 = vld [vmem:[#allocation2 + $0x30] sm:$0xff]  ;;  %v3096_v23 = vld [vmem:[%s6689_s3 + $0x1a8] sm:$0xff]  ;;  %v4041_v24 = vpack.c.bf16 %v3121_v21, %v3120_v20  ;;  %v4044_v30 = vpack.c.bf16 %v3123_v27, %v3122_v26  ;;  %v3124_v32 = vld [vmem:[%s6689_s3 + $0x278] sm:$0xff] }
 0x131   :  { %346 = vst [vmem:[#allocation2 + $0x40] sm:$0xfc] %v338_v36  ;;  %v340_v40 = vrot.slane %v4538_v35, 3  ;;  %v376_v41 = vld [vmem:[#allocation2 + $0x38] sm:$0xff]  ;;  %v4008_v25 = vpack.c.bf16 %v3096_v23, %v3095_v22  ;;  %v3097_v28 = vld [vmem:[%s6689_s3 + $0x1b0] sm:$0xff]  ;;  %v3100_v35 = vld [vmem:[%s6689_s3 + $0x1c8] sm:$0xff] }
 0x132   :  { %3081 = vmatprep.mubr.msk.f32.mxu1 %vm401_vm8, %v376_v41  ;;  %v693_v61 = vld [vmem:[#allocation2 + $0x38] sm:$0xfe]  ;;  %v4011_v31 = vpack.c.bf16 %v3098_v29, %v3097_v28  ;;  %v820_v16 = vld [vmem:[#allocation2 + $0x8] sm:$0xfc]  ;;  %v3135_v21 = vld [vmem:[%s6689_s3 + $0x2c0] sm:$0xff] }
 0x133   :  { %v341_v45 = vsel %vm335_vm10, %v339_v33, %v340_v40  ;;  %349 = vst.msk [vmem:[#allocation2 + $0x58] sm:$0x1] %vm331_vm7, %v340_v40  ;;  %4027 = vmatpush1.bf16.msra.mxu0 %v4026_v34  ;;  %473 = vmatmul.mubr.f32.vlgmr.msra.gmra.mrb[0].mxu1 %v375_v44  ;;  %v729_v9 = vrot.slane %v693_v61, 1  ;;  %v3125_v33 = vld [vmem:[%s6689_s3 + $0x280] sm:$0xff]  ;;  %v3101_v40 = vld [vmem:[%s6689_s3 + $0x1d0] sm:$0xff]  ;;  %v3102_v41 = vld [vmem:[%s6689_s3 + $0x1d8] sm:$0xff] }
 0x134   :  { %347 = vst.msk [vmem:[#allocation2 + $0x48] sm:$0xfc] %vm328_vm9, %v341_v45  ;;  %3994 = vmatpush1.bf16.msra.mxu1 %v3993_v37  ;;  %4028 = vmatprep.subr.bf16.mxu0 %v4588_v5  ;;  %v5066_v53 = vld [vmem:[#allocation2 + $0x10] sm:$0xff]  ;;  %v3099_v34 = vld [vmem:[%s6689_s3 + $0x1c0] sm:$0xff]  ;;  %v4047_v36 = vpack.c.bf16 %v3125_v33, %v3124_v32  ;;  %v4017_v43 = vpack.c.bf16 %v3102_v41, %v3101_v40  ;;  %v3104_v45 = vld [vmem:[%s6689_s3 + $0x1e8] sm:$0xff]  ;;  %v853_v20 = vrot.slane %v820_v16, 2 }
 0x135   :  { %v5055_v50 = vld [vmem:[#allocation2 + $0x18] sm:$0xff]  ;;  %3995 = vmatprep.subr.bf16.mxu1 %v4588_v5  ;;  %v4014_v37 = vpack.c.bf16 %v3100_v35, %v3099_v34  ;;  %v3103_v44 = vld [vmem:[%s6689_s3 + $0x1e0] sm:$0xff]  ;;  %v569_v57 = vld [vmem:[#allocation2 + $0x28] sm:$0x1] }
 0x136   :  { %3084 = vmatprep.mubr.msk.f32.mxu0 %vm401_vm8, %v5055_v50  ;;  %v603_v60 = vrot.slane %v5055_v50, 1  ;;  %v4020_v51 = vpack.c.bf16 %v3104_v45, %v3103_v44  ;;  %v564_v61 = vld [vmem:[#allocation2] sm:$0xfe]  ;;  %v3136_v22 = vld [vmem:[%s6689_s3 + $0x2c8] sm:$0xff]  ;;  %v3138_v26 = vld [vmem:[%s6689_s3 + $0x2d8] sm:$0xff] }
 0x137   :  { %4030 = vmatpush1.bf16.msra.mxu0 %v4029_v46  ;;  %v599_v12 = vrot.slane %v564_v61, 1  ;;  %v3139_v28 = vld [vmem:[%s6689_s3 + $0x2e0] sm:$0xff]  ;;  %v3140_v29 = vld [vmem:[%s6689_s3 + $0x2e8] sm:$0xff]  ;;  %v3142_v32 = vld [vmem:[%s6689_s3 + $0x2f8] sm:$0xff] }
 0x138   :  { %559 = vmatmul.mubr.f32.gmra.mrb[10].mxu0 %v5066_v53  ;;  %3997 = vmatpush1.bf16.msra.mxu1 %v3996_v47  ;;  %v5088_v7 = vld [vmem:[#allocation2 + $0x40] sm:$0xff]  ;;  %v604_v15 = vsel %vm598_vm11, %v602_v1, %v603_v60  ;;  %v692_v47 = vld [vmem:[#allocation2 + $0x30] sm:$0xfe]  ;;  %v3144_v35 = vld [vmem:[%s6689_s3 + $0x308] sm:$0xff] }
 0x139   :  { %4031 = vmatprep.subr.bf16.mxu0 %v4588_v5  ;;  %3998 = vmatprep.subr.bf16.mxu1 %v4588_v5  ;;  %v727_v48 = vrot.slane %v5088_v7, 1  ;;  %v3143_v34 = vld [vmem:[%s6689_s3 + $0x300] sm:$0xff]  ;;  %v3148_v41 = vld [vmem:[%s6689_s3 + $0x328] sm:$0xff]  ;;  %v3150_v44 = vld [vmem:[%s6689_s3 + $0x338] sm:$0xff] }
 0x13a   :  { %v697_v46 = vld [vmem:[#allocation2 + $0x58] sm:$0x1]  ;;  %v3147_v40 = vld [vmem:[%s6689_s3 + $0x320] sm:$0xff]  ;;  %v974_v16 = vld [vmem:[%s6691_s5 + $0x28] sm:$0xff] }
 0x13b   :  { %v5084_v0 = vld [vmem:[#allocation2 + $0x48] sm:$0xff]  ;;  %4033 = vmatpush1.bf16.msra.mxu0 %v4032_v54  ;;  %v734_v52 = vrot.slane %v697_v46, 1  ;;  %v696_v54 = vld [vmem:[#allocation2 + $0x50] sm:$0x1]  ;;  %v3155_v61 = vld [vmem:[%s6691_s5 + $0x58] sm:$0xff] }
 0x13c   :  { %3082 = vmatprep.mubr.msk.f32.mxu1 %vm401_vm8, %v5084_v0  ;;  %4000 = vmatpush1.bf16.msra.mxu1 %v3999_v55  ;;  %v730_v10 = vrot.slane %v5084_v0, 1  ;;  %v726_v55 = vrot.slane %v692_v47, 1  ;;  %v732_v59 = vrot.slane %v696_v54, 1  ;;  %v822_v46 = vld [vmem:[#allocation2 + $0x28] sm:$0x3]  ;;  %v4083_v63 = vpack.c.bf16 %v3156_v62, %v3155_v61 }
 0x13d   :  { %478 = vmatmul.mubr.f32.gmra.mrb[2].mxu1 %v5088_v7  ;;  %4034 = vmatprep.subr.bf16.mxu0 %v4588_v5  ;;  %v3105_v7 = vld [vmem:[%s6689_s3 + $0x1f0] sm:$0xff]  ;;  %v819_v47 = vld [vmem:[#allocation2] sm:$0xfc]  ;;  %v821_v54 = vld [vmem:[#allocation2 + $0x20] sm:$0x3] }
 0x13e   :  { %3106 = vmatprep.mubr.msk.f32.mxu1 %vm401_vm8, %v604_v15  ;;  %v731_v17 = vsel %vm598_vm11, %v729_v9, %v730_v10  ;;  %4001 = vmatprep.subr.bf16.mxu1 %v4588_v5  ;;  %v728_v58 = vsel %vm598_vm11, %v726_v55, %v727_v48  ;;  %v735_v1 = vsel %vm598_vm11, %v730_v10, %v734_v52  ;;  %v607_v9 = vrot.slane %v569_v57, 1  ;;  %v3133_v10 = vld [vmem:[%s6689_s3 + $0x2b0] sm:$0xff] }
 0x13f   :  { %3129 = vmatprep.mubr.msk.f32.mxu0 %vm401_vm8, %v731_v17  ;;  %4036 = vmatpush1.bf16.msra.mxu0 %v4035_v2  ;;  %v600_v2 = vrot.slane %v5066_v53, 1  ;;  %v733_v0 = vsel %vm598_vm11, %v727_v48, %v732_v59  ;;  %v851_v48 = vrot.slane %v5066_v53, 2  ;;  %v858_v52 = vrot.slane %v822_v46, 2 }
 0x140   :  { %4003 = vmatpush1.bf16.msra.mxu1 %v4002_v11  ;;  %4037 = vmatprep.subr.bf16.mxu0 %v4588_v5  ;;  %v568_v11 = vld [vmem:[#allocation2 + $0x20] sm:$0x1]  ;;  %v608_v17 = vsel %vm598_vm11, %v603_v60, %v607_v9  ;;  %v850_v55 = vrot.slane %v819_v47, 2  ;;  %v3158_v9 = vld [vmem:[%s6691_s5 + $0x70] sm:$0xff] }
 0x141   :  { %4004 = vmatprep.subr.bf16.mxu1 %v4588_v5  ;;  %v601_v15 = vsel %vm598_vm11, %v599_v12, %v600_v2  ;;  %v605_v3 = vrot.slane %v568_v11, 1  ;;  %v971_v11 = vld [vmem:[%s6691_s5 + $0x10] sm:$0xff] }
 0x142   :  { %v852_v57 = vsel %vm849_vm12, %v850_v55, %v851_v48 }
 0x143   :  { %4039 = vmatpush1.bf16.msra.mxu0 %v4038_v18  ;;  %v854_v18 = vrot.slane %v5055_v50, 2  ;;  %v606_v60 = vsel %vm598_vm11, %v600_v2, %v605_v3  ;;  %v969_v50 = vld [vmem:[%s6691_s5] sm:$0xff] }
 0x144   :  { %4006 = vmatpush1.bf16.msra.mxu1 %v4005_v19  ;;  %4040 = vmatprep.subr.bf16.mxu0 %v4588_v5 }
 0x145   :  { %4007 = vmatprep.subr.bf16.mxu1 %v4588_v5  ;;  %v855_v23 = vsel %vm849_vm12, %v853_v20, %v854_v18  ;;  %v859_v53 = vsel %vm849_vm12, %v854_v18, %v858_v52  ;;  %v3161_v18 = vld [vmem:[%s6691_s5 + $0x88] sm:$0xff]  ;;  %v975_v20 = vld [vmem:[%s6691_s5 + $0x30] sm:$0xff] }
 0x147   :  { %4042 = vmatpush1.bf16.msra.mxu0 %v4041_v24  ;;  %v4059_v24 = vpack.c.bf16 %v3136_v22, %v3135_v21  ;;  %v976_v22 = vld [vmem:[%s6691_s5 + $0x38] sm:$0xff] }
 0x148   :  { %4009 = vmatpush1.bf16.msra.mxu1 %v4008_v25  ;;  %4043 = vmatprep.subr.bf16.mxu0 %v4588_v5  ;;  %v3137_v25 = vld [vmem:[%s6689_s3 + $0x2d0] sm:$0xff] }
 0x149   :  { %4010 = vmatprep.subr.bf16.mxu1 %v4588_v5  ;;  %v4062_v27 = vpack.c.bf16 %v3138_v26, %v3137_v25  ;;  %v977_v25 = vld [vmem:[%s6691_s5 + $0x40] sm:$0xff] }
 0x14b   :  { %4045 = vmatpush1.bf16.msra.mxu0 %v4044_v30  ;;  %v4065_v30 = vpack.c.bf16 %v3140_v29, %v3139_v28  ;;  %v3165_v29 = vld [vmem:[%s6691_s5 + $0xa8] sm:$0xf] }
 0x14c   :  { %4012 = vmatpush1.bf16.msra.mxu1 %v4011_v31  ;;  %4046 = vmatprep.subr.bf16.mxu0 %v4588_v5  ;;  %v3141_v31 = vld [vmem:[%s6689_s3 + $0x2f0] sm:$0xff] }
 0x14d   :  { %4013 = vmatprep.subr.bf16.mxu1 %v4588_v5  ;;  %v4068_v33 = vpack.c.bf16 %v3142_v32, %v3141_v31 }
 0x14f   :  { %4048 = vmatpush1.bf16.msra.mxu0 %v4047_v36  ;;  %v4071_v36 = vpack.c.bf16 %v3144_v35, %v3143_v34 }
 0x150   :  { %4015 = vmatpush1.bf16.msra.mxu1 %v4014_v37  ;;  %4049 = vmatprep.subr.bf16.mxu0 %v4588_v5  ;;  %v3145_v37 = vld [vmem:[%s6689_s3 + $0x310] sm:$0xff] }
 0x151   :  { %4016 = vmatprep.subr.bf16.mxu1 %v4588_v5  ;;  %v4074_v39 = vpack.c.bf16 %v3146_v38, %v3145_v37 }
 0x153   :  { %4051 = vmatpush1.bf16.msra.mxu0 %v4050_v42  ;;  %v4077_v42 = vpack.c.bf16 %v3148_v41, %v3147_v40 }
 0x154   :  { %4018 = vmatpush1.bf16.msra.mxu1 %v4017_v43  ;;  %782 = vmatprep.subr.mxu0 %v4586_v13  ;;  %v3149_v43 = vld [vmem:[%s6689_s3 + $0x330] sm:$0xff] }
 0x155   :  { %4019 = vmatprep.subr.bf16.mxu1 %v4588_v5  ;;  %v4080_v45 = vpack.c.bf16 %v3150_v44, %v3149_v43 }
 0x157   :  { %783 = vmatpush1.msra.mxu0 %v3128_v49  ;;  %v5281_v49 = vld [vmem:[%s6703_s17] sm:$0xff] }
 0x158   :  { %4021 = vmatpush1.bf16.msra.mxu1 %v4020_v51  ;;  %807 = vmatmul.mubr.f32.vlgmr.msra.gmra.mrb[12].mxu0 %v728_v58  ;;  %v3151_v51 = vld [vmem:[%s6689_s3 + $0x340] sm:$0xff]  ;;  %v856_v58 = vrot.slane %v821_v54, 2  ;;  %72 = vst.msk [vmem:[#allocation3] sm:$0x3] %vm71_vm13, %v5281_v49  ;;  %73 = vst.msk [vmem:[#allocation3 + $0x9] sm:$0x3] %vm71_vm13, %v5281_v49 }
 0x159   :  { %3130 = vmatprep.mubr.msk.f32.mxu0 %vm401_vm8, %v735_v1  ;;  %655 = vmatprep.subr.mxu1 %v4586_v13  ;;  %v3134_v13 = vld [vmem:[%s6689_s3 + $0x2b8] sm:$0xff]  ;;  %v970_v1 = vld [vmem:[%s6691_s5 + $0x8] sm:$0xff]  ;;  %86 = vst.msk [vmem:[#allocation3 + $0xb] sm:$0x3] %vm71_vm13, %v5281_v49  ;;  %87 = vst.msk [vmem:[#allocation3 + $0x14] sm:$0x3] %vm71_vm13, %v5281_v49 }
 0x15a   :  { %4082 = vmatprep.subr.bf16.mxu0 %v4588_v5  ;;  %v4056_v19 = vpack.c.bf16 %v3134_v13, %v3133_v10  ;;  %v857_v59 = vsel %vm849_vm12, %v851_v48, %v856_v58  ;;  %v4098_v2 = vpack.c.bf16 %v970_v1, %v969_v50  ;;  %v3159_v10 = vld [vmem:[%s6691_s5 + $0x78] sm:$0xff]  ;;  %v3160_v13 = vld [vmem:[%s6691_s5 + $0x80] sm:$0xff] }
 0x15b   :  { %4084 = vmatpush3.bf16.msra.mxu0 %v4083_v63  ;;  %v4089_v3 = vpack.c.bf16 %v3160_v13, %v3159_v10  ;;  %v3154_v58 = vld [vmem:[%s6690_s4] ss:$0 sm:$0xff] }
 0x15c   :  { %656 = vmatpush1.msra.mxu1 %v3105_v7  ;;  %812 = vmatmul.mubr.f32.gmra.mrb[14].mxu0 %v733_v0  ;;  %v3157_v7 = vld [vmem:[%s6691_s5 + $0x68] sm:$0xff] }
 0x15d   :  { %680 = vmatmul.mubr.f32.vlgmr.msra.gmra.mrb[4].mxu1 %v601_v15  ;;  %4052 = vmatprep.subr.bf16.mxu1 %v4588_v5  ;;  %v4086_v12 = vpack.c.bf16 %v3158_v9, %v3157_v7  ;;  %v973_v15 = vld [vmem:[%s6691_s5 + $0x20] sm:$0xff] }
 0x15e   :  { %3107 = vmatprep.mubr.msk.f32.mxu1 %vm401_vm8, %v608_v17  ;;  %4054 = vmatpush1.bf16.msra.mxu1 %v4053_v14  ;;  %v972_v14 = vld [vmem:[%s6691_s5 + $0x18] sm:$0xff]  ;;  %v4104_v17 = vpack.c.bf16 %v974_v16, %v973_v15  ;;  %v3174_v15 = vld [vmem:[%s6691_s5 + $0xb0] sm:$0xff]  ;;  %v3189_v16 = vld [vmem:[%s6691_s5 + $0x108] sm:$0xff] }
 0x15f   :  { %4055 = vmatprep.subr.bf16.mxu1 %v4588_v5  ;;  %4085 = vmatprep.subr.bf16.mxu0 %v4588_v5  ;;  %v4101_v0 = vpack.c.bf16 %v972_v14, %v971_v11 }
 0x160   :  { %4087 = vmatpush3.bf16.msra.mxu0 %v4086_v12  ;;  %3657 = vmatprep.mubr.msk.f32.mxu0 %vm4589_vm14, %v5281_v49 }
 0x161   :  { %685 = vmatmul.mubr.f32.gmra.mrb[6].mxu1 %v606_v60  ;;  %4088 = vmatprep.subr.bf16.mxu0 %v4588_v5  ;;  %v4107_v60 = vpack.c.bf16 %v976_v22, %v975_v20  ;;  %v3177_v22 = vld [vmem:[%s6691_s5 + $0xc8] sm:$0xff] }
 0x162   :  { %4057 = vmatpush1.bf16.msra.mxu1 %v4056_v19  ;;  %3152 = vmatprep.mubr.msk.f32.mxu1 %vm401_vm8, %v855_v23  ;;  %v3162_v19 = vld [vmem:[%s6691_s5 + $0x90] sm:$0xff]  ;;  %v3163_v23 = vld [vmem:[%s6691_s5 + $0x98] sm:$0xff] }
 0x163   :  { %4058 = vmatprep.subr.bf16.mxu1 %v4588_v5  ;;  %v4092_v21 = vpack.c.bf16 %v3162_v19, %v3161_v18 }
 0x164   :  { %4090 = vmatpush3.bf16.msra.mxu0 %v4089_v3  ;;  %v3175_v3 = vld [vmem:[%s6691_s5 + $0xb8] sm:$0xff] }
 0x165   :  { %4091 = vmatprep.subr.bf16.mxu0 %v4588_v5  ;;  %v4113_v19 = vpack.c.bf16 %v3175_v3, %v3174_v15  ;;  %v3213_v15 = vld [vmem:[%s6691_s5 + $0x1a8] sm:$0xff] }
 0x166   :  { %4060 = vmatpush1.bf16.msra.mxu1 %v4059_v24  ;;  %v3164_v24 = vld [vmem:[%s6691_s5 + $0xa0] sm:$0xff] }
 0x167   :  { %4061 = vmatprep.subr.bf16.mxu1 %v4588_v5  ;;  %v4095_v26 = vpack.c.bf16 %v3164_v24, %v3163_v23  ;;  %v3192_v23 = vld [vmem:[%s6691_s5 + $0x120] sm:$0xff] }
 0x168   :  { %4093 = vmatpush3.bf16.msra.mxu0 %v4092_v21  ;;  %v3176_v21 = vld [vmem:[%s6691_s5 + $0xc0] sm:$0xff] }
 0x169   :  { %4094 = vmatprep.subr.bf16.mxu0 %v4588_v5 }
 0x16a   :  { %4063 = vmatpush1.bf16.msra.mxu1 %v4062_v27  ;;  %v978_v27 = vld [vmem:[%s6691_s5 + $0x48] sm:$0xff] }
 0x16b   :  { %4064 = vmatprep.subr.bf16.mxu1 %v4588_v5  ;;  %v4110_v28 = vpack.c.bf16 %v978_v27, %v977_v25 }
 0x16c   :  { %4096 = vmatpush3.bf16.msra.mxu0 %v4095_v26  ;;  %v4116_v26 = vpack.c.bf16 %v3177_v22, %v3176_v21  ;;  %v1641_v21 = vld [vmem:[%s6693_s7 + $0x88] sm:$0xff] }
 0x16d   :  { %3655 = vmatprep.subr.mxu0 %v5281_v49 }
 0x16e   :  { %4066 = vmatpush1.bf16.msra.mxu1 %v4065_v30  ;;  %v979_v30 = vld [vmem:[%s6691_s5 + $0x50] sm:$0xf] }
 0x16f   :  { %4067 = vmatprep.subr.bf16.mxu1 %v4588_v5 }
 0x170   :  { %3656 = vmatpush3.msk.msra.mxu0 %vm157_vm2, %v3165_v29  ;;  %v3179_v29 = vld [vmem:[%s6691_s5 + $0xd8] sm:$0xff] }
 0x171   :  { %4112 = vmatprep.subr.bf16.mxu0 %v4588_v5 }
 0x172   :  { %4069 = vmatpush1.bf16.msra.mxu1 %v4068_v33 }
 0x173   :  { %4070 = vmatprep.subr.bf16.mxu1 %v4588_v5 }
 0x176   :  { %4072 = vmatpush1.bf16.msra.mxu1 %v4071_v36 }
 0x177   :  { %4073 = vmatprep.subr.bf16.mxu1 %v4588_v5 }
 0x17a   :  { %4075 = vmatpush1.bf16.msra.mxu1 %v4074_v39 }
 0x17b   :  { %4076 = vmatprep.subr.bf16.mxu1 %v4588_v5 }
 0x17e   :  { %4078 = vmatpush1.bf16.msra.mxu1 %v4077_v42 }
 0x17f   :  { %4079 = vmatprep.subr.bf16.mxu1 %v4588_v5 }
 0x182   :  { %4081 = vmatpush1.bf16.msra.mxu1 %v4080_v45 }
 0x183   :  { %906 = vmatprep.subr.mxu1 %v5281_v49 }
 0x186   :  { %907 = vmatpush1.msra.mxu1 %v3151_v51 }
 0x187   :  { %931 = vmatmul.mubr.f32.vlgmr.msra.gmra.mrb[8].mxu1 %v852_v57  ;;  %4097 = vmatprep.subr.bf16.mxu1 %v4588_v5 }
 0x188   :  { %3153 = vmatprep.mubr.msk.f32.mxu1 %vm401_vm8, %v859_v53  ;;  %4099 = vmatpush3.bf16.msra.mxu1 %v4098_v2 }
 0x189   :  { %4100 = vmatprep.subr.bf16.mxu1 %v4588_v5 }
 0x18b   :  { %936 = vmatmul.mubr.f32.gmra.mrb[10].mxu1 %v857_v59 }
 0x18c   :  { %4102 = vmatpush3.bf16.msra.mxu1 %v4101_v0  ;;  %3688 = vmatprep.mubr.msk.f32.mxu1 %vm4589_vm14, %v5281_v49 }
 0x18d   :  { %4103 = vmatprep.subr.bf16.mxu1 %v4588_v5 }
 0x190   :  { %4105 = vmatpush3.bf16.msra.mxu1 %v4104_v17  ;;  %v3190_v17 = vld [vmem:[%s6691_s5 + $0x110] sm:$0xff] }
 0x191   :  { %4106 = vmatprep.subr.bf16.mxu1 %v4588_v5  ;;  %v4128_v20 = vpack.c.bf16 %v3190_v17, %v3189_v16  ;;  %v3214_v16 = vld [vmem:[%s6691_s5 + $0x1b0] sm:$0xf] }
 0x194   :  { %4108 = vmatpush3.bf16.msra.mxu1 %v4107_v60  ;;  %v3191_v60 = vld [vmem:[%s6691_s5 + $0x118] sm:$0xff] }
 0x195   :  { %4109 = vmatprep.subr.bf16.mxu1 %v4588_v5  ;;  %v4131_v27 = vpack.c.bf16 %v3192_v23, %v3191_v60  ;;  %v1624_v60 = vld [vmem:[%s6693_s7] sm:$0xff]  ;;  %v1625_v23 = vld [vmem:[%s6693_s7 + $0x8] sm:$0xff] }
 0x198   :  { %4111 = vmatpush3.bf16.msra.mxu1 %v4110_v28  ;;  %v3178_v28 = vld [vmem:[%s6691_s5 + $0xd0] sm:$0xff] }
 0x199   :  { %3686 = vmatprep.subr.mxu1 %v5281_v49 }
 0x19c   :  { %3687 = vmatpush3.msk.msra.mxu1 %vm157_vm2, %v979_v30  ;;  %v3193_v30 = vld [vmem:[%s6691_s5 + $0x128] sm:$0xff] }
 0x19d   :  { %4127 = vmatprep.subr.bf16.mxu1 %v4588_v5 }
 0x201   :  { %v555_v31 = vpop.f32.mrb[8].mxu0 }
 0x202   :  { %v557_v32 = vpop.f32.mrb[9].mxu0 }
 0x206   :  { %v474_v33 = vpop.f32.mrb[0].mxu1 }
 0x207   :  { %v556_v34 = vadd.f32 %v555_v31, %v474_v33  ;;  %v476_v35 = vpop.f32.mrb[1].mxu1  ;;  %v3194_v31 = vld [vmem:[%s6691_s5 + $0x130] sm:$0xff] }
 0x208   :  { %v4134_v35 = vpack.c.bf16 %v3194_v31, %v3193_v30  ;;  %v1642_v31 = vld [vmem:[%s6693_s7 + $0x90] sm:$0xff] }
 0x20b   :  { %v560_v36 = vpop.f32.mrb[10].mxu0 }
 0x20c   :  { %v562_v37 = vpop.f32.mrb[11].mxu0 }
 0x20d   :  { %v3181_v37 = vld [vmem:[%s6691_s5 + $0xe8] sm:$0xff] }
 0x210   :  { %v479_v38 = vpop.f32.mrb[2].mxu1 }
 0x211   :  { %v561_v39 = vadd.f32 %v560_v36, %v479_v38  ;;  %v481_v40 = vpop.f32.mrb[3].mxu1  ;;  %v3180_v36 = vld [vmem:[%s6691_s5 + $0xe0] sm:$0xff]  ;;  %v3195_v38 = vld [vmem:[%s6691_s5 + $0x138] sm:$0xff] }
 0x22b   :  { %v808_v41 = vpop.f32.mrb[12].mxu0 }
 0x22c   :  { %v810_v42 = vpop.f32.mrb[13].mxu0 }
 0x22d   :  { %v4122_v42 = vpack.c.bf16 %v3181_v37, %v3180_v36  ;;  %v1674_v37 = vld [vmem:[%s6693_s7 + $0x190] sm:$0xff] }
 0x22f   :  { %v813_v43 = vpop.f32.mrb[14].mxu0 }
 0x230   :  { %v681_v44 = vpop.f32.mrb[4].mxu1  ;;  %v815_v45 = vpop.f32.mrb[15].mxu0 }
 0x231   :  { %v690_v46 = vadd.f32 %v681_v44, %v556_v34  ;;  %v683_v47 = vpop.f32.mrb[5].mxu1  ;;  %v4119_v34 = vpack.c.bf16 %v3179_v29, %v3178_v28  ;;  %v3182_v44 = vld [vmem:[%s6691_s5 + $0xf0] sm:$0xff]  ;;  %v3183_v45 = vld [vmem:[%s6691_s5 + $0xf8] sm:$0xff]  ;;  %v1656_v28 = vld [vmem:[%s6693_s7 + $0x100] sm:$0xff] }
 0x232   :  { %v3198_v47 = vld [vmem:[%s6691_s5 + $0x150] sm:$0xff]  ;;  %v1657_v29 = vld [vmem:[%s6693_s7 + $0x108] sm:$0xff] }
 0x233   :  { %v817_v48 = vadd.f32 %v808_v41, %v690_v46  ;;  %v3197_v46 = vld [vmem:[%s6691_s5 + $0x148] sm:$0xff]  ;;  %v4191_v30 = vpack.c.bf16 %v1657_v29, %v1656_v28  ;;  %v1683_v28 = vld [vmem:[%s6693_s7 + $0x1d8] sm:$0xff] }
 0x234   :  { %v686_v51 = vpop.f32.mrb[6].mxu1 }
 0x235   :  { %v691_v52 = vadd.f32 %v686_v51, %v561_v39  ;;  %v688_v54 = vpop.f32.mrb[7].mxu1  ;;  %v3196_v39 = vld [vmem:[%s6691_s5 + $0x140] sm:$0xff]  ;;  %v4140_v51 = vpack.c.bf16 %v3198_v47, %v3197_v46  ;;  %v1629_v47 = vld [vmem:[%s6693_s7 + $0x28] sm:$0xff] }
 0x236   :  { %v3205_v54 = vld [vmem:[%s6691_s5 + $0x168] sm:$0xff]  ;;  %v1628_v46 = vld [vmem:[%s6693_s7 + $0x20] sm:$0xff] }
 0x237   :  { %v818_v55 = vadd.f32 %v813_v43, %v691_v52  ;;  %v4137_v43 = vpack.c.bf16 %v3196_v39, %v3195_v38  ;;  %v3204_v52 = vld [vmem:[%s6691_s5 + $0x160] sm:$0xff]  ;;  %v1675_v38 = vld [vmem:[%s6693_s7 + $0x198] sm:$0xff] }
 0x238   :  { %v4193_v39 = vpack.c.bf16 %v1675_v38, %v1674_v37  ;;  %v1637_v37 = vld [vmem:[%s6693_s7 + $0x68] sm:$0xff]  ;;  %v1684_v38 = vld [vmem:[%s6693_s7 + $0x1e0] sm:$0xff] }
 0x25a   :  { %v932_v57 = vpop.f32.mrb[8].mxu1 }
 0x25b   :  { %v941_v53 = vadd.f32 %v932_v57, %v817_v48  ;;  %v934_v59 = vpop.f32.mrb[9].mxu1  ;;  %v4125_v48 = vpack.c.bf16 %v3183_v45, %v3182_v44  ;;  %v3199_v57 = vld [vmem:[%s6691_s5 + $0x158] sm:$0xf]  ;;  %v1645_v44 = vld [vmem:[%s6693_s7 + $0xa8] sm:$0xff] }
 0x25d   :  { %v950_v61 = vadd.f32 %v3154_v58, %v941_v53  ;;  %v3206_v53 = vld [vmem:[%s6691_s5 + $0x170] sm:$0xff] }
 0x25e   :  { %v937_v62 = vpop.f32.mrb[10].mxu1 }
 0x25f   :  { %v952_v50 = vsub.f32 0.0, %v950_v61  ;;  %v942_v63 = vadd.f32 %v937_v62, %v818_v55  ;;  %v939_v1 = vpop.f32.mrb[11].mxu1  ;;  %v3184_v55 = vld [vmem:[%s6691_s5 + $0x100] sm:$0xf]  ;;  %v3207_v62 = vld [vmem:[%s6691_s5 + $0x178] sm:$0xff] }
 0x261   :  { %v954_v2 = vmul.f32 1.442695, %v952_v50  ;;  %v951_v7 = vadd.f32 %v3154_v58, %v942_v63  ;;  %v4143_v58 = vpack.c.bf16 %v3205_v54, %v3204_v52  ;;  %v4146_v50 = vpack.c.bf16 %v3207_v62, %v3206_v53  ;;  %v3208_v63 = vld [vmem:[%s6691_s5 + $0x180] sm:$0xff]  ;;  %v1677_v52 = vld [vmem:[%s6693_s7 + $0x1a8] sm:$0xff]  ;;  %v1646_v53 = vld [vmem:[%s6693_s7 + $0xb0] sm:$0xff] }
 0x262   :  { %v1630_v62 = vld [vmem:[%s6693_s7 + $0x30] sm:$0xff] }
 0x263   :  { %4539 = vpow2.f32 %v954_v2  ;;  %v953_v9 = vsub.f32 0.0, %v951_v7  ;;  %v3209_v7 = vld [vmem:[%s6691_s5 + $0x188] sm:$0xff] }
 0x265   :  { %v956_v11 = vmul.f32 1.442695, %v953_v9  ;;  %v4149_v9 = vpack.c.bf16 %v3209_v7, %v3208_v63 }
 0x267   :  { %4541 = vpow2.f32 %v956_v11  ;;  %v3210_v11 = vld [vmem:[%s6691_s5 + $0x190] sm:$0xff] }
 0x26d   :  { %v4540_v12 = vpop.eup %4539 }
 0x26e   :  { %v958_v14 = vadd.f32 1.0, %v4540_v12 }
 0x270   :  { %4543 = vrcp.f32 %v958_v14 }
 0x271   :  { %v4542_v0 = vpop.eup %4541 }
 0x272   :  { %v959_v10 = vadd.f32 1.0, %v4542_v0  ;;  %v3211_v0 = vld [vmem:[%s6691_s5 + $0x198] sm:$0xff] }
 0x274   :  { %4545 = vrcp.f32 %v959_v10  ;;  %v4152_v10 = vpack.c.bf16 %v3211_v0, %v3210_v11  ;;  %v1663_v11 = vld [vmem:[%s6693_s7 + $0x138] sm:$0xff]  ;;  %v1649_v0 = vld [vmem:[%s6693_s7 + $0xc8] sm:$0xff] }
 0x27a   :  { %v4544_v13 = vpop.eup %4543 }
 0x27b   :  { %963 = vst.msk [vmem:[#allocation3 + $0x2] sm:$0x7f] %vm962_vm15, %v4544_v13  ;;  %v3212_v13 = vld [vmem:[%s6691_s5 + $0x1a0] sm:$0xff] }
 0x27c   :  { %v4155_v3 = vpack.c.bf16 %v3213_v15, %v3212_v13  ;;  %v1632_v13 = vld [vmem:[%s6693_s7 + $0x40] sm:$0xff]  ;;  %v1633_v15 = vld [vmem:[%s6693_s7 + $0x48] sm:$0xff] }
 0x27e   :  { %v4546_v18 = vpop.eup %4545 }
 0x27f   :  { %965 = vst.msk [vmem:[#allocation3 + $0xc] sm:$0xfe] %vm964_vm0, %v4546_v18 }
 0x282   :  { %v980_v24 = vld [vmem:[#allocation3 + $0x1] sm:$0xff] }
 0x283   :  { %v966_v25 = vld [vmem:[#allocation3] sm:$0xff]  ;;  %3658 = vmatmul.mubr.msk.f32.vlgmr.msra.gmra.mrb[16].mxu0 %vm995_vm1, %v980_v24  ;;  %v4159_v24 = vpack.c.bf16 %v1625_v23, %v1624_v60  ;;  %v1651_v60 = vld [vmem:[%s6693_s7 + $0xd8] sm:$0xff] }
 0x284   :  { %3689 = vmatmul.mubr.msk.f32.vlgmr.msra.gmra.mrb[12].mxu1 %vm995_vm1, %v966_v25  ;;  %4114 = vmatpush3.bf16.msra.mxu0 %v4113_v19  ;;  %v1180_v59 = vld [vmem:[#allocation3 + $0x2] sm:$0xff]  ;;  %v1402_v19 = vld [vmem:[#allocation3 + $0x14] sm:$0x3] }
 0x285   :  { %4129 = vmatpush3.bf16.msra.mxu1 %v4128_v20  ;;  %3660 = vmatprep.mubr.msk.f32.mxu0 %vm4589_vm14, %v5281_v49  ;;  %v1290_v61 = vld [vmem:[#allocation3 + $0x3] sm:$0xff] }
 0x286   :  { %3691 = vmatprep.mubr.msk.f32.mxu1 %vm4589_vm14, %v5281_v49  ;;  %4115 = vmatprep.subr.bf16.mxu0 %v4588_v5  ;;  %v981_v32 = vld [vmem:[#allocation3 + $0x9] sm:$0xff]  ;;  %v982_v40 = vld [vmem:[#allocation3 + $0x11] sm:$0x3]  ;;  %v1292_v14 = vld [vmem:[#allocation3 + $0x13] sm:$0x3] }
 0x287   :  { %4130 = vmatprep.subr.bf16.mxu1 %v4588_v5  ;;  %v967_v33 = vld [vmem:[#allocation3 + $0x8] sm:$0xff]  ;;  %3661 = vmatmul.mubr.msk.f32.gmra.mrb[18].mxu0 %vm995_vm1, %v981_v32  ;;  %v968_v41 = vld [vmem:[#allocation3 + $0x10] sm:$0x3]  ;;  %v1182_v12 = vld [vmem:[#allocation3 + $0x12] sm:$0x3] }
 0x288   :  { %3692 = vmatmul.mubr.msk.f32.gmra.mrb[14].mxu1 %vm995_vm1, %v967_v33  ;;  %4117 = vmatpush3.bf16.msra.mxu0 %v4116_v26  ;;  %v1181_v1 = vld [vmem:[#allocation3 + $0xa] sm:$0xff]  ;;  %v1640_v20 = vld [vmem:[%s6693_s7 + $0x80] sm:$0xff]  ;;  %v1643_v32 = vld [vmem:[%s6693_s7 + $0x98] sm:$0xff] }
 0x289   :  { %4132 = vmatpush3.bf16.msra.mxu1 %v4131_v27  ;;  %3663 = vmatprep.mubr.msk.f32.mxu0 %vm4589_vm14, %v5281_v49  ;;  %v1291_v2 = vld [vmem:[#allocation3 + $0xb] sm:$0xff]  ;;  %v4157_v22 = vpack.c.bf16 %v1641_v21, %v1640_v20  ;;  %v1672_v25 = vld [vmem:[%s6693_s7 + $0x180] sm:$0xff]  ;;  %v4161_v33 = vpack.c.bf16 %v1643_v32, %v1642_v31  ;;  %v1667_v31 = vld [vmem:[%s6693_s7 + $0x158] sm:$0xff] }
 0x28a   :  { %3694 = vmatprep.mubr.msk.f32.mxu1 %vm4589_vm14, %v5281_v49  ;;  %4118 = vmatprep.subr.bf16.mxu0 %v4588_v5  ;;  %v1400_v17 = vld [vmem:[#allocation3 + $0x4] sm:$0xff]  ;;  %v1401_v18 = vld [vmem:[#allocation3 + $0xc] sm:$0xff] }
 0x28b   :  { %4133 = vmatprep.subr.bf16.mxu1 %v4588_v5  ;;  %3664 = vmatmul.mubr.msk.f32.gmra.mrb[20].mxu0 %vm995_vm1, %v982_v40  ;;  %v1673_v26 = vld [vmem:[%s6693_s7 + $0x188] sm:$0xff]  ;;  %v1658_v40 = vld [vmem:[%s6693_s7 + $0x110] sm:$0xff] }
 0x28c   :  { %3695 = vmatmul.mubr.msk.f32.gmra.mrb[16].mxu1 %vm995_vm1, %v968_v41  ;;  %4120 = vmatpush3.bf16.msra.mxu0 %v4119_v34  ;;  %v4189_v27 = vpack.c.bf16 %v1673_v26, %v1672_v25  ;;  %v1626_v34 = vld [vmem:[%s6693_s7 + $0x10] sm:$0xff]  ;;  %v1659_v41 = vld [vmem:[%s6693_s7 + $0x118] sm:$0xff]  ;;  %v1665_v20 = vld [vmem:[%s6693_s7 + $0x148] sm:$0xff] }
 0x28d   :  { %4135 = vmatpush3.bf16.msra.mxu1 %v4134_v35  ;;  %4121 = vmatprep.subr.bf16.mxu0 %v4588_v5  ;;  %v1627_v35 = vld [vmem:[%s6693_s7 + $0x18] sm:$0xff] }
 0x28e   :  { %4136 = vmatprep.subr.bf16.mxu1 %v4588_v5  ;;  %3719 = vmatprep.mubr.msk.f32.mxu0 %vm4589_vm14, %v5281_v49  ;;  %v4163_v36 = vpack.c.bf16 %v1627_v35, %v1626_v34  ;;  %v1635_v25 = vld [vmem:[%s6693_s7 + $0x58] sm:$0xff]  ;;  %v1653_v34 = vld [vmem:[%s6693_s7 + $0xe8] sm:$0xff] }
 0x28f   :  { %3750 = vmatprep.mubr.msk.f32.mxu1 %vm4589_vm14, %v5281_v49 }
 0x290   :  { %4123 = vmatpush3.bf16.msra.mxu0 %v4122_v42  ;;  %v4195_v42 = vpack.c.bf16 %v1659_v41, %v1658_v40  ;;  %v1685_v40 = vld [vmem:[%s6693_s7 + $0x1e8] sm:$0xff]  ;;  %v1668_v41 = vld [vmem:[%s6693_s7 + $0x160] sm:$0xff] }
 0x291   :  { %4138 = vmatpush3.bf16.msra.mxu1 %v4137_v43  ;;  %4124 = vmatprep.subr.bf16.mxu0 %v4588_v5  ;;  %v1644_v43 = vld [vmem:[%s6693_s7 + $0xa0] sm:$0xff] }
 0x292   :  { %4139 = vmatprep.subr.bf16.mxu1 %v4588_v5  ;;  %v4165_v45 = vpack.c.bf16 %v1645_v44, %v1644_v43  ;;  %v4213_v43 = vpack.c.bf16 %v1685_v40, %v1684_v38 }
 0x294   :  { %4126 = vmatpush3.bf16.msra.mxu0 %v4125_v48  ;;  %v4167_v48 = vpack.c.bf16 %v1629_v47, %v1628_v46  ;;  %v1655_v46 = vld [vmem:[%s6693_s7 + $0xf8] sm:$0xff]  ;;  %v1638_v47 = vld [vmem:[%s6693_s7 + $0x70] sm:$0xff] }
 0x295   :  { %4141 = vmatpush3.bf16.msra.mxu1 %v4140_v51  ;;  %3717 = vmatprep.subr.mxu0 %v5281_v49  ;;  %v1676_v51 = vld [vmem:[%s6693_s7 + $0x1a0] sm:$0xff] }
 0x296   :  { %3748 = vmatprep.subr.mxu1 %v5281_v49  ;;  %v4197_v54 = vpack.c.bf16 %v1677_v52, %v1676_v51  ;;  %v1639_v51 = vld [vmem:[%s6693_s7 + $0x78] sm:$0xff]  ;;  %v1686_v52 = vld [vmem:[%s6693_s7 + $0x1f0] sm:$0xff] }
 0x298   :  { %3718 = vmatpush3.msk.msra.mxu0 %vm157_vm2, %v3184_v55  ;;  %v1660_v55 = vld [vmem:[%s6693_s7 + $0x120] sm:$0xff] }
 0x299   :  { %3749 = vmatpush3.msk.msra.mxu1 %vm157_vm2, %v3199_v57  ;;  %3720 = vmatmul.mubr.msk.f32.vlgmr.msra.gmra.mrb[22].mxu0 %vm995_vm1, %v1180_v59  ;;  %v1661_v57 = vld [vmem:[%s6693_s7 + $0x128] sm:$0xff]  ;;  %v1647_v59 = vld [vmem:[%s6693_s7 + $0xb8] sm:$0xff] }
 0x29a   :  { %3751 = vmatmul.mubr.msk.f32.vlgmr.msra.gmra.mrb[18].mxu1 %vm995_vm1, %v1290_v61  ;;  %4142 = vmatprep.subr.bf16.mxu0 %v4588_v5  ;;  %v4169_v61 = vpack.c.bf16 %v1647_v59, %v1646_v53  ;;  %v1671_v53 = vld [vmem:[%s6693_s7 + $0x178] sm:$0xff] }
 0x29b   :  { %3722 = vmatprep.mubr.msk.f32.mxu0 %vm4589_vm14, %v5281_v49  ;;  %4144 = vmatpush3.bf16.msra.mxu0 %v4143_v58  ;;  %v4199_v58 = vpack.c.bf16 %v1661_v57, %v1660_v55  ;;  %v4187_v55 = vpack.c.bf16 %v1639_v51, %v1638_v47 }
 0x29c   :  { %3753 = vmatprep.mubr.msk.f32.mxu1 %vm4589_vm14, %v5281_v49  ;;  %4145 = vmatprep.subr.bf16.mxu0 %v4588_v5 }
 0x29d   :  { %3723 = vmatmul.mubr.msk.f32.gmra.mrb[24].mxu0 %vm995_vm1, %v1181_v1  ;;  %4158 = vmatprep.subr.bf16.mxu1 %v4157_v22  ;;  %v1678_v1 = vld [vmem:[%s6693_s7 + $0x1b0] sm:$0xff] }
 0x29e   :  { %3754 = vmatmul.mubr.msk.f32.gmra.mrb[20].mxu1 %vm995_vm1, %v1291_v2  ;;  %3725 = vmatprep.mubr.msk.f32.mxu0 %vm4589_vm14, %v5281_v49  ;;  %v1679_v2 = vld [vmem:[%s6693_s7 + $0x1b8] sm:$0xff]  ;;  %v1650_v22 = vld [vmem:[%s6693_s7 + $0xd0] sm:$0xff] }
 0x29f   :  { %3756 = vmatprep.mubr.msk.f32.mxu1 %vm4589_vm14, %v5281_v49  ;;  %4147 = vmatpush3.bf16.msra.mxu0 %v4146_v50  ;;  %v1631_v50 = vld [vmem:[%s6693_s7 + $0x38] sm:$0xff]  ;;  %v4201_v7 = vpack.c.bf16 %v1679_v2, %v1678_v1  ;;  %v4177_v23 = vpack.c.bf16 %v1651_v60, %v1650_v22 }
 0x2a0   :  { %4148 = vmatprep.subr.bf16.mxu0 %v4588_v5  ;;  %4160 = vmatpush3.bf16.msra.mxu1 %v4159_v24  ;;  %v4171_v63 = vpack.c.bf16 %v1631_v50, %v1630_v62  ;;  %v1634_v24 = vld [vmem:[%s6693_s7 + $0x50] sm:$0xff]  ;;  %v1705_v62 = vld [vmem:[%s6693_s7 + $0x288] sm:$0xff] }
 0x2a1   :  { %3726 = vmatmul.mubr.msk.f32.gmra.mrb[26].mxu0 %vm995_vm1, %v1182_v12  ;;  %4162 = vmatprep.subr.bf16.mxu1 %v4161_v33  ;;  %v4179_v26 = vpack.c.bf16 %v1635_v25, %v1634_v24  ;;  %v1652_v33 = vld [vmem:[%s6693_s7 + $0xe0] sm:$0xff] }
 0x2a2   :  { %3757 = vmatmul.mubr.msk.f32.gmra.mrb[22].mxu1 %vm995_vm1, %v1292_v14  ;;  %3781 = vmatprep.mubr.msk.f32.mxu0 %vm4589_vm14, %v5281_v49  ;;  %v1648_v14 = vld [vmem:[%s6693_s7 + $0xc0] sm:$0xff]  ;;  %v4181_v35 = vpack.c.bf16 %v1653_v34, %v1652_v33 }
 0x2a3   :  { %4150 = vmatpush3.bf16.msra.mxu0 %v4149_v9  ;;  %v1662_v9 = vld [vmem:[%s6693_s7 + $0x130] sm:$0xff] }
 0x2a4   :  { %4151 = vmatprep.subr.bf16.mxu0 %v4588_v5  ;;  %4164 = vmatpush3.bf16.msra.mxu1 %v4163_v36  ;;  %v4203_v12 = vpack.c.bf16 %v1663_v11, %v1662_v9  ;;  %v1636_v36 = vld [vmem:[%s6693_s7 + $0x60] sm:$0xff] }
 0x2a5   :  { %4166 = vmatprep.subr.bf16.mxu1 %v4165_v45  ;;  %v1654_v45 = vld [vmem:[%s6693_s7 + $0xf0] sm:$0xff] }
 0x2a7   :  { %4153 = vmatpush3.bf16.msra.mxu0 %v4152_v10  ;;  %v4173_v10 = vpack.c.bf16 %v1649_v0, %v1648_v14 }
 0x2a8   :  { %4154 = vmatprep.subr.bf16.mxu0 %v4588_v5  ;;  %4168 = vmatpush3.bf16.msra.mxu1 %v4167_v48  ;;  %v4185_v48 = vpack.c.bf16 %v1655_v46, %v1654_v45 }
 0x2a9   :  { %4170 = vmatprep.subr.bf16.mxu1 %v4169_v61  ;;  %v1704_v61 = vld [vmem:[%s6693_s7 + $0x280] sm:$0xff] }
 0x2aa   :  { %v4221_v50 = vpack.c.bf16 %v1705_v62, %v1704_v61 }
 0x2ab   :  { %4156 = vmatpush3.bf16.msra.mxu0 %v4155_v3  ;;  %v4175_v3 = vpack.c.bf16 %v1633_v15, %v1632_v13 }
 0x2ac   :  { %3779 = vmatprep.subr.mxu0 %v5281_v49  ;;  %4172 = vmatpush3.bf16.msra.mxu1 %v4171_v63 }
 0x2ad   :  { %4174 = vmatprep.subr.bf16.mxu1 %v4173_v10 }
 0x2af   :  { %3780 = vmatpush3.msk.msra.mxu0 %vm157_vm2, %v3214_v16  ;;  %v1680_v16 = vld [vmem:[%s6693_s7 + $0x1c0] sm:$0xff]  ;;  %vm1537_vm2 = vcmask 679936  }
 0x2b0   :  { %3782 = vmatmul.mubr.msk.f32.vlgmr.msra.gmra.mrb[28].mxu0 %vm995_vm1, %v1400_v17  ;;  %4190 = vmatprep.subr.bf16.mxu0 %v4189_v27  ;;  %v1681_v17 = vld [vmem:[%s6693_s7 + $0x1c8] sm:$0xff]  ;;  %v1682_v27 = vld [vmem:[%s6693_s7 + $0x1d0] sm:$0xff] }
 0x2b1   :  { %3784 = vmatprep.mubr.msk.f32.mxu0 %vm4589_vm14, %v5281_v49  ;;  %4192 = vmatpush3.bf16.msra.mxu0 %v4191_v30  ;;  %v4209_v29 = vpack.c.bf16 %v1683_v28, %v1682_v27  ;;  %v1666_v30 = vld [vmem:[%s6693_s7 + $0x150] sm:$0xff] }
 0x2b2   :  { %4194 = vmatprep.subr.bf16.mxu0 %v4193_v39  ;;  %4176 = vmatpush3.bf16.msra.mxu1 %v4175_v3  ;;  %v4211_v32 = vpack.c.bf16 %v1667_v31, %v1666_v30  ;;  %v4183_v39 = vpack.c.bf16 %v1637_v37, %v1636_v36  ;;  %v3219_v36 = vld [vmem:[%s6692_s6] ss:$0 sm:$0xff] }
 0x2b3   :  { %4178 = vmatprep.subr.bf16.mxu1 %v4177_v23 }
 0x2b4   :  { %3785 = vmatmul.mubr.msk.f32.gmra.mrb[30].mxu0 %vm995_vm1, %v1401_v18  ;;  %v4205_v18 = vpack.c.bf16 %v1681_v17, %v1680_v16 }
 0x2b5   :  { %3787 = vmatprep.mubr.msk.f32.mxu0 %vm4589_vm14, %v5281_v49  ;;  %4196 = vmatpush3.bf16.msra.mxu0 %v4195_v42  ;;  %v1669_v42 = vld [vmem:[%s6693_s7 + $0x168] sm:$0xff] }
 0x2b6   :  { %4198 = vmatprep.subr.bf16.mxu0 %v4197_v54  ;;  %4180 = vmatpush3.bf16.msra.mxu1 %v4179_v26  ;;  %v4215_v44 = vpack.c.bf16 %v1669_v42, %v1668_v41  ;;  %v1687_v54 = vld [vmem:[%s6693_s7 + $0x1f8] sm:$0xff] }
 0x2b7   :  { %4182 = vmatprep.subr.bf16.mxu1 %v4181_v35  ;;  %v4217_v57 = vpack.c.bf16 %v1687_v54, %v1686_v52 }
 0x2b8   :  { %3788 = vmatmul.mubr.msk.f32.gmra.mrb[32].mxu0 %vm995_vm1, %v1402_v19  ;;  %v1664_v19 = vld [vmem:[%s6693_s7 + $0x140] sm:$0xff] }
 0x2b9   :  { %4200 = vmatpush3.bf16.msra.mxu0 %v4199_v58  ;;  %v4207_v21 = vpack.c.bf16 %v1665_v20, %v1664_v19  ;;  %v1670_v58 = vld [vmem:[%s6693_s7 + $0x170] sm:$0xff] }
 0x2ba   :  { %4202 = vmatprep.subr.bf16.mxu0 %v4201_v7  ;;  %4184 = vmatpush3.bf16.msra.mxu1 %v4183_v39  ;;  %v4219_v59 = vpack.c.bf16 %v1671_v53, %v1670_v58 }
 0x2bb   :  { %4186 = vmatprep.subr.bf16.mxu1 %v4185_v48 }
 0x2bd   :  { %4204 = vmatpush3.bf16.msra.mxu0 %v4203_v12 }
 0x2be   :  { %4206 = vmatprep.subr.bf16.mxu0 %v4205_v18  ;;  %4188 = vmatpush3.bf16.msra.mxu1 %v4187_v55 }
 0x2bf   :  { %4222 = vmatprep.subr.bf16.mxu1 %v4221_v50 }
 0x2c1   :  { %4208 = vmatpush3.bf16.msra.mxu0 %v4207_v21 }
 0x2c2   :  { %4210 = vmatprep.subr.bf16.mxu0 %v4209_v29 }
 0x2c5   :  { %4212 = vmatpush3.bf16.msra.mxu0 %v4211_v32 }
 0x2c6   :  { %4214 = vmatprep.subr.bf16.mxu0 %v4213_v43 }
 0x2c9   :  { %4216 = vmatpush3.bf16.msra.mxu0 %v4215_v44 }
 0x2ca   :  { %4218 = vmatprep.subr.bf16.mxu0 %v4217_v57 }
 0x2cd   :  { %4220 = vmatpush3.bf16.msra.mxu0 %v4219_v59  ;;  %v4590_v59 = vmov 1983009808  }
 0x2ce   :  { %4253 = vmatprep.subr.bf16.mxu0 %v4588_v5  ;;  %v1541_v61 = vunpack.c.l.s4 %v4590_v59  ;;  %v1710_v59 = vld [vmem:[%s6693_s7 + $0x2b0] sm:$0xff] }
 0x356   :  { %v1074_v63 = vpop.f32.mrb[16].mxu0 }
 0x357   :  { %v1166_v1 = vpop.f32.mrb[12].mxu1  ;;  %v3659_v7 = vpop.f32.mrb[17].mxu0 }
 0x358   :  { %v1167_v2 = vadd.f32 %v1166_v1, %v1074_v63  ;;  %v3690_v9 = vpop.f32.mrb[13].mxu1  ;;  %v1542_v63 = vunpack.c.0.s8 %v1541_v61  ;;  %v1711_v61 = vld [vmem:[%s6693_s7 + $0x2b8] sm:$0xff] }
 0x35a   :  { %v1079_v11 = vpop.f32.mrb[18].mxu0  ;;  %v5747_v7 = vsub.s32 %v1542_v63, %v4994_v4 }
 0x35b   :  { %v1171_v12 = vpop.f32.mrb[14].mxu1  ;;  %v3662_v0 = vpop.f32.mrb[19].mxu0 }
 0x35c   :  { %v1172_v14 = vadd.f32 %v1171_v12, %v1079_v11  ;;  %v3693_v10 = vpop.f32.mrb[15].mxu1 }
 0x35e   :  { %v1084_v13 = vpop.f32.mrb[20].mxu0 }
 0x35f   :  { %v1176_v15 = vpop.f32.mrb[16].mxu1  ;;  %v3665_v16 = vpop.f32.mrb[21].mxu0 }
 0x360   :  { %v1177_v3 = vadd.f32 %v1176_v15, %v1084_v13  ;;  %v3696_v17 = vpop.f32.mrb[17].mxu1 }
 0x36c   :  { %v1273_v18 = vpop.f32.mrb[22].mxu0 }
 0x36d   :  { %v1383_v19 = vpop.f32.mrb[18].mxu1  ;;  %v1287_v20 = vadd.f32 %v1273_v18, %v1167_v2  ;;  %v3721_v21 = vpop.f32.mrb[23].mxu0 }
 0x36e   :  { %v3752_v22 = vpop.f32.mrb[19].mxu1 }
 0x36f   :  { %v1397_v60 = vadd.f32 %v1383_v19, %v1287_v20 }
 0x370   :  { %v1278_v23 = vpop.f32.mrb[24].mxu0 }
 0x371   :  { %v1388_v24 = vpop.f32.mrb[20].mxu1  ;;  %v1288_v25 = vadd.f32 %v1278_v23, %v1172_v14  ;;  %v3724_v26 = vpop.f32.mrb[25].mxu0 }
 0x372   :  { %v3755_v27 = vpop.f32.mrb[21].mxu1 }
 0x373   :  { %v1398_v28 = vadd.f32 %v1388_v24, %v1288_v25 }
 0x374   :  { %v1283_v29 = vpop.f32.mrb[26].mxu0 }
 0x375   :  { %v1393_v30 = vpop.f32.mrb[22].mxu1  ;;  %v1289_v31 = vadd.f32 %v1283_v29, %v1177_v3  ;;  %v3727_v32 = vpop.f32.mrb[27].mxu0  ;;  %v1689_v29 = vld [vmem:[%s6693_s7 + $0x208] sm:$0xff] }
 0x376   :  { %v3758_v33 = vpop.f32.mrb[23].mxu1  ;;  %v1720_v32 = vld [vmem:[%s6693_s7 + $0x300] sm:$0xff] }
 0x377   :  { %v1399_v34 = vadd.f32 %v1393_v30, %v1289_v31  ;;  %v1721_v33 = vld [vmem:[%s6693_s7 + $0x308] sm:$0xff] }
 0x383   :  { %v1493_v35 = vpop.f32.mrb[28].mxu0 }
 0x384   :  { %v1507_v37 = vadd.f32 %v1493_v35, %v1397_v60  ;;  %v3783_v38 = vpop.f32.mrb[29].mxu0  ;;  %v1706_v35 = vld [vmem:[%s6693_s7 + $0x290] sm:$0xff] }
 0x386   :  { %v1517_v39 = vadd.f32 %v3219_v36, %v1507_v37 }
 0x387   :  { %v1498_v40 = vpop.f32.mrb[30].mxu0 }
 0x388   :  { %v1520_v41 = vsub.f32 0.0, %v1517_v39  ;;  %v1508_v42 = vadd.f32 %v1498_v40, %v1398_v28  ;;  %v3786_v43 = vpop.f32.mrb[31].mxu0  ;;  %v1688_v28 = vld [vmem:[%s6693_s7 + $0x200] sm:$0xff] }
 0x389   :  { %v4223_v38 = vpack.c.bf16 %v1689_v29, %v1688_v28  ;;  %v1730_v28 = vld [vmem:[%s6693_s7 + $0x350] sm:$0xff]  ;;  %v1731_v29 = vld [vmem:[%s6693_s7 + $0x358] sm:$0xff] }
 0x38a   :  { %v1523_v44 = vmul.f32 1.442695, %v1520_v41  ;;  %v1518_v45 = vadd.f32 %v3219_v36, %v1508_v42  ;;  %v1690_v41 = vld [vmem:[%s6693_s7 + $0x210] sm:$0xff]  ;;  %v1691_v42 = vld [vmem:[%s6693_s7 + $0x218] sm:$0xff] }
 0x38b   :  { %v1503_v46 = vpop.f32.mrb[32].mxu0 }
 0x38c   :  { %4547 = vpow2.f32 %v1523_v44  ;;  %v1521_v47 = vsub.f32 0.0, %v1518_v45  ;;  %v1509_v48 = vadd.f32 %v1503_v46, %v1399_v34  ;;  %v3789_v51 = vpop.f32.mrb[33].mxu0  ;;  %v4254_v45 = vpack.c.bf16 %v1721_v33, %v1720_v32  ;;  %v1700_v33 = vld [vmem:[%s6693_s7 + $0x260] sm:$0xff] }
 0x38d   :  { %v1722_v51 = vld [vmem:[%s6693_s7 + $0x310] sm:$0xff] }
 0x38e   :  { %v1525_v52 = vmul.f32 1.442695, %v1521_v47  ;;  %v1519_v54 = vadd.f32 %v3219_v36, %v1509_v48  ;;  %v1707_v36 = vld [vmem:[%s6693_s7 + $0x298] sm:$0xff]  ;;  %v1708_v47 = vld [vmem:[%s6693_s7 + $0x2a0] sm:$0xff]  ;;  %v1709_v48 = vld [vmem:[%s6693_s7 + $0x2a8] sm:$0xff] }
 0x38f   :  { %v4225_v46 = vpack.c.bf16 %v1707_v36, %v1706_v35  ;;  %v1701_v35 = vld [vmem:[%s6693_s7 + $0x268] sm:$0xff]  ;;  %v4269_v36 = vpack.c.bf16 %v1731_v29, %v1730_v28  ;;  %v2087_v28 = vld [vmem:[%s6695_s9 + $0xb0] sm:$0xff]  ;;  %v2088_v29 = vld [vmem:[%s6695_s9 + $0xb8] sm:$0xff] }
 0x390   :  { %4549 = vpow2.f32 %v1525_v52  ;;  %v1522_v55 = vsub.f32 0.0, %v1519_v54  ;;  %v1723_v52 = vld [vmem:[%s6693_s7 + $0x318] sm:$0xff]  ;;  %v4227_v54 = vpack.c.bf16 %v1691_v42, %v1690_v41  ;;  %v1732_v42 = vld [vmem:[%s6693_s7 + $0x360] sm:$0xff] }
 0x391   :  { %v1719_v41 = vld [vmem:[%s6693_s7 + $0x2f8] sm:$0xff] }
 0x392   :  { %v1527_v57 = vmul.f32 1.442695, %v1522_v55  ;;  %v4229_v55 = vpack.c.bf16 %v1709_v48, %v1708_v47  ;;  %v1702_v48 = vld [vmem:[%s6693_s7 + $0x270] sm:$0xff] }
 0x394   :  { %4551 = vpow2.f32 %v1527_v57  ;;  %v1692_v57 = vld [vmem:[%s6693_s7 + $0x220] sm:$0xff] }
 0x396   :  { %v4548_v58 = vpop.eup %4547 }
 0x397   :  { %v1529_v53 = vadd.f32 1.0, %v4548_v58  ;;  %v1693_v58 = vld [vmem:[%s6693_s7 + $0x228] sm:$0xff] }
 0x398   :  { %v4231_v63 = vpack.c.bf16 %v1693_v58, %v1692_v57  ;;  %v1734_v57 = vld [vmem:[%s6693_s7 + $0x370] sm:$0xff]  ;;  %v1735_v58 = vld [vmem:[%s6693_s7 + $0x378] sm:$0xff] }
 0x399   :  { %4553 = vrcp.f32 %v1529_v53  ;;  %v4257_v53 = vpack.c.bf16 %v1723_v52, %v1722_v51  ;;  %v1703_v51 = vld [vmem:[%s6693_s7 + $0x278] sm:$0xff] }
 0x39a   :  { %v4550_v62 = vpop.eup %4549 }
 0x39b   :  { %v1530_v50 = vadd.f32 1.0, %v4550_v62  ;;  %v1724_v62 = vld [vmem:[%s6693_s7 + $0x320] sm:$0xff] }
 0x39d   :  { %4555 = vrcp.f32 %v1530_v50  ;;  %v1725_v50 = vld [vmem:[%s6693_s7 + $0x328] sm:$0xff] }
 0x39e   :  { %v4552_v1 = vpop.eup %4551 }
 0x39f   :  { %v1531_v2 = vadd.f32 1.0, %v4552_v1  ;;  %v4233_v1 = vpack.c.bf16 %v1711_v61, %v1710_v59  ;;  %v2113_v59 = vld [vmem:[%s6695_s9 + $0x180] sm:$0xff]  ;;  %v2114_v61 = vld [vmem:[%s6695_s9 + $0x188] sm:$0xff] }
 0x3a1   :  { %4557 = vrcp.f32 %v1531_v2  ;;  %v1694_v2 = vld [vmem:[%s6693_s7 + $0x230] sm:$0xff] }
 0x3a3   :  { %v4554_v9 = vpop.eup %4553 }
 0x3a4   :  { %1538 = vst.msk [vmem:[%s6703_s17] sm:$0x1] %vm1537_vm2, %v4554_v9  ;;  %v1546_v11 = vrot.slane %v4554_v9, %v5747_v7  ;;  %v1558_v12 = vcombine.high %v4554_v9, %v4554_v9  ;;  %v1695_v9 = vld [vmem:[%s6693_s7 + $0x238] sm:$0xff] }
 0x3a6   :  { %v3220_v14 = vrot.slane %v1546_v11, 9  ;;  %v1551_v0 = vcombine.high %v1546_v11, %v1546_v11  ;;  %v1565_v10 = vrot.slane %v1558_v12, %v5747_v7  ;;  %v4260_v11 = vpack.c.bf16 %v1725_v50, %v1724_v62  ;;  %v1712_v12 = vld [vmem:[%s6693_s7 + $0x2c0] sm:$0xff] }
 0x3a7   :  { %v4556_v13 = vpop.eup %4555  ;;  %v2065_v50 = vld [vmem:[%s6695_s9] sm:$0xff] }
 0x3a8   :  { %1550 = vst.msk [vmem:[%s6703_s17 + $0x2] sm:$0x1] %vm1537_vm2, %v3220_v14  ;;  %1553 = vst.msk [vmem:[%s6703_s17 + $0x4] sm:$0x1] %vm1537_vm2, %v1551_v0  ;;  %v3221_v15 = vrot.slane %v1551_v0, 9  ;;  %v3222_v3 = vrot.slane %v1565_v10, 9  ;;  %v1572_v16 = vcombine.high %v1565_v10, %v1565_v10  ;;  %v1582_v17 = vrot.slane %v4556_v13, %v5747_v7 }
 0x3a9   :  { %1567 = vst.msk [vmem:[%s6703_s17 + $0x8] sm:$0x1] %vm1537_vm2, %v1565_v10  ;;  %v1588_v18 = vcombine.high %v4556_v13, %v4556_v13  ;;  %v1713_v14 = vld [vmem:[%s6693_s7 + $0x2c8] sm:$0xff]  ;;  %v1726_v0 = vld [vmem:[%s6693_s7 + $0x330] sm:$0xff]  ;;  %v1727_v10 = vld [vmem:[%s6693_s7 + $0x338] sm:$0xff]  ;;  %v4235_v13 = vpack.c.bf16 %v1695_v9, %v1694_v2 }
 0x3aa   :  { %1557 = vst.msk [vmem:[%s6703_s17 + $0x6] sm:$0x1] %vm1537_vm2, %v3221_v15  ;;  %1571 = vst.msk [vmem:[%s6703_s17 + $0xa] sm:$0x1] %vm1537_vm2, %v3222_v3  ;;  %v1583_v19 = vcombine.high %v1582_v17, %v1582_v17  ;;  %v4237_v15 = vpack.c.bf16 %v1713_v14, %v1712_v12  ;;  %v1696_v3 = vld [vmem:[%s6693_s7 + $0x240] sm:$0xff]  ;;  %v4263_v17 = vpack.c.bf16 %v1727_v10, %v1726_v0  ;;  %v2083_v2 = vld [vmem:[%s6695_s9 + $0x90] sm:$0xff] }
 0x3ab   :  { %1574 = vst.msk [vmem:[%s6703_s17 + $0xc] sm:$0x1] %vm1537_vm2, %v1572_v16  ;;  %v4558_v20 = vpop.eup %4557  ;;  %v1595_v21 = vrot.slane %v1588_v18, %v5747_v7  ;;  %v1697_v16 = vld [vmem:[%s6693_s7 + $0x248] sm:$0xff]  ;;  %v1714_v18 = vld [vmem:[%s6693_s7 + $0x2d0] sm:$0xff]  ;;  %v2084_v9 = vld [vmem:[%s6695_s9 + $0x98] sm:$0xff]  ;;  %v4309_v12 = vpack.c.bf16 %v2114_v61, %v2113_v59 }
 0x3ac   :  { %v3223_v22 = vrot.slane %v1583_v19, 9  ;;  %1609 = vst.msk [vmem:[%s6703_s17 + $0xb] sm:$0x1] %vm1537_vm2, %v4558_v20  ;;  %v1617_v60 = vrot.slane %v4558_v20, %v5747_v7  ;;  %v1715_v19 = vld [vmem:[%s6693_s7 + $0x2d8] sm:$0xff]  ;;  %v1728_v20 = vld [vmem:[%s6693_s7 + $0x340] sm:$0xff]  ;;  %v2098_v0 = vld [vmem:[%s6695_s9 + $0x108] sm:$0xff] }
 0x3ad   :  { %1597 = vst.msk [vmem:[%s6703_s17 + $0x3] sm:$0x1] %vm1537_vm2, %v1595_v21  ;;  %v3224_v23 = vrot.slane %v1595_v21, 9  ;;  %v1602_v24 = vcombine.high %v1595_v21, %v1595_v21  ;;  %v1729_v21 = vld [vmem:[%s6693_s7 + $0x348] sm:$0xff]  ;;  %v2097_v14 = vld [vmem:[%s6695_s9 + $0x100] sm:$0xff] }
 0x3ae   :  { %1587 = vst.msk [vmem:[%s6703_s17 + $0x1] sm:$0x1] %vm1537_vm2, %v3223_v22  ;;  %v3226_v25 = vrot.slane %v1617_v60, 9  ;;  %v4239_v22 = vpack.c.bf16 %v1697_v16, %v1696_v3  ;;  %v4241_v60 = vpack.c.bf16 %v1715_v19, %v1714_v18  ;;  %v2067_v3 = vld [vmem:[%s6695_s9 + $0x10] sm:$0xff]  ;;  %v2068_v16 = vld [vmem:[%s6695_s9 + $0x18] sm:$0xff]  ;;  %v2085_v18 = vld [vmem:[%s6695_s9 + $0xa0] sm:$0xff] }
 0x3af   :  { %1601 = vst.msk [vmem:[%s6703_s17 + $0x5] sm:$0x1] %vm1537_vm2, %v3224_v23  ;;  %1604 = vst.msk [vmem:[%s6703_s17 + $0x7] sm:$0x1] %vm1537_vm2, %v1602_v24  ;;  %v3225_v26 = vrot.slane %v1602_v24, 9  ;;  %v1698_v23 = vld [vmem:[%s6693_s7 + $0x250] sm:$0xff] }
 0x3b0   :  { %1621 = vst.msk [vmem:[%s6703_s17 + $0xd] sm:$0x1] %vm1537_vm2, %v3226_v25  ;;  %v1699_v24 = vld [vmem:[%s6693_s7 + $0x258] sm:$0xff]  ;;  %v4266_v25 = vpack.c.bf16 %v1729_v21, %v1728_v20  ;;  %v2086_v19 = vld [vmem:[%s6695_s9 + $0xa8] sm:$0xff] }
 0x3b1   :  { %1608 = vst.msk [vmem:[%s6703_s17 + $0x9] sm:$0x1] %vm1537_vm2, %v3225_v26  ;;  %v1716_v26 = vld [vmem:[%s6693_s7 + $0x2e0] sm:$0xff]  ;;  %v2074_v59 = vld [vmem:[%s6695_s9 + $0x48] sm:$0xff] }
 0x3b6   :  { %v1622_v27 = vld [vmem:[%s6703_s17] sm:$0xff] }
 0x3b7   :  { %v5820_v30 = vrot.slane %v1622_v27, %v5747_v7  ;;  %v1745_v31 = vcombine.high %v1622_v27, %v1622_v27  ;;  %v1717_v27 = vld [vmem:[%s6693_s7 + $0x2e8] sm:$0xff] }
 0x3b8   :  { %v5831_v34 = vld [vmem:[%s6703_s17 + $0x8] sm:$0x3f]  ;;  %v4245_v32 = vpack.c.bf16 %v1717_v27, %v1716_v26  ;;  %v2069_v26 = vld [vmem:[%s6695_s9 + $0x20] sm:$0xff] }
 0x3b9   :  { %v5841_v37 = vcombine.high %v5820_v30, %v5820_v30  ;;  %v5844_v39 = vrot.slane %v1745_v31, %v5747_v7  ;;  %v5848_v40 = vrot.slane %v5831_v34, %v5747_v7  ;;  %v4243_v31 = vpack.c.bf16 %v1699_v24, %v1698_v23  ;;  %v2117_v24 = vld [vmem:[%s6695_s9 + $0x1a0] sm:$0xff] }
 0x3ba   :  { %v4283_v23 = vpack.c.bf16 %v2068_v16, %v2067_v3  ;;  %v2107_v16 = vld [vmem:[%s6695_s9 + $0x150] sm:$0xff] }
 0x3bb   :  { %1849 = vmatprep.mubr.f32.mxu1 %v5841_v37  ;;  %v5859_v43 = vcombine.high %v5844_v39, %v5844_v39  ;;  %v5863_v44 = vcombine.high %v5848_v40, %v5848_v40 }
 0x3bc   :  { %1850 = vmatmul.mubr.f32.vlgmr.msra.gmra.mrb[24].mxu1 %v5820_v30 }
 0x3bd   :  { %4224 = vmatpush3.bf16.msra.mxu1 %v4223_v38  ;;  %1919 = vmatprep.mubr.f32.mxu0 %v5859_v43  ;;  %v1718_v38 = vld [vmem:[%s6693_s7 + $0x2f0] sm:$0xff] }
 0x3be   :  { %1989 = vmatprep.mubr.f32.mxu1 %v5863_v44  ;;  %1920 = vmatmul.mubr.f32.vlgmr.msra.gmra.mrb[34].mxu0 %v5844_v39  ;;  %v4249_v47 = vpack.c.bf16 %v1719_v41, %v1718_v38  ;;  %v4289_v38 = vpack.c.bf16 %v2088_v29, %v2087_v28  ;;  %v2071_v41 = vld [vmem:[%s6695_s9 + $0x30] sm:$0xff] }
 0x3bf   :  { %4255 = vmatpush3.bf16.msra.mxu0 %v4254_v45  ;;  %4226 = vmatprep.subr.bf16.mxu1 %v4225_v46  ;;  %v1733_v45 = vld [vmem:[%s6693_s7 + $0x368] sm:$0xff]  ;;  %v4247_v46 = vpack.c.bf16 %v1701_v35, %v1700_v33  ;;  %v2119_v35 = vld [vmem:[%s6695_s9 + $0x1b0] sm:$0xff] }
 0x3c0   :  { %4256 = vmatprep.subr.bf16.mxu0 %v4588_v5  ;;  %3822 = vmatprep.mubr.msk.f32.mxu0 %vm4589_vm14, %v5281_v49  ;;  %v4272_v52 = vpack.c.bf16 %v1733_v45, %v1732_v42  ;;  %v2102_v33 = vld [vmem:[%s6695_s9 + $0x128] sm:$0xff]  ;;  %v2072_v42 = vld [vmem:[%s6695_s9 + $0x38] sm:$0xff]  ;;  %v2127_v29 = vld [vmem:[%s6695_s9 + $0x1f0] sm:$0xff] }
 0x3c1   :  { %4228 = vmatpush3.bf16.msra.mxu1 %v4227_v54  ;;  %v2081_v54 = vld [vmem:[%s6695_s9 + $0x80] sm:$0xff] }
 0x3c2   :  { %4230 = vmatprep.subr.bf16.mxu1 %v4229_v55  ;;  %v2082_v55 = vld [vmem:[%s6695_s9 + $0x88] sm:$0xff] }
 0x3c3   :  { %4258 = vmatpush3.bf16.msra.mxu0 %v4257_v53  ;;  %v4251_v53 = vpack.c.bf16 %v1703_v51, %v1702_v48  ;;  %v4277_v62 = vpack.c.bf16 %v2082_v55, %v2081_v54  ;;  %v2103_v51 = vld [vmem:[%s6695_s9 + $0x130] sm:$0xff]  ;;  %v4291_v54 = vpack.c.bf16 %v2072_v42, %v2071_v41  ;;  %v2121_v55 = vld [vmem:[%s6695_s9 + $0x1c0] sm:$0xff] }
 0x3c4   :  { %4259 = vmatprep.subr.bf16.mxu0 %v4588_v5  ;;  %v2111_v42 = vld [vmem:[%s6695_s9 + $0x170] sm:$0xff] }
 0x3c5   :  { %4232 = vmatpush3.bf16.msra.mxu1 %v4231_v63  ;;  %v2066_v63 = vld [vmem:[%s6695_s9 + $0x8] sm:$0xff] }
 0x3c6   :  { %4234 = vmatprep.subr.bf16.mxu1 %v4233_v1  ;;  %v4275_v1 = vpack.c.bf16 %v1735_v58, %v1734_v57  ;;  %v4279_v10 = vpack.c.bf16 %v2066_v63, %v2065_v50  ;;  %v2122_v57 = vld [vmem:[%s6695_s9 + $0x1c8] sm:$0xff]  ;;  %v2092_v50 = vld [vmem:[%s6695_s9 + $0xd8] sm:$0xff] }
 0x3c7   :  { %4261 = vmatpush3.bf16.msra.mxu0 %v4260_v11  ;;  %v1762_v11 = vcombine.high %v5831_v34, %v5831_v34  ;;  %v4281_v34 = vpack.c.bf16 %v2084_v9, %v2083_v2  ;;  %v4325_v63 = vpack.c.bf16 %v2122_v57, %v2121_v55  ;;  %v2106_v2 = vld [vmem:[%s6695_s9 + $0x148] sm:$0xff]  ;;  %v2148_v55 = vld [vmem:[%s6695_s9 + $0x298] sm:$0xff]  ;;  %v2161_v57 = vld [vmem:[%s6695_s9 + $0x300] sm:$0xff] }
 0x3c8   :  { %4262 = vmatprep.subr.bf16.mxu0 %v4588_v5 }
 0x3c9   :  { %4236 = vmatpush3.bf16.msra.mxu1 %v4235_v13  ;;  %v2115_v13 = vld [vmem:[%s6695_s9 + $0x190] sm:$0xff]  ;;  %v6044_v20 = vrot.slane %v1762_v11, %v5747_v7  ;;  %v2118_v7 = vld [vmem:[%s6695_s9 + $0x1a8] sm:$0xff] }
 0x3ca   :  { %4238 = vmatprep.subr.bf16.mxu1 %v4237_v15  ;;  %v2116_v15 = vld [vmem:[%s6695_s9 + $0x198] sm:$0xff]  ;;  %v2123_v11 = vld [vmem:[%s6695_s9 + $0x1d0] sm:$0xff] }
 0x3cb   :  { %4264 = vmatpush3.bf16.msra.mxu0 %v4263_v17  ;;  %v4311_v17 = vpack.c.bf16 %v2098_v0, %v2097_v14  ;;  %v4313_v21 = vpack.c.bf16 %v2116_v15, %v2115_v13  ;;  %v2075_v0 = vld [vmem:[%s6695_s9 + $0x50] sm:$0xff]  ;;  %v2093_v15 = vld [vmem:[%s6695_s9 + $0xe0] sm:$0xff] }
 0x3cc   :  { %4265 = vmatprep.subr.bf16.mxu0 %v4588_v5 }
 0x3cd   :  { %4240 = vmatpush3.bf16.msra.mxu1 %v4239_v22  ;;  %v2099_v22 = vld [vmem:[%s6695_s9 + $0x110] sm:$0xff] }
 0x3ce   :  { %4242 = vmatprep.subr.bf16.mxu1 %v4241_v60  ;;  %v2100_v60 = vld [vmem:[%s6695_s9 + $0x118] sm:$0xff] }
 0x3cf   :  { %4267 = vmatpush3.bf16.msra.mxu0 %v4266_v25  ;;  %v4285_v25 = vpack.c.bf16 %v2086_v19, %v2085_v18  ;;  %v4315_v27 = vpack.c.bf16 %v2100_v60, %v2099_v22  ;;  %v2125_v19 = vld [vmem:[%s6695_s9 + $0x1e0] sm:$0xff] }
 0x3d0   :  { %4268 = vmatprep.subr.bf16.mxu0 %v4588_v5  ;;  %v2077_v60 = vld [vmem:[%s6695_s9 + $0x60] sm:$0xff] }
 0x3d1   :  { %4244 = vmatpush3.bf16.msra.mxu1 %v4243_v31  ;;  %v4317_v31 = vpack.c.bf16 %v2118_v7, %v2117_v24  ;;  %v2095_v7 = vld [vmem:[%s6695_s9 + $0xf0] sm:$0xff] }
 0x3d2   :  { %4246 = vmatprep.subr.bf16.mxu1 %v4245_v32  ;;  %v2101_v32 = vld [vmem:[%s6695_s9 + $0x120] sm:$0xff] }
 0x3d3   :  { %4270 = vmatpush3.bf16.msra.mxu0 %v4269_v36  ;;  %v2120_v36 = vld [vmem:[%s6695_s9 + $0x1b8] sm:$0xff]  ;;  %v4319_v45 = vpack.c.bf16 %v2102_v33, %v2101_v32  ;;  %v2079_v33 = vld [vmem:[%s6695_s9 + $0x70] sm:$0xff] }
 0x3d4   :  { %4271 = vmatprep.subr.bf16.mxu0 %v4588_v5  ;;  %v4321_v48 = vpack.c.bf16 %v2120_v36, %v2119_v35  ;;  %v2145_v36 = vld [vmem:[%s6695_s9 + $0x280] sm:$0xff] }
 0x3d5   :  { %4248 = vmatpush3.bf16.msra.mxu1 %v4247_v46  ;;  %v2089_v46 = vld [vmem:[%s6695_s9 + $0xc0] sm:$0xff] }
 0x3d6   :  { %4250 = vmatprep.subr.bf16.mxu1 %v4249_v47  ;;  %v2090_v47 = vld [vmem:[%s6695_s9 + $0xc8] sm:$0xff] }
 0x3d7   :  { %4273 = vmatpush3.bf16.msra.mxu0 %v4272_v52  ;;  %v2104_v52 = vld [vmem:[%s6695_s9 + $0x138] sm:$0xff]  ;;  %v4293_v58 = vpack.c.bf16 %v2090_v47, %v2089_v46 }
 0x3d8   :  { %4274 = vmatprep.subr.bf16.mxu0 %v4588_v5  ;;  %v4323_v61 = vpack.c.bf16 %v2104_v52, %v2103_v51  ;;  %v2130_v51 = vld [vmem:[%s6695_s9 + $0x208] sm:$0xff] }
 0x3d9   :  { %4252 = vmatpush3.bf16.msra.mxu1 %v4251_v53  ;;  %v2073_v53 = vld [vmem:[%s6695_s9 + $0x40] sm:$0xff] }
 0x3da   :  { %4278 = vmatprep.subr.bf16.mxu1 %v4277_v62  ;;  %v2091_v62 = vld [vmem:[%s6695_s9 + $0xd0] sm:$0xff]  ;;  %v4295_v9 = vpack.c.bf16 %v2074_v59, %v2073_v53 }
 0x3db   :  { %4276 = vmatpush3.bf16.msra.mxu0 %v4275_v1  ;;  %v2105_v1 = vld [vmem:[%s6695_s9 + $0x140] sm:$0xff]  ;;  %v4297_v14 = vpack.c.bf16 %v2092_v50, %v2091_v62  ;;  %v2132_v62 = vld [vmem:[%s6695_s9 + $0x218] sm:$0xff] }
 0x3dc   :  { %1990 = vmatmul.mubr.f32.vlgmr.msra.gmra.mrb[26].mxu1 %v5848_v40  ;;  %4310 = vmatprep.subr.bf16.mxu0 %v4309_v12  ;;  %v2124_v12 = vld [vmem:[%s6695_s9 + $0x1d8] sm:$0xff]  ;;  %v4327_v13 = vpack.c.bf16 %v2106_v2, %v2105_v1  ;;  %v2150_v1 = vld [vmem:[%s6695_s9 + $0x2a8] sm:$0xff]  ;;  %v2163_v2 = vld [vmem:[%s6695_s9 + $0x310] sm:$0xff] }
 0x3dd   :  { %4280 = vmatpush3.bf16.msra.mxu1 %v4279_v10  ;;  %2248 = vmatprep.mubr.f32.mxu1 %v5841_v37  ;;  %v2070_v37 = vld [vmem:[%s6695_s9 + $0x28] sm:$0xff]  ;;  %v2076_v10 = vld [vmem:[%s6695_s9 + $0x58] sm:$0xff]  ;;  %v4329_v3 = vpack.c.bf16 %v2124_v12, %v2123_v11 }
 0x3de   :  { %3823 = vmatmul.mubr.f32.vlgmr.msra.gmra.mrb[36].mxu0 %v6044_v20  ;;  %4282 = vmatprep.subr.bf16.mxu1 %v4281_v34  ;;  %v2094_v34 = vld [vmem:[%s6695_s9 + $0xe8] sm:$0xff]  ;;  %v4299_v18 = vpack.c.bf16 %v2076_v10, %v2075_v0  ;;  %v2151_v10 = vld [vmem:[%s6695_s9 + $0x2b0] sm:$0xff] }
 0x3df   :  { %4312 = vmatpush3.bf16.msra.mxu0 %v4311_v17  ;;  %2318 = vmatprep.mubr.f32.mxu0 %v5859_v43  ;;  %v4287_v43 = vpack.c.bf16 %v2070_v37, %v2069_v26  ;;  %v2108_v17 = vld [vmem:[%s6695_s9 + $0x158] sm:$0xff]  ;;  %v4301_v22 = vpack.c.bf16 %v2094_v34, %v2093_v15  ;;  %v2109_v37 = vld [vmem:[%s6695_s9 + $0x160] sm:$0xff] }
 0x3e0   :  { %4314 = vmatprep.subr.bf16.mxu0 %v4313_v21  ;;  %v2126_v21 = vld [vmem:[%s6695_s9 + $0x1e8] sm:$0xff]  ;;  %v4331_v24 = vpack.c.bf16 %v2108_v17, %v2107_v16  ;;  %v2136_v16 = vld [vmem:[%s6695_s9 + $0x238] sm:$0xff] }
 0x3e1   :  { %4284 = vmatpush3.bf16.msra.mxu1 %v4283_v23  ;;  %v2078_v23 = vld [vmem:[%s6695_s9 + $0x68] sm:$0xff]  ;;  %v4333_v26 = vpack.c.bf16 %v2126_v21, %v2125_v19  ;;  %v2167_v21 = vld [vmem:[%s6695_s9 + $0x330] sm:$0xff] }
 0x3e2   :  { %4286 = vmatprep.subr.bf16.mxu1 %v4285_v25  ;;  %v2096_v25 = vld [vmem:[%s6695_s9 + $0xf8] sm:$0xff]  ;;  %v4303_v28 = vpack.c.bf16 %v2078_v23, %v2077_v60  ;;  %v2154_v19 = vld [vmem:[%s6695_s9 + $0x2c8] sm:$0xff] }
 0x3e3   :  { %4316 = vmatpush3.bf16.msra.mxu0 %v4315_v27  ;;  %v2110_v27 = vld [vmem:[%s6695_s9 + $0x168] sm:$0xff]  ;;  %v4305_v32 = vpack.c.bf16 %v2096_v25, %v2095_v7 }
 0x3e4   :  { %4318 = vmatprep.subr.bf16.mxu0 %v4317_v31  ;;  %v2128_v31 = vld [vmem:[%s6695_s9 + $0x1f8] sm:$0xff]  ;;  %v4335_v35 = vpack.c.bf16 %v2110_v27, %v2109_v37  ;;  %v2138_v7 = vld [vmem:[%s6695_s9 + $0x248] sm:$0xff]  ;;  %v2169_v27 = vld [vmem:[%s6695_s9 + $0x340] sm:$0xff] }
 0x3e5   :  { %4288 = vmatpush3.bf16.msra.mxu1 %v4287_v43  ;;  %v2080_v43 = vld [vmem:[%s6695_s9 + $0x78] sm:$0xff]  ;;  %v4337_v41 = vpack.c.bf16 %v2128_v31, %v2127_v29 }
 0x3e6   :  { %4290 = vmatprep.subr.bf16.mxu1 %v4289_v38  ;;  %v2146_v38 = vld [vmem:[%s6695_s9 + $0x288] sm:$0xff]  ;;  %v4307_v46 = vpack.c.bf16 %v2080_v43, %v2079_v33  ;;  %v2156_v37 = vld [vmem:[%s6695_s9 + $0x2d8] sm:$0xff] }
 0x3e7   :  { %4320 = vmatpush3.bf16.msra.mxu0 %v4319_v45  ;;  %v2112_v45 = vld [vmem:[%s6695_s9 + $0x178] sm:$0xff]  ;;  %v4341_v47 = vpack.c.bf16 %v2146_v38, %v2145_v36  ;;  %v2158_v36 = vld [vmem:[%s6695_s9 + $0x2e8] sm:$0xff]  ;;  %v2171_v38 = vld [vmem:[%s6695_s9 + $0x350] sm:$0xff] }
 0x3e8   :  { %4322 = vmatprep.subr.bf16.mxu0 %v4321_v48  ;;  %v2129_v48 = vld [vmem:[%s6695_s9 + $0x200] sm:$0xff]  ;;  %v4339_v52 = vpack.c.bf16 %v2112_v45, %v2111_v42  ;;  %v2140_v33 = vld [vmem:[%s6695_s9 + $0x258] sm:$0xff] }
 0x3e9   :  { %4292 = vmatpush3.bf16.msra.mxu1 %v4291_v54  ;;  %v2147_v54 = vld [vmem:[%s6695_s9 + $0x290] sm:$0xff]  ;;  %v4343_v53 = vpack.c.bf16 %v2130_v51, %v2129_v48 }
 0x3ea   :  { %4294 = vmatprep.subr.bf16.mxu1 %v4293_v58  ;;  %v2162_v58 = vld [vmem:[%s6695_s9 + $0x308] sm:$0xff]  ;;  %v4345_v59 = vpack.c.bf16 %v2148_v55, %v2147_v54  ;;  %v2159_v51 = vld [vmem:[%s6695_s9 + $0x2f0] sm:$0xff]  ;;  %v2173_v54 = vld [vmem:[%s6695_s9 + $0x360] sm:$0xff] }
 0x3eb   :  { %4324 = vmatpush3.bf16.msra.mxu0 %v4323_v61  ;;  %v2131_v61 = vld [vmem:[%s6695_s9 + $0x210] sm:$0xff]  ;;  %v4374_v50 = vpack.c.bf16 %v2162_v58, %v2161_v57  ;;  %v2174_v55 = vld [vmem:[%s6695_s9 + $0x368] sm:$0xff] }
 0x3ec   :  { %4326 = vmatprep.subr.bf16.mxu0 %v4325_v63  ;;  %v2149_v63 = vld [vmem:[%s6695_s9 + $0x2a0] sm:$0xff]  ;;  %v4347_v11 = vpack.c.bf16 %v2132_v62, %v2131_v61  ;;  %v4392_v61 = vpack.c.bf16 %v2174_v55, %v2173_v54  ;;  %v2175_v62 = vld [vmem:[%s6695_s9 + $0x370] sm:$0xff] }
 0x3ed   :  { %4296 = vmatpush3.bf16.msra.mxu1 %v4295_v9  ;;  %v2164_v9 = vld [vmem:[%s6695_s9 + $0x318] sm:$0xff]  ;;  %v4349_v12 = vpack.c.bf16 %v2150_v1, %v2149_v63 }
 0x3ee   :  { %4298 = vmatprep.subr.bf16.mxu1 %v4297_v14  ;;  %v2134_v14 = vld [vmem:[%s6695_s9 + $0x228] sm:$0xff]  ;;  %v4377_v0 = vpack.c.bf16 %v2164_v9, %v2163_v2  ;;  %v2476_v9 = vld [vmem:[%s6697_s11 + $0x30] sm:$0xff] }
 0x3ef   :  { %4328 = vmatpush3.bf16.msra.mxu0 %v4327_v13  ;;  %v2166_v13 = vld [vmem:[%s6695_s9 + $0x328] sm:$0xff] }
 0x3f0   :  { %4330 = vmatprep.subr.bf16.mxu0 %v4329_v3  ;;  %v2135_v3 = vld [vmem:[%s6695_s9 + $0x230] sm:$0xff]  ;;  %v2471_v2 = vld [vmem:[%s6697_s11 + $0x8] sm:$0xff] }
 0x3f1   :  { %4300 = vmatpush3.bf16.msra.mxu1 %v4299_v18  ;;  %v2153_v18 = vld [vmem:[%s6695_s9 + $0x2c0] sm:$0xff]  ;;  %v4355_v60 = vpack.c.bf16 %v2136_v16, %v2135_v3  ;;  %v2480_v3 = vld [vmem:[%s6697_s11 + $0x50] sm:$0xff]  ;;  %v2485_v16 = vld [vmem:[%s6697_s11 + $0x78] sm:$0xff] }
 0x3f2   :  { %4302 = vmatprep.subr.bf16.mxu1 %v4301_v22  ;;  %v2168_v22 = vld [vmem:[%s6695_s9 + $0x338] sm:$0xff]  ;;  %v4357_v23 = vpack.c.bf16 %v2154_v19, %v2153_v18  ;;  %v4403_v18 = vpack.c.bf16 %v2485_v16, %v2480_v3  ;;  %v2488_v19 = vld [vmem:[%s6697_s11 + $0x90] sm:$0xff] }
 0x3f3   :  { %4332 = vmatpush3.bf16.msra.mxu0 %v4331_v24  ;;  %v2137_v24 = vld [vmem:[%s6695_s9 + $0x240] sm:$0xff]  ;;  %v4383_v25 = vpack.c.bf16 %v2168_v22, %v2167_v21  ;;  %v2487_v22 = vld [vmem:[%s6697_s11 + $0x88] sm:$0xff]  ;;  %v2489_v3 = vld [vmem:[%s6697_s11 + $0x98] sm:$0xff] }
 0x3f4   :  { %4334 = vmatprep.subr.bf16.mxu0 %v4333_v26  ;;  %v2155_v26 = vld [vmem:[%s6695_s9 + $0x2d0] sm:$0xff]  ;;  %v4359_v29 = vpack.c.bf16 %v2138_v7, %v2137_v24  ;;  %v2482_v21 = vld [vmem:[%s6697_s11 + $0x60] sm:$0xff] }
 0x3f5   :  { %4304 = vmatpush3.bf16.msra.mxu1 %v4303_v28  ;;  %v2170_v28 = vld [vmem:[%s6695_s9 + $0x348] sm:$0xff]  ;;  %v4361_v31 = vpack.c.bf16 %v2156_v37, %v2155_v26  ;;  %v3227_v7 = vld [vmem:[%s6694_s8] ss:$0 sm:$0xff] }
 0x3f6   :  { %4306 = vmatprep.subr.bf16.mxu1 %v4305_v32  ;;  %v2139_v32 = vld [vmem:[%s6695_s9 + $0x250] sm:$0xff]  ;;  %v4386_v43 = vpack.c.bf16 %v2170_v28, %v2169_v27  ;;  %v2749_v28 = vld [vmem:[%s6699_s13 + $0x80] sm:$0xff] }
 0x3f7   :  { %4336 = vmatpush3.bf16.msra.mxu0 %v4335_v35  ;;  %v2157_v35 = vld [vmem:[%s6695_s9 + $0x2e0] sm:$0xff]  ;;  %v4363_v42 = vpack.c.bf16 %v2140_v33, %v2139_v32 }
 0x3f8   :  { %4338 = vmatprep.subr.bf16.mxu0 %v4337_v41  ;;  %v2172_v41 = vld [vmem:[%s6695_s9 + $0x358] sm:$0xff]  ;;  %v4365_v45 = vpack.c.bf16 %v2158_v36, %v2157_v35 }
 0x3f9   :  { %4308 = vmatpush3.bf16.msra.mxu1 %v4307_v46  ;;  %v2141_v46 = vld [vmem:[%s6695_s9 + $0x260] sm:$0xff]  ;;  %v4389_v48 = vpack.c.bf16 %v2172_v41, %v2171_v38 }
 0x3fa   :  { %4342 = vmatprep.subr.bf16.mxu1 %v4341_v47  ;;  %v2142_v47 = vld [vmem:[%s6695_s9 + $0x268] sm:$0xff] }
 0x3fb   :  { %4340 = vmatpush3.bf16.msra.mxu0 %v4339_v52  ;;  %v2160_v52 = vld [vmem:[%s6695_s9 + $0x2f8] sm:$0xff]  ;;  %v4367_v57 = vpack.c.bf16 %v2142_v47, %v2141_v46 }
 0x3fc   :  { %2249 = vmatmul.mubr.f32.vlgmr.msra.gmra.mrb[28].mxu1 %v5820_v30  ;;  %4373 = vmatprep.subr.bf16.mxu0 %v4588_v5  ;;  %v2133_v30 = vld [vmem:[%s6695_s9 + $0x220] sm:$0xff]  ;;  %v4369_v58 = vpack.c.bf16 %v2160_v52, %v2159_v51 }
 0x3fd   :  { %4344 = vmatpush3.bf16.msra.mxu1 %v4343_v53  ;;  %2388 = vmatprep.mubr.f32.mxu1 %v5863_v44  ;;  %v2165_v44 = vld [vmem:[%s6695_s9 + $0x320] sm:$0xff]  ;;  %v4351_v15 = vpack.c.bf16 %v2134_v14, %v2133_v30  ;;  %v2143_v53 = vld [vmem:[%s6695_s9 + $0x270] sm:$0xff] }
 0x3fe   :  { %2319 = vmatmul.mubr.f32.vlgmr.msra.gmra.mrb[38].mxu0 %v5844_v39  ;;  %4346 = vmatprep.subr.bf16.mxu1 %v4345_v59  ;;  %v2152_v39 = vld [vmem:[%s6695_s9 + $0x2b8] sm:$0xff]  ;;  %v4380_v17 = vpack.c.bf16 %v2166_v13, %v2165_v44  ;;  %v2478_v14 = vld [vmem:[%s6697_s11 + $0x40] sm:$0xff] }
 0x3ff   :  { %4375 = vmatpush3.bf16.msra.mxu0 %v4374_v50  ;;  %3857 = vmatprep.mubr.msk.f32.mxu0 %vm4589_vm14, %v5281_v49  ;;  %v4353_v34 = vpack.c.bf16 %v2152_v39, %v2151_v10  ;;  %v2144_v59 = vld [vmem:[%s6695_s9 + $0x278] sm:$0xff] }
 0x400   :  { %4376 = vmatprep.subr.bf16.mxu0 %v4588_v5  ;;  %v2176_v50 = vld [vmem:[%s6695_s9 + $0x378] sm:$0xff]  ;;  %v4371_v63 = vpack.c.bf16 %v2144_v59, %v2143_v53 }
 0x401   :  { %4348 = vmatpush3.bf16.msra.mxu1 %v4347_v11  ;;  %v4395_v1 = vpack.c.bf16 %v2176_v50, %v2175_v62  ;;  %v4397_v11 = vpack.c.bf16 %v2476_v9, %v2471_v2  ;;  %v2477_v10 = vld [vmem:[%s6697_s11 + $0x38] sm:$0xff] }
 0x402   :  { %4350 = vmatprep.subr.bf16.mxu1 %v4349_v12  ;;  %v2470_v12 = vld [vmem:[%s6697_s11] sm:$0xff]  ;;  %v2481_v13 = vld [vmem:[%s6697_s11 + $0x58] sm:$0xff] }
 0x403   :  { %4378 = vmatpush3.bf16.msra.mxu0 %v4377_v0  ;;  %v2472_v0 = vld [vmem:[%s6697_s11 + $0x10] sm:$0xff] }
 0x404   :  { %4379 = vmatprep.subr.bf16.mxu0 %v4588_v5  ;;  %v4407_v44 = vpack.c.bf16 %v2477_v10, %v2472_v0  ;;  %v2734_v0 = vld [vmem:[%s6699_s13 + $0x8] sm:$0xff] }
 0x405   :  { %4352 = vmatpush3.bf16.msra.mxu1 %v4351_v15  ;;  %v2486_v15 = vld [vmem:[%s6697_s11 + $0x80] sm:$0xff] }
 0x406   :  { %4354 = vmatprep.subr.bf16.mxu1 %v4353_v34  ;;  %v4401_v34 = vpack.c.bf16 %v2486_v15, %v2481_v13 }
 0x407   :  { %4381 = vmatpush3.bf16.msra.mxu0 %v4380_v17  ;;  %v2483_v17 = vld [vmem:[%s6697_s11 + $0x68] sm:$0xff] }
 0x408   :  { %4382 = vmatprep.subr.bf16.mxu0 %v4588_v5 }
 0x409   :  { %4356 = vmatpush3.bf16.msra.mxu1 %v4355_v60  ;;  %v4409_v60 = vpack.c.bf16 %v2488_v19, %v2483_v17  ;;  %v2781_v17 = vld [vmem:[%s6699_s13 + $0x180] sm:$0xff] }
 0x40a   :  { %4358 = vmatprep.subr.bf16.mxu1 %v4357_v23  ;;  %v4411_v23 = vpack.c.bf16 %v2487_v22, %v2482_v21  ;;  %v2735_v21 = vld [vmem:[%s6699_s13 + $0x10] sm:$0xff]  ;;  %v2736_v22 = vld [vmem:[%s6699_s13 + $0x18] sm:$0xff] }
 0x40b   :  { %4384 = vmatpush3.bf16.msra.mxu0 %v4383_v25 }
 0x40c   :  { %4385 = vmatprep.subr.bf16.mxu0 %v4588_v5 }
 0x40d   :  { %4360 = vmatpush3.bf16.msra.mxu1 %v4359_v29  ;;  %v2750_v29 = vld [vmem:[%s6699_s13 + $0x88] sm:$0xff] }
 0x40e   :  { %4362 = vmatprep.subr.bf16.mxu1 %v4361_v31  ;;  %v4419_v33 = vpack.c.bf16 %v2750_v29, %v2749_v28  ;;  %v2784_v28 = vld [vmem:[%s6699_s13 + $0x198] sm:$0xff] }
 0x40f   :  { %4387 = vmatpush3.bf16.msra.mxu0 %v4386_v43 }
 0x410   :  { %4388 = vmatprep.subr.bf16.mxu0 %v4588_v5 }
 0x411   :  { %4364 = vmatpush3.bf16.msra.mxu1 %v4363_v42 }
 0x412   :  { %4366 = vmatprep.subr.bf16.mxu1 %v4365_v45 }
 0x413   :  { %4390 = vmatpush3.bf16.msra.mxu0 %v4389_v48  ;;  %v3228_v48 = vld [vmem:[%s6696_s10] ss:$0 sm:$0xff] }
 0x414   :  { %4391 = vmatprep.subr.bf16.mxu0 %v4588_v5 }
 0x415   :  { %4368 = vmatpush3.bf16.msra.mxu1 %v4367_v57 }
 0x416   :  { %4370 = vmatprep.subr.bf16.mxu1 %v4369_v58 }
 0x417   :  { %4393 = vmatpush3.bf16.msra.mxu0 %v4392_v61 }
 0x418   :  { %4394 = vmatprep.subr.bf16.mxu0 %v4588_v5 }
 0x419   :  { %4372 = vmatpush3.bf16.msra.mxu1 %v4371_v63 }
 0x41b   :  { %4396 = vmatpush3.bf16.msra.mxu0 %v4395_v1 }
 0x41c   :  { %2389 = vmatmul.mubr.f32.vlgmr.msra.gmra.mrb[30].mxu1 %v5848_v40  ;;  %v2475_v40 = vld [vmem:[%s6697_s11 + $0x28] sm:$0xff]  ;;  %4398 = vmatprep.subr.bf16.mxu0 %v4397_v11 }
 0x41d   :  { %2656 = vmatprep.mubr.f32.mxu1 %v5281_v49  ;;  %v4399_v30 = vpack.c.bf16 %v2475_v40, %v2470_v12  ;;  %v2467_v12 = vld [vmem:[%s6701_s15] sm:$0x3] }
 0x41e   :  { %3858 = vmatmul.mubr.f32.vlgmr.msra.gmra.mrb[40].mxu0 %v6044_v20  ;;  %v2473_v20 = vld [vmem:[%s6697_s11 + $0x18] sm:$0xff]  ;;  %v2474_v40 = vld [vmem:[%s6697_s11 + $0x20] sm:$0xff] }
 0x41f   :  { %2585 = vmatprep.mubr.f32.mxu0 %v5281_v49  ;;  %v4405_v39 = vpack.c.bf16 %v2478_v14, %v2473_v20  ;;  %4400 = vmatpush1.bf16.msra.mxu0 %v4399_v30  ;;  %v2479_v20 = vld [vmem:[%s6697_s11 + $0x48] sm:$0xff]  ;;  %v2733_v14 = vld [vmem:[%s6699_s13] sm:$0xff] }
 0x420   :  { %4402 = vmatprep.subr.bf16.mxu0 %v4401_v34  ;;  %v4414_v13 = vpack.c.bf16 %v2479_v20, %v2474_v40  ;;  %v2484_v34 = vld [vmem:[%s6697_s11 + $0x70] sm:$0xff]  ;;  %v4421_v16 = vpack.c.bf16 %v2734_v0, %v2733_v14  ;;  %v2772_v20 = vld [vmem:[%s6699_s13 + $0x138] sm:$0xff]  ;;  %v2789_v14 = vld [vmem:[%s6699_s13 + $0x1c0] sm:$0xff] }
 0x421   :  { %4406 = vmatprep.subr.bf16.mxu1 %v4405_v39  ;;  %v2751_v39 = vld [vmem:[%s6699_s13 + $0x90] sm:$0xff]  ;;  %v2790_v0 = vld [vmem:[%s6699_s13 + $0x1c8] sm:$0xff] }
 0x422   :  { %4408 = vmatpush1.bf16.msra.mxu1 %v4407_v44  ;;  %v2752_v44 = vld [vmem:[%s6699_s13 + $0x98] sm:$0xff]  ;;  %v2771_v40 = vld [vmem:[%s6699_s13 + $0x130] sm:$0xff] }
 0x423   :  { %4404 = vmatpush1.bf16.msra.mxu0 %v4403_v18  ;;  %4410 = vmatprep.subr.bf16.mxu1 %v4409_v60  ;;  %v2782_v18 = vld [vmem:[%s6699_s13 + $0x188] sm:$0xff]  ;;  %v4423_v19 = vpack.c.bf16 %v2752_v44, %v2751_v39  ;;  %v2753_v60 = vld [vmem:[%s6699_s13 + $0xa0] sm:$0xff]  ;;  %v2743_v39 = vld [vmem:[%s6699_s13 + $0x50] sm:$0xff] }
 0x424   :  { %4413 = vmatprep.subr.bf16.mxu0 %v4588_v5  ;;  %v2744_v44 = vld [vmem:[%s6699_s13 + $0x58] sm:$0xff] }
 0x426   :  { %4412 = vmatpush1.bf16.msra.mxu1 %v4411_v23  ;;  %v2754_v23 = vld [vmem:[%s6699_s13 + $0xa8] sm:$0xff] }
 0x427   :  { %4420 = vmatprep.subr.bf16.mxu1 %v4419_v33  ;;  %v4427_v29 = vpack.c.bf16 %v2754_v23, %v2753_v60  ;;  %v2755_v33 = vld [vmem:[%s6699_s13 + $0xb0] sm:$0xff]  ;;  %v2745_v60 = vld [vmem:[%s6699_s13 + $0x60] sm:$0xff]  ;;  %v2746_v23 = vld [vmem:[%s6699_s13 + $0x68] sm:$0xff] }
 0x48f   :  { %v3337_v24 = vpop.f32.mrb[24].mxu1 }
 0x490   :  { %v3338_v25 = vpop.f32.mrb[25].mxu1 }
 0x491   :  { %v3339_v26 = vadd.f32 %v3338_v25, %v3337_v24  ;;  %v3372_v37 = vpop.f32.mrb[34].mxu0  ;;  %v4417_v24 = vpack.c.bf16 %v2489_v3, %v2484_v34  ;;  %v2765_v25 = vld [vmem:[%s6699_s13 + $0x100] sm:$0xff]  ;;  %v4465_v34 = vpack.c.bf16 %v2772_v20, %v2771_v40  ;;  %v4467_v3 = vpack.c.bf16 %v2790_v0, %v2789_v14  ;;  %v2800_v14 = vld [vmem:[%s6699_s13 + $0x218] sm:$0xff] }
 0x492   :  { %v3373_v27 = vpop.f32.mrb[35].mxu0 }
 0x493   :  { %v1852_v31 = vadd.f32 %v3339_v26, %v3227_v7  ;;  %v3374_v32 = vadd.f32 %v3373_v27, %v3372_v37  ;;  %v4451_v7 = vpack.c.bf16 %v2782_v18, %v2781_v17  ;;  %v2766_v26 = vld [vmem:[%s6699_s13 + $0x108] sm:$0xff]  ;;  %v4425_v37 = vpack.c.bf16 %v2736_v22, %v2735_v21  ;;  %v2783_v27 = vld [vmem:[%s6699_s13 + $0x190] sm:$0xff]  ;;  %v2792_v21 = vld [vmem:[%s6699_s13 + $0x1d8] sm:$0xff] }
 0x494   :  { %v2774_v17 = vld [vmem:[%s6699_s13 + $0x148] sm:$0xff]  ;;  %v4441_v18 = vpack.c.bf16 %v2744_v44, %v2743_v39 }
 0x495   :  { %v1922_v43 = vadd.f32 %v3374_v32, %v1852_v31  ;;  %v2737_v31 = vld [vmem:[%s6699_s13 + $0x20] sm:$0xff]  ;;  %v2738_v32 = vld [vmem:[%s6699_s13 + $0x28] sm:$0xff] }
 0x496   :  { %v2802_v39 = vld [vmem:[%s6699_s13 + $0x228] sm:$0xff] }
 0x4af   :  { %v3407_v35 = vpop.f32.mrb[26].mxu1 }
 0x4b0   :  { %v3408_v36 = vpop.f32.mrb[27].mxu1 }
 0x4b1   :  { %v3409_v38 = vadd.f32 %v3408_v36, %v3407_v35  ;;  %v2061_v41 = vpop.f32.mrb[36].mxu0  ;;  %v4453_v35 = vpack.c.bf16 %v2766_v26, %v2765_v25  ;;  %v4455_v36 = vpack.c.bf16 %v2784_v28, %v2783_v27  ;;  %v2775_v25 = vld [vmem:[%s6699_s13 + $0x150] sm:$0xff]  ;;  %v2776_v26 = vld [vmem:[%s6699_s13 + $0x158] sm:$0xff]  ;;  %v2793_v27 = vld [vmem:[%s6699_s13 + $0x1e0] sm:$0xff] }
 0x4b2   :  { %v3824_v42 = vpop.f32.mrb[37].mxu0  ;;  %v2794_v28 = vld [vmem:[%s6699_s13 + $0x1e8] sm:$0xff] }
 0x4b3   :  { %v1992_v45 = vadd.f32 %v3409_v38, %v1922_v43  ;;  %v2756_v43 = vld [vmem:[%s6699_s13 + $0xb8] sm:$0xff]  ;;  %v2767_v38 = vld [vmem:[%s6699_s13 + $0x110] sm:$0xff]  ;;  %v4429_v42 = vpack.c.bf16 %v2738_v32, %v2737_v31  ;;  %v4475_v31 = vpack.c.bf16 %v2794_v28, %v2793_v27  ;;  %v2777_v32 = vld [vmem:[%s6699_s13 + $0x160] sm:$0xff] }
 0x4b5   :  { %v2062_v46 = vadd.f32 %v2061_v41, %v1992_v45  ;;  %v2768_v41 = vld [vmem:[%s6699_s13 + $0x118] sm:$0xff]  ;;  %v2785_v45 = vld [vmem:[%s6699_s13 + $0x1a0] sm:$0xff] }
 0x4cf   :  { %v3459_v47 = vpop.f32.mrb[28].mxu1 }
 0x4d0   :  { %v3460_v51 = vpop.f32.mrb[29].mxu1 }
 0x4d1   :  { %v3461_v52 = vadd.f32 %v3460_v51, %v3459_v47  ;;  %v3494_v54 = vpop.f32.mrb[38].mxu0  ;;  %v4431_v47 = vpack.c.bf16 %v2756_v43, %v2755_v33  ;;  %v2740_v51 = vld [vmem:[%s6699_s13 + $0x38] sm:$0xff]  ;;  %v2778_v33 = vld [vmem:[%s6699_s13 + $0x168] sm:$0xff] }
 0x4d2   :  { %v3495_v55 = vpop.f32.mrb[39].mxu0  ;;  %v4477_v43 = vpack.c.bf16 %v2778_v33, %v2777_v32 }
 0x4d3   :  { %v2251_v57 = vadd.f32 %v3461_v52, %v3228_v48  ;;  %v3496_v58 = vadd.f32 %v3495_v55, %v3494_v54  ;;  %v2739_v48 = vld [vmem:[%s6699_s13 + $0x30] sm:$0xff]  ;;  %v2757_v52 = vld [vmem:[%s6699_s13 + $0xc0] sm:$0xff]  ;;  %v2758_v54 = vld [vmem:[%s6699_s13 + $0xc8] sm:$0xff]  ;;  %v4457_v55 = vpack.c.bf16 %v2768_v41, %v2767_v38 }
 0x4d4   :  { %v2747_v41 = vld [vmem:[%s6699_s13 + $0x70] sm:$0xff] }
 0x4d5   :  { %v2321_v53 = vadd.f32 %v3496_v58, %v2251_v57  ;;  %v2769_v58 = vld [vmem:[%s6699_s13 + $0x120] sm:$0xff] }
 0x4ef   :  { %v3529_v59 = vpop.f32.mrb[30].mxu1 }
 0x4f0   :  { %v3530_v61 = vpop.f32.mrb[31].mxu1 }
 0x4f1   :  { %v3531_v62 = vadd.f32 %v3530_v61, %v3529_v59  ;;  %v2460_v50 = vpop.f32.mrb[40].mxu0  ;;  %v4433_v59 = vpack.c.bf16 %v2740_v51, %v2739_v48  ;;  %v2787_v61 = vld [vmem:[%s6699_s13 + $0x1b0] sm:$0xff]  ;;  %v2780_v51 = vld [vmem:[%s6699_s13 + $0x178] sm:$0xff] }
 0x4f2   :  { %v3859_v63 = vpop.f32.mrb[41].mxu0  ;;  %v2779_v48 = vld [vmem:[%s6699_s13 + $0x170] sm:$0xff] }
 0x4f3   :  { %v2391_v1 = vadd.f32 %v3531_v62, %v2321_v53  ;;  %v2770_v53 = vld [vmem:[%s6699_s13 + $0x128] sm:$0xff]  ;;  %v2788_v62 = vld [vmem:[%s6699_s13 + $0x1b8] sm:$0xff]  ;;  %v2741_v63 = vld [vmem:[%s6699_s13 + $0x40] sm:$0xff] }
 0x4f5   :  { %v2461_v2 = vadd.f32 %v2460_v50, %v2391_v1  ;;  %v4435_v50 = vpack.c.bf16 %v2758_v54, %v2757_v52  ;;  %v2742_v1 = vld [vmem:[%s6699_s13 + $0x48] sm:$0xff]  ;;  %v4481_v54 = vpack.c.bf16 %v2780_v51, %v2779_v48 }
 0x4f7   :  { %v2464_v9 = vmul.f32 0.5, %v2461_v2  ;;  %v2759_v2 = vld [vmem:[%s6699_s13 + $0xd0] sm:$0xff] }
 0x4f9   :  { %v2465_v11 = vmul.f32 1.442695, %v2464_v9  ;;  %v2760_v9 = vld [vmem:[%s6699_s13 + $0xd8] sm:$0xff] }
 0x4fb   :  { %4559 = vpow2.f32 %v2465_v11  ;;  %v4461_v11 = vpack.c.bf16 %v2770_v53, %v2769_v58  ;;  %v2502_v58 = vsub.s32 2, %v4994_v4 }
 0x505   :  { %v4560_v30 = vpop.eup %4559 }
 0x506   :  { %v2468_v10 = vmul.f32 %v4560_v30, %v2467_v12  ;;  %v4463_v12 = vpack.c.bf16 %v2788_v62, %v2787_v61  ;;  %v4437_v30 = vpack.c.bf16 %v2742_v1, %v2741_v63  ;;  %v2798_v63 = vld [vmem:[%s6699_s13 + $0x208] sm:$0xff] }
 0x508   :  { %v2469_v15 = vadd.f32 %v2468_v10, %v2062_v46  ;;  %v2786_v46 = vld [vmem:[%s6699_s13 + $0x1a8] sm:$0xff]  ;;  %v4439_v10 = vpack.c.bf16 %v2760_v9, %v2759_v2 }
 0x509   :  { %v4459_v57 = vpack.c.bf16 %v2786_v46, %v2785_v45  ;;  %v2795_v45 = vld [vmem:[%s6699_s13 + $0x1f0] sm:$0xff] }
 0x50a   :  { %3229 = vmatmul.mubr.msk.f32.vlgmr.msra.gmra.mrb[42].mxu0 %vm2517_vm3, %v2469_v15  ;;  %3230 = vmatmul.mubr.msk.f32.vlgmr.msra.gmra.mrb[32].mxu1 %vm2517_vm3, %v2469_v15 }
 0x50b   :  { %4415 = vmatpush3.bf16.msra.mxu0 %v4414_v13  ;;  %3868 = vmatprep.mubr.msk.f32.mxu0 %vm4589_vm14, %v5281_v49  ;;  %v2761_v13 = vld [vmem:[%s6699_s13 + $0xe0] sm:$0xff] }
 0x50c   :  { %4416 = vmatprep.subr.bf16.mxu0 %v4588_v5  ;;  %4422 = vmatpush3.bf16.msra.mxu1 %v4421_v16  ;;  %v2773_v16 = vld [vmem:[%s6699_s13 + $0x140] sm:$0xff] }
 0x50d   :  { %4424 = vmatprep.subr.bf16.mxu1 %v4423_v19  ;;  %v2791_v19 = vld [vmem:[%s6699_s13 + $0x1d0] sm:$0xff] }
 0x50f   :  { %4418 = vmatpush3.bf16.msra.mxu0 %v4417_v24  ;;  %v4469_v24 = vpack.c.bf16 %v2774_v17, %v2773_v16  ;;  %v2510_v16 = vsub.s32 4, %v4994_v4  ;;  %v2805_v17 = vld [vmem:[%s6699_s13 + $0x240] sm:$0xff] }
 0x510   :  { %4452 = vmatprep.subr.bf16.mxu0 %v4451_v7  ;;  %4426 = vmatpush3.bf16.msra.mxu1 %v4425_v37  ;;  %v4471_v7 = vpack.c.bf16 %v2792_v21, %v2791_v19  ;;  %v4445_v37 = vpack.c.bf16 %v2746_v23, %v2745_v60  ;;  %v3232_v23 = vld [vmem:[%s6700_s14] ss:$0 sm:$0xff] }
 0x511   :  { %4428 = vmatprep.subr.bf16.mxu1 %v4427_v29  ;;  %v4473_v29 = vpack.c.bf16 %v2776_v26, %v2775_v25 }
 0x512   :  { %3869 = vmatmul.mubr.msk.f32.vlgmr.msra.gmra.mrb[44].mxu0 %vm2517_vm3, %v2469_v15  ;;  %v2762_v15 = vld [vmem:[%s6699_s13 + $0xe8] sm:$0xff] }
 0x513   :  { %4454 = vmatpush3.bf16.msra.mxu0 %v4453_v35  ;;  %v4443_v22 = vpack.c.bf16 %v2762_v15, %v2761_v13  ;;  %v2763_v35 = vld [vmem:[%s6699_s13 + $0xf0] sm:$0xff] }
 0x514   :  { %4456 = vmatprep.subr.bf16.mxu0 %v4455_v36  ;;  %4430 = vmatpush3.bf16.msra.mxu1 %v4429_v42  ;;  %v2764_v36 = vld [vmem:[%s6699_s13 + $0xf8] sm:$0xff] }
 0x515   :  { %4432 = vmatprep.subr.bf16.mxu1 %v4431_v47  ;;  %v4447_v38 = vpack.c.bf16 %v2764_v36, %v2763_v35  ;;  %v2748_v42 = vld [vmem:[%s6699_s13 + $0x78] sm:$0xff] }
 0x516   :  { %v4449_v46 = vpack.c.bf16 %v2748_v42, %v2747_v41  ;;  %v2796_v47 = vld [vmem:[%s6699_s13 + $0x1f8] sm:$0xff] }
 0x517   :  { %4458 = vmatpush3.bf16.msra.mxu0 %v4457_v55  ;;  %v4479_v52 = vpack.c.bf16 %v2796_v47, %v2795_v45  ;;  %v2506_v55 = vsub.s32 3, %v4994_v4 }
 0x518   :  { %4460 = vmatprep.subr.bf16.mxu0 %v4459_v57  ;;  %4434 = vmatpush3.bf16.msra.mxu1 %v4433_v59  ;;  %v2490_v57 = vld [vmem:[%s6698_s12] sm:$0x1f] }
 0x519   :  { %4436 = vmatprep.subr.bf16.mxu1 %v4435_v50  ;;  %v2499_v53 = vrot.slane %v2490_v57, %v140_v8  ;;  %v2507_v59 = vrot.slane %v2490_v57, %v2506_v55  ;;  %v2495_v61 = vrot.slane %v2490_v57, %v136_v6  ;;  %v2503_v62 = vrot.slane %v2490_v57, %v2502_v58  ;;  %v2797_v50 = vld [vmem:[%s6699_s13 + $0x200] sm:$0xff]  ;;  %v2799_v6 = vld [vmem:[%s6699_s13 + $0x210] sm:$0xff] }
 0x51a   :  { %v4484_v8 = vpack.c.bf16 %v2798_v63, %v2797_v50  ;;  %v4487_v0 = vpack.c.bf16 %v2800_v14, %v2799_v6  ;;  %v2511_v21 = vrot.slane %v2490_v57, %v2510_v16 }
 0x51b   :  { %4462 = vmatpush3.bf16.msra.mxu0 %v4461_v11 }
 0x51c   :  { %4464 = vmatprep.subr.bf16.mxu0 %v4463_v12  ;;  %4438 = vmatpush3.bf16.msra.mxu1 %v4437_v30 }
 0x51d   :  { %4440 = vmatprep.subr.bf16.mxu1 %v4439_v10  ;;  %v2801_v10 = vld [vmem:[%s6699_s13 + $0x220] sm:$0xff] }
 0x51e   :  { %v4490_v15 = vpack.c.bf16 %v2802_v39, %v2801_v10 }
 0x51f   :  { %4466 = vmatpush3.bf16.msra.mxu0 %v4465_v34  ;;  %v2804_v34 = vld [vmem:[%s6699_s13 + $0x238] sm:$0xff] }
 0x520   :  { %4468 = vmatprep.subr.bf16.mxu0 %v4467_v3  ;;  %4442 = vmatpush3.bf16.msra.mxu1 %v4441_v18  ;;  %v2806_v18 = vld [vmem:[%s6699_s13 + $0x248] sm:$0xf] }
 0x521   :  { %4444 = vmatprep.subr.bf16.mxu1 %v4443_v22  ;;  %v4496_v19 = vpack.c.bf16 %v2806_v18, %v2805_v17 }
 0x523   :  { %4470 = vmatpush3.bf16.msra.mxu0 %v4469_v24 }
 0x524   :  { %4472 = vmatprep.subr.bf16.mxu0 %v4471_v7  ;;  %4446 = vmatpush3.bf16.msra.mxu1 %v4445_v37 }
 0x525   :  { %4448 = vmatprep.subr.bf16.mxu1 %v4447_v38 }
 0x527   :  { %4474 = vmatpush3.bf16.msra.mxu0 %v4473_v29 }
 0x528   :  { %4476 = vmatprep.subr.bf16.mxu0 %v4475_v31  ;;  %4450 = vmatpush3.bf16.msra.mxu1 %v4449_v46 }
 0x529   :  { %4483 = vmatprep.subr.bf16.mxu1 %v4588_v5 }
 0x52b   :  { %4478 = vmatpush3.bf16.msra.mxu0 %v4477_v43 }
 0x52c   :  { %4480 = vmatprep.subr.bf16.mxu0 %v4479_v52 }
 0x52f   :  { %4482 = vmatpush3.bf16.msra.mxu0 %v4481_v54 }
 0x5dd   :  { %v2587_v1 = vpop.f32.mrb[42].mxu0  ;;  %v2658_v2 = vpop.f32.mrb[32].mxu1 }
 0x5de   :  { %v2589_v9 = vpop.f32.mrb[43].mxu0  ;;  %v2660_v11 = vpop.f32.mrb[33].mxu1  ;;  %v2588_v20 = vadd.f32 %v2587_v1, %v2495_v61  ;;  %v2659_v30 = vadd.f32 %v2658_v2, %v2503_v62 }
 0x5df   :  { %v2590_v12 = vadd.f32 %v2589_v9, %v2499_v53  ;;  %v2661_v40 = vadd.f32 %v2660_v11, %v2507_v59 }
 0x5e1   :  { %2885 = vmatprep.mubr.f32.mxu1 %v2590_v12  ;;  %2955 = vmatprep.mubr.f32.mxu0 %v2661_v40 }
 0x5e2   :  { %2886 = vmatmul.mubr.f32.vlgmr.msra.gmra.mrb[34].mxu1 %v2588_v20  ;;  %2956 = vmatmul.mubr.f32.vlgmr.msra.gmra.mrb[46].mxu0 %v2659_v30 }
 0x5e3   :  { %4485 = vmatpush3.bf16.msra.mxu1 %v4484_v8  ;;  %3891 = vmatprep.mubr.msk.f32.mxu1 %vm4589_vm14, %v5281_v49  ;;  %v2803_v49 = vld [vmem:[%s6699_s13 + $0x230] sm:$0xff]  ;;  %s4591_s13 = smov [#allocation4]  }
 0x5e4   :  { %4486 = vmatprep.subr.bf16.mxu1 %v4588_v5  ;;  %v4493_v3 = vpack.c.bf16 %v2804_v34, %v2803_v49  ;;  %s3039_s2 = sshll.u32 %s4591_s13, 4  ;;  %s3040_s2 = int_to_ptr.vmem [resolvable:$true] %s3039_s2 }
 0x5e5   :  { %v2729_v44 = vpop.f32.mrb[44].mxu0  ;;  %s4562_s18 = scalar_lea.vmem %s3040_s2, 32  ;;  %p4567_p1 = scmp.lt.s32.totalorder %s3040_s2, %s3040_s2 }
 0x5e6   :  { %v3870_v13 = vpop.f32.mrb[45].mxu0  ;;  %v2730_v4 = vadd.f32 %v2729_v44, %v2511_v21  ;;  %p4563_p0 = scmp.ne.s32.totalorder %s3040_s2, %s4562_s18  ;;  %p4568_p2 = scmp.lt.s32.totalorder %s4562_s18, %s4562_s18 }
 0x5e7   :  { %4488 = vmatpush3.bf16.msra.mxu1 %v4487_v0 }
 0x5e8   :  { %4489 = vmatprep.subr.bf16.mxu1 %v4588_v5  ;;  %p4569_p3 = por %p4568_p2, %p4567_p1 }
 0x5ea   :  { %p4570_p4 = pnand %p4569_p3, %p4563_p0 }
 0x5eb   :  { %4491 = vmatpush3.bf16.msra.mxu1 %v4490_v15 }
 0x5ec   :  { %4492 = vmatprep.subr.bf16.mxu1 %v4588_v5 }
 0x5ef   :  { %4494 = vmatpush3.bf16.msra.mxu1 %v4493_v3 }
 0x5f0   :  { %4495 = vmatprep.subr.bf16.mxu1 %v4588_v5 }
 0x5f3   :  { %4498 = vmatpush3.bf16.msk.msra.mxu1 %vm4811_vm4, %v4496_v19 }
 0x5f6   :  { %3892 = vmatmul.mubr.msk.f32.vlgmr.msra.gmra.mrb[36].mxu1 %vm2814_vm5, %v2730_v4 }
 0x6b5   :  { %v3586_v22 = vpop.f32.mrb[34].mxu1  ;;  %v3621_v60 = vpop.f32.mrb[46].mxu0 }
 0x6b6   :  { %v3587_v24 = vpop.f32.mrb[35].mxu1  ;;  %v3622_v7 = vpop.f32.mrb[47].mxu0 }
 0x6b7   :  { %v3588_v25 = vadd.f32 %v3587_v24, %v3586_v22  ;;  %v3623_v26 = vadd.f32 %v3622_v7, %v3621_v60 }
 0x6b9   :  { %v2888_v37 = vadd.f32 %v3588_v25, %v3232_v23 }
 0x6bb   :  { %v2958_v27 = vadd.f32 %v3623_v26, %v2888_v37 }
 0x6c9   :  { %v3027_v5 = vpop.f32.mrb[36].mxu1 }
 0x6ca   :  { %v3028_v56 = vadd.f32 %v3027_v5, %v2958_v27  ;;  %v3893_v28 = vpop.f32.mrb[37].mxu1 }
 0x6cc   :  { %3032 = vst.msk [vmem:[#allocation4] sm:$0x3] %vm3031_vm6, %v3028_v56 }
 0x6cd   :  { %4573 = shalt.err (!%p4570_p4)
}
 0x6ce   :  { %s4574_s19 = scalar_lea.hbm %s6702_s16, 32 }
 0x6cf   :  { %p4575_p5 = scmp.ne.s32.totalorder %s6702_s16, %s4574_s19  ;;  %p4578_p6 = scmp.lt.u32.totalorder %s4574_s19, %s6702_s16 }
 0x6d1   :  { %p4580_p7 = pnand %p4578_p6, %p4575_p5 }
 0x6d3   :  { %4583 = shalt.err (!%p4580_p7)
}
 0x6d4   :  { %3042 = dma.vmem_to_hbm [thread:$0]  %s3040_s2, 32, %s6702_s16, [#allocation5]  }
 0x6d5   :  { %4584 = dma.done.wait [#allocation5], 32  }
 0x6d6   :  { %4585 = vsyncadd [#allocation5], 4294967264 }
 0x6d7   :  { %3050 = vsyncpa [#allocation5], 1 }

</bundles_post_ra>
